<compile_context>
chip_gen: v5e
topology: v5e:2x2
jax: 0.10.0
libtpu: 0.0.40
codegen_flags: <defaults>
</compile_context>

<pallas_src>
import numpy as np
import jax
import jax.numpy as jnp
from jax.experimental import pallas as pl
from jax.experimental.pallas import tpu as pltpu

_BN_EPS = 1e-5
_LPAD = 8   # left zero-pad width on the W (sublane) axis -> tile-aligned interior store


def _conv_bn_relu_pool(pad_ref, x, w_ref, b_ref):
    """One fused layer on a single image, entirely in VMEM.

    pad_ref: VMEM scratch (H+2, W+_LPAD+1, Cin) used for 'same' zero padding
    x:       (H, W, Cin) activation value
    w_ref:   (9*Cin, Cout) conv weights with BN scale folded in (row = (dy*3+dx)*Cin + c)
    b_ref:   (1, Cout) folded bias: beta + (conv_bias - running_mean) * scale
    returns: (H//2, W//2, Cout) pooled activation value
    """
    H, W, cin = x.shape
    cout = w_ref.shape[-1]

    # Zero-filled 'same' padding held in VMEM scratch (tiny; a few vregs per layer).
    # Interior starts at (row 1, col _LPAD) so the store begins on a sublane-tile boundary.
    pad_ref[...] = jnp.zeros(pad_ref.shape, jnp.float32)
    pad_ref[1:H + 1, _LPAD:_LPAD + W, :] = x

    # im2col: the 9 shifted taps concatenated along the channel/lane axis ->
    # a single (H*W, 9*Cin) @ (9*Cin, Cout) MXU matmul (K = 27/144/288/576).
    taps = [pad_ref[dy:dy + H, _LPAD - 1 + dx:_LPAD - 1 + dx + W, :]
            for dy in range(3) for dx in range(3)]
    patches = jnp.concatenate(taps, axis=-1).reshape(H * W, 9 * cin)
    y = jnp.dot(patches, w_ref[...], preferred_element_type=jnp.float32)

    # 2x2 stride-2 max-pool BEFORE bias+ReLU.  max(relu(m_i + b)) == relu(max(m_i) + b)
    # since both + per-channel-bias and ReLU are monotone; pooling first means the
    # elementwise bias/ReLU runs on 4x fewer elements.  Vertical pairs first (splits
    # only the leading axis, layout-free), then horizontal pairs.
    y = jnp.max(y.reshape(H // 2, 2, W, cout), axis=1)          # (H//2, W, Cout)
    y = jnp.max(y.reshape(H // 2, W // 2, 2, cout), axis=2)     # (H//2, W//2, Cout)
    return jnp.maximum(y + b_ref[...], 0.0)                     # folded BN bias + ReLU


def _beauty_cnn_kernel(x_ref, w1, b1, w2, b2, w3, b3, w4, b4, o_ref,
                       pad1, pad2, pad3, pad4):
    """Whole network for one image; all intermediates stay in VMEM/vregs."""
    a = x_ref[0]                                   # (16, 16, 3) NHWC image
    a = _conv_bn_relu_pool(pad1, a, w1, b1)        # (8, 8, 16)
    a = _conv_bn_relu_pool(pad2, a, w2, b2)        # (4, 4, 32)
    a = _conv_bn_relu_pool(pad3, a, w3, b3)        # (2, 2, 64)
    a = _conv_bn_relu_pool(pad4, a, w4, b4)        # (1, 1, 64)
    # Final spatial is 1x1, so this flatten order equals torch's NCHW view(N, -1).
    o_ref[...] = a.astype(o_ref.dtype)             # (1, 1, 64)


def beauty_cnn_forward(x_nchw, params):
    """Fused Pallas forward. x_nchw: (N, 3, H, W) float32, like the PyTorch module."""
    N = x_nchw.shape[0]
    x = jnp.transpose(x_nchw, (0, 2, 3, 1)).astype(jnp.float32)   # NCHW -> NHWC (one tiny op)
    H, W, cin0 = x.shape[1], x.shape[2], x.shape[3]

    # Fold eval-mode BatchNorm into the conv weights/bias (plain JAX, tiny, once).
    flat_ws, flat_bs, chans = [], [], []
    for p in params:
        scale = p["gamma"] * jax.lax.rsqrt(p["var"] + _BN_EPS)
        kh, kw, cin, cout = p["w"].shape
        flat_ws.append((p["w"] * scale).reshape(kh * kw * cin, cout).astype(jnp.float32))
        flat_bs.append((p["beta"] + (p["b"] - p["mean"]) * scale)
                       .reshape(1, cout).astype(jnp.float32))
        chans.append((cin, cout))
    cout_last = chans[-1][1]

    # VMEM scratch: one zero-padded activation buffer per layer (total << 1 MiB).
    scratch, h, w = [], H, W
    for cin, _ in chans:
        scratch.append(pltpu.VMEM((h + 2, w + _LPAD + 1, cin), jnp.float32))
        h, w = h // 2, w // 2

    # Weights/biases: full-array blocks with constant index maps -> DMA'd once,
    # resident in VMEM across all grid steps.
    weight_specs = []
    for l in range(4):
        weight_specs.append(pl.BlockSpec(flat_ws[l].shape, lambda n: (0, 0)))
        weight_specs.append(pl.BlockSpec(flat_bs[l].shape, lambda n: (0, 0)))

    out = pl.pallas_call(
        _beauty_cnn_kernel,
        out_shape=jax.ShapeDtypeStruct((N, 1, cout_last), jnp.float32),
        grid=(N,),   # one image per grid step; "parallel" -> both TCs on megacore parts
        in_specs=[pl.BlockSpec((1, H, W, cin0), lambda n: (n, 0, 0, 0))] + weight_specs,
        out_specs=pl.BlockSpec((1, 1, cout_last), lambda n: (n, 0, 0)),
        scratch_shapes=scratch,
        compiler_params=pltpu.CompilerParams(dimension_semantics=("parallel",)),
    )(x, flat_ws[0], flat_bs[0], flat_ws[1], flat_bs[1],
      flat_ws[2], flat_bs[2], flat_ws[3], flat_bs[3])
    return out.reshape(N, cout_last)


def init_params(key):
    """Deterministic synthetic parameters for the 4 conv/BN layers."""
    layers = []
    chans = [(3, 16), (16, 32), (32, 64), (64, 64)]
    for i, (cin, cout) in enumerate(chans):
        k = jax.random.fold_in(key, i)
        kw, kb, kg, kbe, km, kv = jax.random.split(k, 6)
        layers.append(dict(
            w=jax.random.normal(kw, (3, 3, cin, cout), jnp.float32) * 0.1,   # HWIO
            b=jax.random.normal(kb, (cout,), jnp.float32) * 0.05,
            gamma=1.0 + 0.1 * jax.random.normal(kg, (cout,), jnp.float32),
            beta=0.05 * jax.random.normal(kbe, (cout,), jnp.float32),
            mean=0.05 * jax.random.normal(km, (cout,), jnp.float32),
            var=jax.random.uniform(kv, (cout,), jnp.float32, minval=0.5, maxval=1.5),
        ))
    return layers


def reference_forward(x_nchw, params):
    """Pure-JAX reference (no Pallas) for validation."""
    x = jnp.transpose(x_nchw, (0, 2, 3, 1))
    for p in params:
        y = jax.lax.conv_general_dilated(
            x, p["w"], window_strides=(1, 1), padding="SAME",
            dimension_numbers=("NHWC", "HWIO", "NHWC"))
        y = y + p["b"]
        y = (y - p["mean"]) / jnp.sqrt(p["var"] + _BN_EPS) * p["gamma"] + p["beta"]
        y = jnp.maximum(y, 0.0)
        N, H, W, C = y.shape
        x = y.reshape(N, H // 2, 2, W // 2, 2, C).max(axis=(2, 4))
    x = jnp.transpose(x, (0, 3, 1, 2))
    return x.reshape(x.shape[0], -1)


if __name__ == "__main__":
    key = jax.random.PRNGKey(0)
    kx, kp = jax.random.split(key)
    # Small input consistent with the module: NCHW, 3 input channels, 16x16 spatial.
    x = jax.random.normal(kx, (2, 3, 16, 16), jnp.float32)
    params = init_params(kp)

    # TODO(synk): training-mode Dropout(p=0.2) and BatchNorm batch statistics are
    # not implemented; this is eval-mode (dropout = identity, BN running stats).
    out = jax.block_until_ready(jax.jit(beauty_cnn_forward)(x, params))

    assert out.shape == (2, 64), out.shape   # 16 -> 8 -> 4 -> 2 -> 1 spatial, 64 ch
    ref = reference_forward(x, params)
    np.testing.assert_allclose(np.asarray(out), np.asarray(ref), rtol=1e-4, atol=1e-4)
    print("KERNEL_OK")
</pallas_src>

<mosaic_0001>
module attributes {stable_mosaic.version = 11 : i64} {
  func.func @_beauty_cnn_kernel(%arg0: i32, %arg1: memref<1x16x16x3xf32, #tpu.memory_space<vmem>>, %arg2: memref<27x16xf32, #tpu.memory_space<vmem>>, %arg3: memref<1x16xf32, #tpu.memory_space<vmem>>, %arg4: memref<144x32xf32, #tpu.memory_space<vmem>>, %arg5: memref<1x32xf32, #tpu.memory_space<vmem>>, %arg6: memref<288x64xf32, #tpu.memory_space<vmem>>, %arg7: memref<1x64xf32, #tpu.memory_space<vmem>>, %arg8: memref<576x64xf32, #tpu.memory_space<vmem>>, %arg9: memref<1x64xf32, #tpu.memory_space<vmem>>, %arg10: memref<1x1x64xf32, #tpu.memory_space<vmem>>, %arg11: memref<18x25x3xf32, #tpu.memory_space<vmem>>, %arg12: memref<10x17x16xf32, #tpu.memory_space<vmem>>, %arg13: memref<6x13x32xf32, #tpu.memory_space<vmem>>, %arg14: memref<4x11x64xf32, #tpu.memory_space<vmem>>) attributes {dimension_semantics = [#tpu.dimension_semantics<parallel>], iteration_bounds = array<i64: 2>, scalar_prefetch = 0 : i64, scratch_operands = 4 : i64, tpu.core_type = #tpu.core_type<tc>, window_params = [{transform_indices = @transform_0, window_bounds = array<i64: 1, 16, 16, 3>}, {pipeline_mode = #tpu.pipeline_mode<synchronous>, transform_indices = @transform_1, window_bounds = array<i64: 27, 16>}, {pipeline_mode = #tpu.pipeline_mode<synchronous>, transform_indices = @transform_2, window_bounds = array<i64: 1, 16>}, {pipeline_mode = #tpu.pipeline_mode<synchronous>, transform_indices = @transform_3, window_bounds = array<i64: 144, 32>}, {pipeline_mode = #tpu.pipeline_mode<synchronous>, transform_indices = @transform_4, window_bounds = array<i64: 1, 32>}, {pipeline_mode = #tpu.pipeline_mode<synchronous>, transform_indices = @transform_5, window_bounds = array<i64: 288, 64>}, {pipeline_mode = #tpu.pipeline_mode<synchronous>, transform_indices = @transform_6, window_bounds = array<i64: 1, 64>}, {pipeline_mode = #tpu.pipeline_mode<synchronous>, transform_indices = @transform_7, window_bounds = array<i64: 576, 64>}, {pipeline_mode = #tpu.pipeline_mode<synchronous>, transform_indices = @transform_8, window_bounds = array<i64: 1, 64>}, {transform_indices = @transform_9, window_bounds = array<i64: 1, 1, 64>}]} {
    %c0 = arith.constant 0 : index
    %c0_0 = arith.constant 0 : index
    %c0_1 = arith.constant 0 : index
    %c0_2 = arith.constant 0 : index
    %0 = vector.load %arg1[%c0, %c0_0, %c0_1, %c0_2] : memref<1x16x16x3xf32, #tpu.memory_space<vmem>>, vector<1x16x16x3xf32>
    %1 = vector.shape_cast %0 : vector<1x16x16x3xf32> to vector<16x16x3xf32>
    %cst = arith.constant 0.000000e+00 : f32
    %2 = vector.broadcast %cst : f32 to vector<18x25x3xf32>
    %c0_3 = arith.constant 0 : index
    %c0_4 = arith.constant 0 : index
    %c0_5 = arith.constant 0 : index
    %3 = vector.load %arg11[%c0_3, %c0_4, %c0_5] : memref<18x25x3xf32, #tpu.memory_space<vmem>>, vector<18x25x3xf32>
    tpu.vector_store %arg11[%c0_3, %c0_4, %c0_5], %2 {strides = array<i32>} : memref<18x25x3xf32, #tpu.memory_space<vmem>>, vector<18x25x3xf32>,
    %c1 = arith.constant 1 : index
    %c8 = arith.constant 8 : index
    %c0_6 = arith.constant 0 : index
    %4 = vector.load %arg11[%c1, %c8, %c0_6] : memref<18x25x3xf32, #tpu.memory_space<vmem>>, vector<16x16x3xf32>
    tpu.vector_store %arg11[%c1, %c8, %c0_6], %1 {strides = array<i32>} : memref<18x25x3xf32, #tpu.memory_space<vmem>>, vector<16x16x3xf32>,
    %c0_7 = arith.constant 0 : index
    %c7 = arith.constant 7 : index
    %c0_8 = arith.constant 0 : index
    %5 = vector.load %arg11[%c0_7, %c7, %c0_8] : memref<18x25x3xf32, #tpu.memory_space<vmem>>, vector<16x16x3xf32>
    %c0_9 = arith.constant 0 : index
    %c8_10 = arith.constant 8 : index
    %c0_11 = arith.constant 0 : index
    %6 = vector.load %arg11[%c0_9, %c8_10, %c0_11] : memref<18x25x3xf32, #tpu.memory_space<vmem>>, vector<16x16x3xf32>
    %c0_12 = arith.constant 0 : index
    %c9 = arith.constant 9 : index
    %c0_13 = arith.constant 0 : index
    %7 = vector.load %arg11[%c0_12, %c9, %c0_13] : memref<18x25x3xf32, #tpu.memory_space<vmem>>, vector<16x16x3xf32>
    %c1_14 = arith.constant 1 : index
    %c7_15 = arith.constant 7 : index
    %c0_16 = arith.constant 0 : index
    %8 = vector.load %arg11[%c1_14, %c7_15, %c0_16] : memref<18x25x3xf32, #tpu.memory_space<vmem>>, vector<16x16x3xf32>
    %c1_17 = arith.constant 1 : index
    %c8_18 = arith.constant 8 : index
    %c0_19 = arith.constant 0 : index
    %9 = vector.load %arg11[%c1_17, %c8_18, %c0_19] : memref<18x25x3xf32, #tpu.memory_space<vmem>>, vector<16x16x3xf32>
    %c1_20 = arith.constant 1 : index
    %c9_21 = arith.constant 9 : index
    %c0_22 = arith.constant 0 : index
    %10 = vector.load %arg11[%c1_20, %c9_21, %c0_22] : memref<18x25x3xf32, #tpu.memory_space<vmem>>, vector<16x16x3xf32>
    %c2 = arith.constant 2 : index
    %c7_23 = arith.constant 7 : index
    %c0_24 = arith.constant 0 : index
    %11 = vector.load %arg11[%c2, %c7_23, %c0_24] : memref<18x25x3xf32, #tpu.memory_space<vmem>>, vector<16x16x3xf32>
    %c2_25 = arith.constant 2 : index
    %c8_26 = arith.constant 8 : index
    %c0_27 = arith.constant 0 : index
    %12 = vector.load %arg11[%c2_25, %c8_26, %c0_27] : memref<18x25x3xf32, #tpu.memory_space<vmem>>, vector<16x16x3xf32>
    %c2_28 = arith.constant 2 : index
    %c9_29 = arith.constant 9 : index
    %c0_30 = arith.constant 0 : index
    %13 = vector.load %arg11[%c2_28, %c9_29, %c0_30] : memref<18x25x3xf32, #tpu.memory_space<vmem>>, vector<16x16x3xf32>
    %14 = tpu.concatenate %5, %6, %7, %8, %9, %10, %11, %12, %13 in 2 : vector<16x16x3xf32>, vector<16x16x3xf32>, vector<16x16x3xf32>, vector<16x16x3xf32>, vector<16x16x3xf32>, vector<16x16x3xf32>, vector<16x16x3xf32>, vector<16x16x3xf32>, vector<16x16x3xf32> -> vector<16x16x27xf32>
    %15 = vector.shape_cast %14 : vector<16x16x27xf32> to vector<256x27xf32>
    %c0_31 = arith.constant 0 : index
    %c0_32 = arith.constant 0 : index
    %16 = vector.load %arg2[%c0_31, %c0_32] : memref<27x16xf32, #tpu.memory_space<vmem>>, vector<27x16xf32>
    %cst_33 = arith.constant dense<0.000000e+00> : vector<256x16xf32>
    %17 = tpu.matmul %15, %16, %cst_33 {dimension_numbers = #tpu.dot_dimension_numbers<[1], [0], [0], [1], [0, 0, 1, 1], [], []>} : vector<256x27xf32>, vector<27x16xf32>, vector<256x16xf32> -> vector<256x16xf32>
    %18 = vector.shape_cast %17 : vector<256x16xf32> to vector<8x2x16x16xf32>
    %cst_34 = arith.constant dense<0xFF800000> : vector<8x16x16xf32>
    %19 = vector.multi_reduction <maximumf>, %18, %cst_34 [1] : vector<8x2x16x16xf32> to vector<8x16x16xf32>
    %20 = vector.shape_cast %19 : vector<8x16x16xf32> to vector<8x8x2x16xf32>
    %cst_35 = arith.constant dense<0xFF800000> : vector<8x8x16xf32>
    %21 = vector.multi_reduction <maximumf>, %20, %cst_35 [2] : vector<8x8x2x16xf32> to vector<8x8x16xf32>
    %c0_36 = arith.constant 0 : index
    %c0_37 = arith.constant 0 : index
    %22 = vector.load %arg3[%c0_36, %c0_37] : memref<1x16xf32, #tpu.memory_space<vmem>>, vector<1x16xf32>
    %23 = vector.shape_cast %22 : vector<1x16xf32> to vector<1x1x16xf32>
    %24 = vector.broadcast %23 : vector<1x1x16xf32> to vector<8x8x16xf32>
    %25 = arith.addf %21, %24 : vector<8x8x16xf32>
    %cst_38 = arith.constant 0.000000e+00 : f32
    %26 = vector.broadcast %cst_38 : f32 to vector<8x8x16xf32>
    %27 = arith.maximumf %25, %26 : vector<8x8x16xf32>
    %cst_39 = arith.constant 0.000000e+00 : f32
    %28 = vector.broadcast %cst_39 : f32 to vector<10x17x16xf32>
    %c0_40 = arith.constant 0 : index
    %c0_41 = arith.constant 0 : index
    %c0_42 = arith.constant 0 : index
    %29 = vector.load %arg12[%c0_40, %c0_41, %c0_42] : memref<10x17x16xf32, #tpu.memory_space<vmem>>, vector<10x17x16xf32>
    tpu.vector_store %arg12[%c0_40, %c0_41, %c0_42], %28 {strides = array<i32>} : memref<10x17x16xf32, #tpu.memory_space<vmem>>, vector<10x17x16xf32>,
    %c1_43 = arith.constant 1 : index
    %c8_44 = arith.constant 8 : index
    %c0_45 = arith.constant 0 : index
    %30 = vector.load %arg12[%c1_43, %c8_44, %c0_45] : memref<10x17x16xf32, #tpu.memory_space<vmem>>, vector<8x8x16xf32>
    tpu.vector_store %arg12[%c1_43, %c8_44, %c0_45], %27 {strides = array<i32>} : memref<10x17x16xf32, #tpu.memory_space<vmem>>, vector<8x8x16xf32>,
    %c0_46 = arith.constant 0 : index
    %c7_47 = arith.constant 7 : index
    %c0_48 = arith.constant 0 : index
    %31 = vector.load %arg12[%c0_46, %c7_47, %c0_48] : memref<10x17x16xf32, #tpu.memory_space<vmem>>, vector<8x8x16xf32>
    %c0_49 = arith.constant 0 : index
    %c8_50 = arith.constant 8 : index
    %c0_51 = arith.constant 0 : index
    %32 = vector.load %arg12[%c0_49, %c8_50, %c0_51] : memref<10x17x16xf32, #tpu.memory_space<vmem>>, vector<8x8x16xf32>
    %c0_52 = arith.constant 0 : index
    %c9_53 = arith.constant 9 : index
    %c0_54 = arith.constant 0 : index
    %33 = vector.load %arg12[%c0_52, %c9_53, %c0_54] : memref<10x17x16xf32, #tpu.memory_space<vmem>>, vector<8x8x16xf32>
    %c1_55 = arith.constant 1 : index
    %c7_56 = arith.constant 7 : index
    %c0_57 = arith.constant 0 : index
    %34 = vector.load %arg12[%c1_55, %c7_56, %c0_57] : memref<10x17x16xf32, #tpu.memory_space<vmem>>, vector<8x8x16xf32>
    %c1_58 = arith.constant 1 : index
    %c8_59 = arith.constant 8 : index
    %c0_60 = arith.constant 0 : index
    %35 = vector.load %arg12[%c1_58, %c8_59, %c0_60] : memref<10x17x16xf32, #tpu.memory_space<vmem>>, vector<8x8x16xf32>
    %c1_61 = arith.constant 1 : index
    %c9_62 = arith.constant 9 : index
    %c0_63 = arith.constant 0 : index
    %36 = vector.load %arg12[%c1_61, %c9_62, %c0_63] : memref<10x17x16xf32, #tpu.memory_space<vmem>>, vector<8x8x16xf32>
    %c2_64 = arith.constant 2 : index
    %c7_65 = arith.constant 7 : index
    %c0_66 = arith.constant 0 : index
    %37 = vector.load %arg12[%c2_64, %c7_65, %c0_66] : memref<10x17x16xf32, #tpu.memory_space<vmem>>, vector<8x8x16xf32>
    %c2_67 = arith.constant 2 : index
    %c8_68 = arith.constant 8 : index
    %c0_69 = arith.constant 0 : index
    %38 = vector.load %arg12[%c2_67, %c8_68, %c0_69] : memref<10x17x16xf32, #tpu.memory_space<vmem>>, vector<8x8x16xf32>
    %c2_70 = arith.constant 2 : index
    %c9_71 = arith.constant 9 : index
    %c0_72 = arith.constant 0 : index
    %39 = vector.load %arg12[%c2_70, %c9_71, %c0_72] : memref<10x17x16xf32, #tpu.memory_space<vmem>>, vector<8x8x16xf32>
    %40 = tpu.concatenate %31, %32, %33, %34, %35, %36, %37, %38, %39 in 2 : vector<8x8x16xf32>, vector<8x8x16xf32>, vector<8x8x16xf32>, vector<8x8x16xf32>, vector<8x8x16xf32>, vector<8x8x16xf32>, vector<8x8x16xf32>, vector<8x8x16xf32>, vector<8x8x16xf32> -> vector<8x8x144xf32>
    %41 = vector.shape_cast %40 : vector<8x8x144xf32> to vector<64x144xf32>
    %c0_73 = arith.constant 0 : index
    %c0_74 = arith.constant 0 : index
    %42 = vector.load %arg4[%c0_73, %c0_74] : memref<144x32xf32, #tpu.memory_space<vmem>>, vector<144x32xf32>
    %cst_75 = arith.constant dense<0.000000e+00> : vector<64x32xf32>
    %43 = tpu.matmul %41, %42, %cst_75 {dimension_numbers = #tpu.dot_dimension_numbers<[1], [0], [0], [1], [0, 0, 1, 1], [], []>} : vector<64x144xf32>, vector<144x32xf32>, vector<64x32xf32> -> vector<64x32xf32>
    %44 = vector.shape_cast %43 : vector<64x32xf32> to vector<4x2x8x32xf32>
    %cst_76 = arith.constant dense<0xFF800000> : vector<4x8x32xf32>
    %45 = vector.multi_reduction <maximumf>, %44, %cst_76 [1] : vector<4x2x8x32xf32> to vector<4x8x32xf32>
    %46 = vector.shape_cast %45 : vector<4x8x32xf32> to vector<4x4x2x32xf32>
    %cst_77 = arith.constant dense<0xFF800000> : vector<4x4x32xf32>
    %47 = vector.multi_reduction <maximumf>, %46, %cst_77 [2] : vector<4x4x2x32xf32> to vector<4x4x32xf32>
    %c0_78 = arith.constant 0 : index
    %c0_79 = arith.constant 0 : index
    %48 = vector.load %arg5[%c0_78, %c0_79] : memref<1x32xf32, #tpu.memory_space<vmem>>, vector<1x32xf32>
    %49 = vector.shape_cast %48 : vector<1x32xf32> to vector<1x1x32xf32>
    %50 = vector.broadcast %49 : vector<1x1x32xf32> to vector<4x4x32xf32>
    %51 = arith.addf %47, %50 : vector<4x4x32xf32>
    %cst_80 = arith.constant 0.000000e+00 : f32
    %52 = vector.broadcast %cst_80 : f32 to vector<4x4x32xf32>
    %53 = arith.maximumf %51, %52 : vector<4x4x32xf32>
    %cst_81 = arith.constant 0.000000e+00 : f32
    %54 = vector.broadcast %cst_81 : f32 to vector<6x13x32xf32>
    %c0_82 = arith.constant 0 : index
    %c0_83 = arith.constant 0 : index
    %c0_84 = arith.constant 0 : index
    %55 = vector.load %arg13[%c0_82, %c0_83, %c0_84] : memref<6x13x32xf32, #tpu.memory_space<vmem>>, vector<6x13x32xf32>
    tpu.vector_store %arg13[%c0_82, %c0_83, %c0_84], %54 {strides = array<i32>} : memref<6x13x32xf32, #tpu.memory_space<vmem>>, vector<6x13x32xf32>,
    %c1_85 = arith.constant 1 : index
    %c8_86 = arith.constant 8 : index
    %c0_87 = arith.constant 0 : index
    %56 = vector.load %arg13[%c1_85, %c8_86, %c0_87] : memref<6x13x32xf32, #tpu.memory_space<vmem>>, vector<4x4x32xf32>
    tpu.vector_store %arg13[%c1_85, %c8_86, %c0_87], %53 {strides = array<i32>} : memref<6x13x32xf32, #tpu.memory_space<vmem>>, vector<4x4x32xf32>,
    %c0_88 = arith.constant 0 : index
    %c7_89 = arith.constant 7 : index
    %c0_90 = arith.constant 0 : index
    %57 = vector.load %arg13[%c0_88, %c7_89, %c0_90] : memref<6x13x32xf32, #tpu.memory_space<vmem>>, vector<4x4x32xf32>
    %c0_91 = arith.constant 0 : index
    %c8_92 = arith.constant 8 : index
    %c0_93 = arith.constant 0 : index
    %58 = vector.load %arg13[%c0_91, %c8_92, %c0_93] : memref<6x13x32xf32, #tpu.memory_space<vmem>>, vector<4x4x32xf32>
    %c0_94 = arith.constant 0 : index
    %c9_95 = arith.constant 9 : index
    %c0_96 = arith.constant 0 : index
    %59 = vector.load %arg13[%c0_94, %c9_95, %c0_96] : memref<6x13x32xf32, #tpu.memory_space<vmem>>, vector<4x4x32xf32>
    %c1_97 = arith.constant 1 : index
    %c7_98 = arith.constant 7 : index
    %c0_99 = arith.constant 0 : index
    %60 = vector.load %arg13[%c1_97, %c7_98, %c0_99] : memref<6x13x32xf32, #tpu.memory_space<vmem>>, vector<4x4x32xf32>
    %c1_100 = arith.constant 1 : index
    %c8_101 = arith.constant 8 : index
    %c0_102 = arith.constant 0 : index
    %61 = vector.load %arg13[%c1_100, %c8_101, %c0_102] : memref<6x13x32xf32, #tpu.memory_space<vmem>>, vector<4x4x32xf32>
    %c1_103 = arith.constant 1 : index
    %c9_104 = arith.constant 9 : index
    %c0_105 = arith.constant 0 : index
    %62 = vector.load %arg13[%c1_103, %c9_104, %c0_105] : memref<6x13x32xf32, #tpu.memory_space<vmem>>, vector<4x4x32xf32>
    %c2_106 = arith.constant 2 : index
    %c7_107 = arith.constant 7 : index
    %c0_108 = arith.constant 0 : index
    %63 = vector.load %arg13[%c2_106, %c7_107, %c0_108] : memref<6x13x32xf32, #tpu.memory_space<vmem>>, vector<4x4x32xf32>
    %c2_109 = arith.constant 2 : index
    %c8_110 = arith.constant 8 : index
    %c0_111 = arith.constant 0 : index
    %64 = vector.load %arg13[%c2_109, %c8_110, %c0_111] : memref<6x13x32xf32, #tpu.memory_space<vmem>>, vector<4x4x32xf32>
    %c2_112 = arith.constant 2 : index
    %c9_113 = arith.constant 9 : index
    %c0_114 = arith.constant 0 : index
    %65 = vector.load %arg13[%c2_112, %c9_113, %c0_114] : memref<6x13x32xf32, #tpu.memory_space<vmem>>, vector<4x4x32xf32>
    %66 = tpu.concatenate %57, %58, %59, %60, %61, %62, %63, %64, %65 in 2 : vector<4x4x32xf32>, vector<4x4x32xf32>, vector<4x4x32xf32>, vector<4x4x32xf32>, vector<4x4x32xf32>, vector<4x4x32xf32>, vector<4x4x32xf32>, vector<4x4x32xf32>, vector<4x4x32xf32> -> vector<4x4x288xf32>
    %67 = vector.shape_cast %66 : vector<4x4x288xf32> to vector<16x288xf32>
    %c0_115 = arith.constant 0 : index
    %c0_116 = arith.constant 0 : index
    %68 = vector.load %arg6[%c0_115, %c0_116] : memref<288x64xf32, #tpu.memory_space<vmem>>, vector<288x64xf32>
    %cst_117 = arith.constant dense<0.000000e+00> : vector<16x64xf32>
    %69 = tpu.matmul %67, %68, %cst_117 {dimension_numbers = #tpu.dot_dimension_numbers<[1], [0], [0], [1], [0, 0, 1, 1], [], []>} : vector<16x288xf32>, vector<288x64xf32>, vector<16x64xf32> -> vector<16x64xf32>
    %70 = vector.shape_cast %69 : vector<16x64xf32> to vector<2x2x4x64xf32>
    %cst_118 = arith.constant dense<0xFF800000> : vector<2x4x64xf32>
    %71 = vector.multi_reduction <maximumf>, %70, %cst_118 [1] : vector<2x2x4x64xf32> to vector<2x4x64xf32>
    %72 = vector.shape_cast %71 : vector<2x4x64xf32> to vector<2x2x2x64xf32>
    %cst_119 = arith.constant dense<0xFF800000> : vector<2x2x64xf32>
    %73 = vector.multi_reduction <maximumf>, %72, %cst_119 [2] : vector<2x2x2x64xf32> to vector<2x2x64xf32>
    %c0_120 = arith.constant 0 : index
    %c0_121 = arith.constant 0 : index
    %74 = vector.load %arg7[%c0_120, %c0_121] : memref<1x64xf32, #tpu.memory_space<vmem>>, vector<1x64xf32>
    %75 = vector.shape_cast %74 : vector<1x64xf32> to vector<1x1x64xf32>
    %76 = vector.broadcast %75 : vector<1x1x64xf32> to vector<2x2x64xf32>
    %77 = arith.addf %73, %76 : vector<2x2x64xf32>
    %cst_122 = arith.constant 0.000000e+00 : f32
    %78 = vector.broadcast %cst_122 : f32 to vector<2x2x64xf32>
    %79 = arith.maximumf %77, %78 : vector<2x2x64xf32>
    %cst_123 = arith.constant 0.000000e+00 : f32
    %80 = vector.broadcast %cst_123 : f32 to vector<4x11x64xf32>
    %c0_124 = arith.constant 0 : index
    %c0_125 = arith.constant 0 : index
    %c0_126 = arith.constant 0 : index
    %81 = vector.load %arg14[%c0_124, %c0_125, %c0_126] : memref<4x11x64xf32, #tpu.memory_space<vmem>>, vector<4x11x64xf32>
    tpu.vector_store %arg14[%c0_124, %c0_125, %c0_126], %80 {strides = array<i32>} : memref<4x11x64xf32, #tpu.memory_space<vmem>>, vector<4x11x64xf32>,
    %c1_127 = arith.constant 1 : index
    %c8_128 = arith.constant 8 : index
    %c0_129 = arith.constant 0 : index
    %82 = vector.load %arg14[%c1_127, %c8_128, %c0_129] : memref<4x11x64xf32, #tpu.memory_space<vmem>>, vector<2x2x64xf32>
    tpu.vector_store %arg14[%c1_127, %c8_128, %c0_129], %79 {strides = array<i32>} : memref<4x11x64xf32, #tpu.memory_space<vmem>>, vector<2x2x64xf32>,
    %c0_130 = arith.constant 0 : index
    %c7_131 = arith.constant 7 : index
    %c0_132 = arith.constant 0 : index
    %83 = vector.load %arg14[%c0_130, %c7_131, %c0_132] : memref<4x11x64xf32, #tpu.memory_space<vmem>>, vector<2x2x64xf32>
    %c0_133 = arith.constant 0 : index
    %c8_134 = arith.constant 8 : index
    %c0_135 = arith.constant 0 : index
    %84 = vector.load %arg14[%c0_133, %c8_134, %c0_135] : memref<4x11x64xf32, #tpu.memory_space<vmem>>, vector<2x2x64xf32>
    %c0_136 = arith.constant 0 : index
    %c9_137 = arith.constant 9 : index
    %c0_138 = arith.constant 0 : index
    %85 = vector.load %arg14[%c0_136, %c9_137, %c0_138] : memref<4x11x64xf32, #tpu.memory_space<vmem>>, vector<2x2x64xf32>
    %c1_139 = arith.constant 1 : index
    %c7_140 = arith.constant 7 : index
    %c0_141 = arith.constant 0 : index
    %86 = vector.load %arg14[%c1_139, %c7_140, %c0_141] : memref<4x11x64xf32, #tpu.memory_space<vmem>>, vector<2x2x64xf32>
    %c1_142 = arith.constant 1 : index
    %c8_143 = arith.constant 8 : index
    %c0_144 = arith.constant 0 : index
    %87 = vector.load %arg14[%c1_142, %c8_143, %c0_144] : memref<4x11x64xf32, #tpu.memory_space<vmem>>, vector<2x2x64xf32>
    %c1_145 = arith.constant 1 : index
    %c9_146 = arith.constant 9 : index
    %c0_147 = arith.constant 0 : index
    %88 = vector.load %arg14[%c1_145, %c9_146, %c0_147] : memref<4x11x64xf32, #tpu.memory_space<vmem>>, vector<2x2x64xf32>
    %c2_148 = arith.constant 2 : index
    %c7_149 = arith.constant 7 : index
    %c0_150 = arith.constant 0 : index
    %89 = vector.load %arg14[%c2_148, %c7_149, %c0_150] : memref<4x11x64xf32, #tpu.memory_space<vmem>>, vector<2x2x64xf32>
    %c2_151 = arith.constant 2 : index
    %c8_152 = arith.constant 8 : index
    %c0_153 = arith.constant 0 : index
    %90 = vector.load %arg14[%c2_151, %c8_152, %c0_153] : memref<4x11x64xf32, #tpu.memory_space<vmem>>, vector<2x2x64xf32>
    %c2_154 = arith.constant 2 : index
    %c9_155 = arith.constant 9 : index
    %c0_156 = arith.constant 0 : index
    %91 = vector.load %arg14[%c2_154, %c9_155, %c0_156] : memref<4x11x64xf32, #tpu.memory_space<vmem>>, vector<2x2x64xf32>
    %92 = tpu.concatenate %83, %84, %85, %86, %87, %88, %89, %90, %91 in 2 : vector<2x2x64xf32>, vector<2x2x64xf32>, vector<2x2x64xf32>, vector<2x2x64xf32>, vector<2x2x64xf32>, vector<2x2x64xf32>, vector<2x2x64xf32>, vector<2x2x64xf32>, vector<2x2x64xf32> -> vector<2x2x576xf32>
    %93 = vector.shape_cast %92 : vector<2x2x576xf32> to vector<4x576xf32>
    %c0_157 = arith.constant 0 : index
    %c0_158 = arith.constant 0 : index
    %94 = vector.load %arg8[%c0_157, %c0_158] : memref<576x64xf32, #tpu.memory_space<vmem>>, vector<576x64xf32>
    %cst_159 = arith.constant dense<0.000000e+00> : vector<4x64xf32>
    %95 = tpu.matmul %93, %94, %cst_159 {dimension_numbers = #tpu.dot_dimension_numbers<[1], [0], [0], [1], [0, 0, 1, 1], [], []>} : vector<4x576xf32>, vector<576x64xf32>, vector<4x64xf32> -> vector<4x64xf32>
    %96 = vector.shape_cast %95 : vector<4x64xf32> to vector<1x2x2x64xf32>
    %cst_160 = arith.constant dense<0xFF800000> : vector<1x2x64xf32>
    %97 = vector.multi_reduction <maximumf>, %96, %cst_160 [1] : vector<1x2x2x64xf32> to vector<1x2x64xf32>
    %98 = vector.shape_cast %97 : vector<1x2x64xf32> to vector<1x1x2x64xf32>
    %cst_161 = arith.constant dense<0xFF800000> : vector<1x1x64xf32>
    %99 = vector.multi_reduction <maximumf>, %98, %cst_161 [2] : vector<1x1x2x64xf32> to vector<1x1x64xf32>
    %c0_162 = arith.constant 0 : index
    %c0_163 = arith.constant 0 : index
    %100 = vector.load %arg9[%c0_162, %c0_163] : memref<1x64xf32, #tpu.memory_space<vmem>>, vector<1x64xf32>
    %101 = vector.shape_cast %100 : vector<1x64xf32> to vector<1x1x64xf32>
    %102 = arith.addf %99, %101 : vector<1x1x64xf32>
    %cst_164 = arith.constant 0.000000e+00 : f32
    %103 = vector.broadcast %cst_164 : f32 to vector<1x1x64xf32>
    %104 = arith.maximumf %102, %103 : vector<1x1x64xf32>
    %c0_165 = arith.constant 0 : index
    %c0_166 = arith.constant 0 : index
    %c0_167 = arith.constant 0 : index
    %105 = vector.load %arg10[%c0_165, %c0_166, %c0_167] : memref<1x1x64xf32, #tpu.memory_space<vmem>>, vector<1x1x64xf32>
    tpu.vector_store %arg10[%c0_165, %c0_166, %c0_167], %104 {strides = array<i32>} : memref<1x1x64xf32, #tpu.memory_space<vmem>>, vector<1x1x64xf32>,
    return
  }
  func.func @transform_0(%arg0: i32) -> (i32, i32, i32, i32) {
    %c0_i32 = arith.constant 0 : i32
    %c0_i32_0 = arith.constant 0 : i32
    %c0_i32_1 = arith.constant 0 : i32
    %c0_i32_2 = arith.constant 0 : i32
    return %arg0, %c0_i32, %c0_i32_0, %c0_i32_1 : i32, i32, i32, i32
  }
  func.func @transform_1(%arg0: i32) -> (i32, i32) {
    %c0_i32 = arith.constant 0 : i32
    %c0_i32_0 = arith.constant 0 : i32
    %c0_i32_1 = arith.constant 0 : i32
    return %c0_i32, %c0_i32_0 : i32, i32
  }
  func.func @transform_2(%arg0: i32) -> (i32, i32) {
    %c0_i32 = arith.constant 0 : i32
    %c0_i32_0 = arith.constant 0 : i32
    %c0_i32_1 = arith.constant 0 : i32
    return %c0_i32, %c0_i32_0 : i32, i32
  }
  func.func @transform_3(%arg0: i32) -> (i32, i32) {
    %c0_i32 = arith.constant 0 : i32
    %c0_i32_0 = arith.constant 0 : i32
    %c0_i32_1 = arith.constant 0 : i32
    return %c0_i32, %c0_i32_0 : i32, i32
  }
  func.func @transform_4(%arg0: i32) -> (i32, i32) {
    %c0_i32 = arith.constant 0 : i32
    %c0_i32_0 = arith.constant 0 : i32
    %c0_i32_1 = arith.constant 0 : i32
    return %c0_i32, %c0_i32_0 : i32, i32
  }
  func.func @transform_5(%arg0: i32) -> (i32, i32) {
    %c0_i32 = arith.constant 0 : i32
    %c0_i32_0 = arith.constant 0 : i32
    %c0_i32_1 = arith.constant 0 : i32
    return %c0_i32, %c0_i32_0 : i32, i32
  }
  func.func @transform_6(%arg0: i32) -> (i32, i32) {
    %c0_i32 = arith.constant 0 : i32
    %c0_i32_0 = arith.constant 0 : i32
    %c0_i32_1 = arith.constant 0 : i32
    return %c0_i32, %c0_i32_0 : i32, i32
  }
  func.func @transform_7(%arg0: i32) -> (i32, i32) {
    %c0_i32 = arith.constant 0 : i32
    %c0_i32_0 = arith.constant 0 : i32
    %c0_i32_1 = arith.constant 0 : i32
    return %c0_i32, %c0_i32_0 : i32, i32
  }
  func.func @transform_8(%arg0: i32) -> (i32, i32) {
    %c0_i32 = arith.constant 0 : i32
    %c0_i32_0 = arith.constant 0 : i32
    %c0_i32_1 = arith.constant 0 : i32
    return %c0_i32, %c0_i32_0 : i32, i32
  }
  func.func @transform_9(%arg0: i32) -> (i32, i32, i32) {
    %c0_i32 = arith.constant 0 : i32
    %c0_i32_0 = arith.constant 0 : i32
    %c0_i32_1 = arith.constant 0 : i32
    return %arg0, %c0_i32, %c0_i32_0 : i32, i32, i32
  }
}

</mosaic_0001>

<bundles_post_ra>
// kernel: beauty_cnn_forward.1
= control target key start
LH: loop header
LB: loop body
LE: loop exit
PB: predicated region body
PF: predicated region fallthrough
CT: control target
= control target key end

     0   :  { %14 = vsyncpa [#allocation7], 0  ;;  %s7595_s0 = inlined_call_operand.vmem [shape: f32[2,16,16,3], index: 0, kind: input, shape index: {}]   ;;  %s7596_s1 = inlined_call_operand.vmem [shape: f32[27,16], index: 1, kind: input, shape index: {}]   ;;  %s7597_s2 = inlined_call_operand.vmem [shape: f32[1,16], index: 2, kind: input, shape index: {}]   ;;  %s7598_s3 = inlined_call_operand.vmem [shape: f32[144,32], index: 3, kind: input, shape index: {}]   ;;  %s7599_s4 = inlined_call_operand.vmem [shape: f32[1,32], index: 4, kind: input, shape index: {}]   ;;  %s7600_s5 = inlined_call_operand.vmem [shape: f32[288,64], index: 5, kind: input, shape index: {}]   ;;  %s7601_s6 = inlined_call_operand.vmem [shape: f32[1,64], index: 6, kind: input, shape index: {}]   ;;  %s7602_s7 = inlined_call_operand.vmem [shape: f32[576,64], index: 7, kind: input, shape index: {}]   ;;  %s7603_s8 = inlined_call_operand.vmem [shape: f32[1,64], index: 8, kind: input, shape index: {}]   ;;  %s7604_s9 = inlined_call_operand.hbm [shape: f32[2,1,64], index: 9, kind: output, shape index: {}]  }
   0x1   :  { %16 = vsyncpa [#allocation7 + $0x1], 0  ;;  %s5107_s30 = smov 0   ;;  %s5109_s10 = smov 0  }
   0x2   :  { %s5111_s11 = smov 0   ;;  %s5113_s12 = smov 0  }
   0x3 LB: > { %s5128_s13 = sadd.s32 4294967295, %s5039_s12   ;;  %s4733_s14 = sadd.s32 4294967294, %s5039_s12   ;;  %s5039_s12 = sphi %s5113_s12, %s7727_s12   ;;  %s5035_s11 = sphi %s5111_s11, %s7726_s11   ;;  %s5031_s10 = sphi %s5109_s10, %s7725_s10   ;;  %s5027_s30 = sphi %s5107_s30, %s7724_s30  }
   0x4   : > { %s5132_s15 = sadd.s32 1, %s5039_s12   ;;  %s223_s16 = sadd.s32 1, %s5035_s11 }
   0x5   : > { %s220_s17 = ssub.s32 %s5039_s12, %s5132_s15  ;;  %p233_p0 = scmp.ne.s32.totalorder %s5035_s11, %s5031_s10 }
   0x6   : > { %p221_p1 = scmp.eq.s32.totalorder %s220_s17, 0  ;;  %p234_p2 = scmp.eq.s32.totalorder %s5128_s13, 1 }
   0x7   : > { %p239_p3 = scmp.ne.s32.totalorder %s5031_s10, %s5027_s30  ;;  %p240_p4 = scmp.eq.s32.totalorder %s4733_s14, 1 }
   0x8   : > { %s5143_s18 = scalar_select %p221_p1, %s5035_s11, %s223_s16  }
   0x9   : > { %p5145_p5 = por %p234_p2, %p233_p0  ;;  %p5149_p6 = por %p240_p4, %p239_p3 }
   0xa   : > { %p4736_p7 = scmp.ge.s32.totalorder %s5039_s12, 1  ;;  %p290_p8 = scmp.lt.s32.totalorder %s5039_s12, 3 }
   0xc   : > { %p291_p9 = pnand %p4736_p7, %p290_p8 }
   0xd   : > { %s5042_s21 = smov (!%p291_p9), 3   ;;  %s5043_s22 = smov (!%p291_p9), 6  }
   0xe   : > { %294 = sbr.rel (%p291_p9) target bundleno = 1989 (0x7c5), region = 56  ;;  %p325_p10 = scmp.lt.s32.totalorder (!%p291_p9), %s5128_s13, 1 }
   0xf   : > { %s5044_s28 = smov (!%p291_p9), 9   ;;  %s7605_s29 = smov (!%p291_p9), 15  }
  0x10   : > { %s7609_s14 = smov (!%p291_p9), 21   ;;  %s5047_s16 = smov (!%p291_p9), 12  }
  0x11   : > { %s5048_s17 = smov (!%p291_p9), 18   ;;  %s7703_s26 = smov (!%p291_p9), 64  }
  0x13   : > { %vm362_vm0 = vcmask 23552   ;;  %v5041_v0 = vmov 0.0   ;;  %s326_s23 = scalar_select %p325_p10, %s5128_s13, 1  ;;  %vm366_vm1 = vcmask 16384   ;;  %v2048_v34 = vld [vmem:[%s7596_s1 + $0x18] sm:$0x7] }
  0x14   : > { %364 = vst.msk [vmem:[#allocation2 + $0x8] sm:$0xff] %vm362_vm0, %v5041_v0  ;;  %vm2146_vm2 = vcmask 1042432   ;;  %v2047_v36 = vld [vmem:[%s7596_s1 + $0x10] sm:$0xff]  ;;  %v2046_v39 = vld [vmem:[%s7596_s1 + $0x8] sm:$0xff]  ;;  %v2045_v41 = vld [vmem:[%s7596_s1] sm:$0xff]  ;;  %vm7612_vm3 = vcmask 48128  }
  0x15   : > { %363 = vst.msk [vmem:[#allocation2] sm:$0xff] %vm362_vm0, %v5041_v0  ;;  %s4785_s24 = sshll.u32 %s326_s23, 8  ;;  %s5049_s23 = smov 24   ;;  %4739 = vmatpush.msk.msra.mxu0 %vm2146_vm2, %v2048_v34  ;;  %4786 = vmatpush.msk.msra.mxu2 %vm2146_vm2, %v2048_v34  ;;  %vm1847_vm4 = vcmask 72704   ;;  %vm1880_vm5 = vcmask 97280   ;;  %vm1913_vm6 = vcmask 121856  }
  0x16   : > { %365 = vst.msk [vmem:[#allocation2 + $0x10] sm:$0xff] %vm362_vm0, %v5041_v0  ;;  %s5260_s27 = scalar_lea.vmem %s7595_s0, %s4785_s24  ;;  %s7623_s24 = smov 15   ;;  %vm1946_vm7 = vcmask 146432   ;;  %vm1979_vm8 = vcmask 171008   ;;  %vm7614_vm9 = vcmask 195584   ;;  %vm2049_vm10 = vcmask 220160  }
  0x17   : > { %368 = vst.msk [vmem:[#allocation2 + $0x20] sm:$0xff] %vm362_vm0, %v5041_v0  ;;  %v330_v3 = vld [vmem:[%s5260_s27] sm:$0xff]  ;;  %v331_v4 = vld [vmem:[%s5260_s27 + $0x8] sm:$0xff]  ;;  %v332_v5 = vld [vmem:[%s5260_s27 + $0x10] sm:$0xff]  ;;  %2163 = vmatpush.msra.mxu0 %v2047_v36  ;;  %4787 = vmatpush.msra.mxu2 %v2047_v36  ;;  %vm2263_vm11 = vcmask 130048   ;;  %vm7611_vm12 = vcmask 123904  }
  0x18   : > { %369 = vst.msk [vmem:[#allocation2 + $0x28] sm:$0xff] %vm362_vm0, %v5041_v0  ;;  %v333_v6 = vld [vmem:[%s5260_s27 + $0x18] sm:$0xff]  ;;  %v334_v13 = vld [vmem:[%s5260_s27 + $0x20] sm:$0xff]  ;;  %v335_v17 = vld [vmem:[%s5260_s27 + $0x28] sm:$0xff]  ;;  %vm3007_vm13 = vcmask 122880   ;;  %vm7607_vm14 = vcmask 1041409  }
  0x19   : > { %370 = vst.msk [vmem:[#allocation2 + $0x30] sm:$0xff] %vm362_vm0, %v5041_v0  ;;  %v336_v26 = vld [vmem:[%s5260_s27 + $0x30] sm:$0xff]  ;;  %v337_v27 = vld [vmem:[%s5260_s27 + $0x38] sm:$0xff]  ;;  %v338_v38 = vld [vmem:[%s5260_s27 + $0x40] sm:$0xff]  ;;  %2164 = vmatpush.msra.mxu0 %v2046_v39  ;;  %4788 = vmatpush.msra.mxu2 %v2046_v39  ;;  %vm7608_vm15 = vcmask 1042434   ;;  %vm3110_vm2 = vcmask 1044484  }
  0x1a   : > { %372 = vst.msk [vmem:[#allocation2 + $0x40] sm:$0xff] %vm362_vm0, %v5041_v0  ;;  %v339_v43 = vld [vmem:[%s5260_s27 + $0x48] sm:$0xff]  ;;  %v348_v34 = vld [vmem:[%s5260_s27 + $0x90] sm:$0xff]  ;;  %v349_v36 = vld [vmem:[%s5260_s27 + $0x98] sm:$0xff] }
  0x1b   : > { %v501_v1 = vld [vmem:[#allocation2 + $0x8] sm:$0xff]  ;;  %373 = vst.msk [vmem:[#allocation2 + $0x48] sm:$0xff] %vm362_vm0, %v5041_v0  ;;  %2165 = vmatpush.msra.mxu0 %v2045_v41  ;;  %4789 = vmatpush.msra.mxu2 %v2045_v41 }
  0x1c   : > { %790 = vrot.lane.b32.xlu0 %v501_v1, %s5042_s21  ;;  %374 = vst.msk [vmem:[#allocation2 + $0x50] sm:$0xff] %vm362_vm0, %v5041_v0  ;;  %v469_v47 = vld [vmem:[#allocation2 + $0x7] sm:$0xff] }
  0x1d   : > { %376 = vst.msk [vmem:[#allocation2 + $0x60] sm:$0xff] %vm362_vm0, %v5041_v0  ;;  %v533_v2 = vld [vmem:[#allocation2 + $0x9] sm:$0xff] }
  0x1e   : > { %377 = vst.msk [vmem:[#allocation2 + $0x68] sm:$0xff] %vm362_vm0, %v5041_v0  ;;  %v502_v15 = vld [vmem:[#allocation2 + $0x10] sm:$0xff] }
  0x1f   : > { %378 = vst.msk [vmem:[#allocation2 + $0x70] sm:$0xff] %vm362_vm0, %v5041_v0 }
  0x20   : > { %380 = vst.msk [vmem:[#allocation2 + $0x80] sm:$0xff] %vm362_vm0, %v5041_v0 }
  0x21   : > { %381 = vst.msk [vmem:[#allocation2 + $0x88] sm:$0xff] %vm362_vm0, %v5041_v0 }
  0x22   : > { %382 = vst.msk [vmem:[#allocation2 + $0x90] sm:$0xff] %vm362_vm0, %v5041_v0 }
  0x23   : > { %384 = vst.msk [vmem:[#allocation2 + $0xa0] sm:$0xff] %vm362_vm0, %v5041_v0 }
  0x24   : > { %385 = vst.msk [vmem:[#allocation2 + $0xa8] sm:$0xff] %vm362_vm0, %v5041_v0  ;;  %918 = vrot.lane.b32.xlu0 %v533_v2, %s5043_s22 }
  0x25   : > { %386 = vst.msk [vmem:[#allocation2 + $0xb0] sm:$0xff] %vm362_vm0, %v5041_v0 }
  0x26   : > { %388 = vst.msk [vmem:[#allocation2 + $0xc0] sm:$0xff] %vm362_vm0, %v5041_v0 }
  0x27   : > { %389 = vst.msk [vmem:[#allocation2 + $0xc8] sm:$0xff] %vm362_vm0, %v5041_v0 }
  0x28   : > { %390 = vst.msk [vmem:[#allocation2 + $0xd0] sm:$0xff] %vm362_vm0, %v5041_v0 }
  0x29   : > { %392 = vst.msk [vmem:[#allocation2 + $0xe0] sm:$0xff] %vm362_vm0, %v5041_v0 }
  0x2a   : > { %393 = vst.msk [vmem:[#allocation2 + $0xe8] sm:$0xff] %vm362_vm0, %v5041_v0 }
  0x2b   : > { %394 = vst.msk [vmem:[#allocation2 + $0xf0] sm:$0xff] %vm362_vm0, %v5041_v0 }
  0x2c   : > { %396 = vst.msk [vmem:[#allocation2 + $0x100] sm:$0xff] %vm362_vm0, %v5041_v0 }
  0x2d   : > { %397 = vst.msk [vmem:[#allocation2 + $0x108] sm:$0xff] %vm362_vm0, %v5041_v0 }
  0x2e   : > { %398 = vst.msk [vmem:[#allocation2 + $0x110] sm:$0xff] %vm362_vm0, %v5041_v0 }
  0x2f   : > { %400 = vst.msk [vmem:[#allocation2 + $0x120] sm:$0xff] %vm362_vm0, %v5041_v0 }
  0x30   : > { %401 = vst.msk [vmem:[#allocation2 + $0x128] sm:$0xff] %vm362_vm0, %v5041_v0 }
  0x31   : > { %402 = vst.msk [vmem:[#allocation2 + $0x130] sm:$0xff] %vm362_vm0, %v5041_v0 }
  0x32   : > { %404 = vst.msk [vmem:[#allocation2 + $0x140] sm:$0xff] %vm362_vm0, %v5041_v0 }
  0x33   : > { %405 = vst.msk [vmem:[#allocation2 + $0x148] sm:$0xff] %vm362_vm0, %v5041_v0 }
  0x34   : > { %406 = vst.msk [vmem:[#allocation2 + $0x150] sm:$0xff] %vm362_vm0, %v5041_v0 }
  0x35   : > { %408 = vst.msk [vmem:[#allocation2 + $0x160] sm:$0xff] %vm362_vm0, %v5041_v0 }
  0x36   : > { %409 = vst.msk [vmem:[#allocation2 + $0x168] sm:$0xff] %vm362_vm0, %v5041_v0 }
  0x37   : > { %410 = vst.msk [vmem:[#allocation2 + $0x170] sm:$0xff] %vm362_vm0, %v5041_v0 }
  0x38   : > { %412 = vst.msk [vmem:[#allocation2 + $0x180] sm:$0xff] %vm362_vm0, %v5041_v0 }
  0x39   : > { %413 = vst.msk [vmem:[#allocation2 + $0x188] sm:$0xff] %vm362_vm0, %v5041_v0 }
  0x3a   : > { %414 = vst.msk [vmem:[#allocation2 + $0x190] sm:$0xff] %vm362_vm0, %v5041_v0 }
  0x3b   : > { %416 = vst.msk [vmem:[#allocation2 + $0x1a0] sm:$0xff] %vm362_vm0, %v5041_v0 }
  0x3c   : > { %417 = vst.msk [vmem:[#allocation2 + $0x1a8] sm:$0xff] %vm362_vm0, %v5041_v0 }
  0x3d   : > { %418 = vst.msk [vmem:[#allocation2 + $0x1b0] sm:$0xff] %vm362_vm0, %v5041_v0 }
  0x3e   : > { %420 = vst.msk [vmem:[#allocation2 + $0x1c0] sm:$0xff] %vm362_vm0, %v5041_v0 }
  0x3f   : > { %421 = vst.msk [vmem:[#allocation2 + $0x1c8] sm:$0xff] %vm362_vm0, %v5041_v0 }
  0x40   : > { %422 = vst.msk [vmem:[#allocation2 + $0x1d0] sm:$0xff] %vm362_vm0, %v5041_v0 }
  0x41   : > { %424 = vst.msk [vmem:[#allocation2 + $0x1e0] sm:$0xff] %vm362_vm0, %v5041_v0 }
  0x42   : > { %425 = vst.msk [vmem:[#allocation2 + $0x1e8] sm:$0xff] %vm362_vm0, %v5041_v0 }
  0x43   : > { %426 = vst.msk [vmem:[#allocation2 + $0x1f0] sm:$0xff] %vm362_vm0, %v5041_v0 }
  0x44   : > { %428 = vst.msk [vmem:[#allocation2 + $0x200] sm:$0xff] %vm362_vm0, %v5041_v0 }
  0x45   : > { %429 = vst.msk [vmem:[#allocation2 + $0x208] sm:$0xff] %vm362_vm0, %v5041_v0 }
  0x46   : > { %430 = vst.msk [vmem:[#allocation2 + $0x210] sm:$0xff] %vm362_vm0, %v5041_v0 }
  0x47   : > { %432 = vst.msk [vmem:[#allocation2 + $0x220] sm:$0xff] %vm362_vm0, %v5041_v0 }
  0x48   : > { %433 = vst.msk [vmem:[#allocation2 + $0x228] sm:$0xff] %vm362_vm0, %v5041_v0 }
  0x49   : > { %434 = vst.msk [vmem:[#allocation2 + $0x230] sm:$0xff] %vm362_vm0, %v5041_v0 }
  0x4a   : > { %437 = vst.msk [vmem:[#allocation2 + $0x28] sm:$0xff] %vm362_vm0, %v330_v3 }
  0x4b   : > { %438 = vst.msk [vmem:[#allocation2 + $0x30] sm:$0xff] %vm362_vm0, %v331_v4  ;;  %v470_v4 = vld [vmem:[#allocation2 + $0xf] sm:$0xff] }
  0x4c   : > { %439 = vst.msk [vmem:[#allocation2 + $0x48] sm:$0xff] %vm362_vm0, %v332_v5 }
  0x4d   : > { %440 = vst.msk [vmem:[#allocation2 + $0x50] sm:$0xff] %vm362_vm0, %v333_v6 }
  0x4e   : > { %367 = vst.msk [vmem:[#allocation2 + $0x18] sm:$0x1] %vm366_vm1, %v5041_v0 }
  0x4f   : > { %371 = vst.msk [vmem:[#allocation2 + $0x38] sm:$0x1] %vm366_vm1, %v5041_v0 }
  0x50   : > { %375 = vst.msk [vmem:[#allocation2 + $0x58] sm:$0x1] %vm366_vm1, %v5041_v0 }
  0x51   : > { %v5286_v7 = vld [vmem:[#allocation2 + $0x27] sm:$0xff]  ;;  %379 = vst.msk [vmem:[#allocation2 + $0x78] sm:$0x1] %vm366_vm1, %v5041_v0 }
  0x52   : > { %v629_v8 = vld [vmem:[#allocation2 + $0x29] sm:$0xff]  ;;  %1046 = vrot.lane.b32.xlu1 %v5286_v7, %s5044_s28  ;;  %383 = vst.msk [vmem:[#allocation2 + $0x98] sm:$0x1] %vm366_vm1, %v5041_v0 }
  0x53   : > { %1302 = vrot.lane.b32.xlu2 %v629_v8, %s7605_s29  ;;  %v5295_v9 = vld [vmem:[#allocation2 + $0x48] sm:$0xff]  ;;  %387 = vst.msk [vmem:[#allocation2 + $0xb8] sm:$0x1] %vm366_vm1, %v5041_v0  ;;  %v598_v19 = vld [vmem:[#allocation2 + $0x30] sm:$0xff] }
  0x54   : > { %1558 = vrot.lane.b32.xlu0 %v5295_v9, %s7609_s14  ;;  %391 = vst.msk [vmem:[#allocation2 + $0xd8] sm:$0x1] %vm366_vm1, %v5041_v0  ;;  %v597_v10 = vld [vmem:[#allocation2 + $0x28] sm:$0xff]  ;;  %v695_v22 = vld [vmem:[#allocation2 + $0x50] sm:$0xff] }
  0x55   : > { %395 = vst.msk [vmem:[#allocation2 + $0xf8] sm:$0x1] %vm366_vm1, %v5041_v0  ;;  %v5309_v11 = vld [vmem:[#allocation2 + $0x47] sm:$0xff]  ;;  %v534_v12 = vld [vmem:[#allocation2 + $0x11] sm:$0xff] }
  0x56   : > { %399 = vst.msk [vmem:[#allocation2 + $0x118] sm:$0x1] %vm366_vm1, %v5041_v0  ;;  %v726_v14 = vld [vmem:[#allocation2 + $0x49] sm:$0xff]  ;;  %v630_v16 = vld [vmem:[#allocation2 + $0x31] sm:$0xff] }
  0x57   : > { %403 = vst.msk [vmem:[#allocation2 + $0x138] sm:$0x1] %vm366_vm1, %v5041_v0  ;;  %v5338_v18 = vld [vmem:[#allocation2 + $0x2f] sm:$0xff] }
  0x58   : > { %407 = vst.msk [vmem:[#allocation2 + $0x158] sm:$0x1] %vm366_vm1, %v5041_v0  ;;  %v5340_v20 = vld [vmem:[#allocation2 + $0x51] sm:$0xff] }
  0x59   : > { %411 = vst.msk [vmem:[#allocation2 + $0x178] sm:$0x1] %vm366_vm1, %v5041_v0  ;;  %v5347_v21 = vld [vmem:[#allocation2 + $0x4f] sm:$0xff] }
  0x5a   : > { %1174 = vrot.lane.b32.xlu1 %v597_v10, %s5047_s16  ;;  %415 = vst.msk [vmem:[#allocation2 + $0x198] sm:$0x1] %vm366_vm1, %v5041_v0 }
  0x5b   : > { %1430 = vrot.lane.b32.xlu2 %v5309_v11, %s5048_s17  ;;  %419 = vst.msk [vmem:[#allocation2 + $0x1b8] sm:$0x1] %vm366_vm1, %v5041_v0 }
  0x5c   : > { %920 = vrot.lane.b32.xlu0 %v534_v12, %s5043_s22  ;;  %423 = vst.msk [vmem:[#allocation2 + $0x1d8] sm:$0x1] %vm366_vm1, %v5041_v0 }
  0x5d   : > { %427 = vst.msk [vmem:[#allocation2 + $0x1f8] sm:$0x1] %vm366_vm1, %v5041_v0 }
  0x5e   : > { %431 = vst.msk [vmem:[#allocation2 + $0x218] sm:$0x1] %vm366_vm1, %v5041_v0 }
  0x5f   : > { %435 = vst.msk [vmem:[#allocation2 + $0x238] sm:$0x1] %vm366_vm1, %v5041_v0  ;;  %vm3107_vm1 = vcmask 1043459  }
  0x60   : > { %441 = vst.msk [vmem:[#allocation2 + $0x68] sm:$0xff] %vm362_vm0, %v334_v13 }
  0x61   : > { %442 = vst.msk [vmem:[#allocation2 + $0x70] sm:$0xff] %vm362_vm0, %v335_v17  ;;  %v347_v17 = vld [vmem:[%s5260_s27 + $0x88] sm:$0xff] }
  0x62   : > { %1686 = vrot.lane.b32.xlu1 %v726_v14, %s5049_s23  ;;  %443 = vst.msk [vmem:[#allocation2 + $0x88] sm:$0xff] %vm362_vm0, %v336_v26 }
  0x63   : > { %792 = vrot.lane.b32.xlu2 %v502_v15, %s5042_s21  ;;  %444 = vst.msk [vmem:[#allocation2 + $0x90] sm:$0xff] %vm362_vm0, %v337_v27 }
  0x64   : > { %1304 = vrot.lane.b32.xlu0 %v630_v16, %s7605_s29  ;;  %445 = vst.msk [vmem:[#allocation2 + $0xa8] sm:$0xff] %vm362_vm0, %v338_v38 }
  0x65   : > { %446 = vst.msk [vmem:[#allocation2 + $0xb0] sm:$0xff] %vm362_vm0, %v339_v43 }
  0x66   : > { %454 = vst.msk [vmem:[#allocation2 + $0x130] sm:$0xff] %vm362_vm0, %v347_v17 }
  0x67   : > { %v5354_v23 = vld [vmem:[#allocation2 + $0x67] sm:$0xff]  ;;  %455 = vst.msk [vmem:[#allocation2 + $0x148] sm:$0xff] %vm362_vm0, %v348_v34 }
  0x68   : > { %v696_v24 = vld [vmem:[#allocation2 + $0x68] sm:$0xff]  ;;  %v5374_v28 = vld [vmem:[#allocation2 + $0x70] sm:$0xff]  ;;  %456 = vst.msk [vmem:[#allocation2 + $0x150] sm:$0xff] %vm362_vm0, %v349_v36 }
  0x69   : > { %v5364_v25 = vld [vmem:[#allocation2 + $0x69] sm:$0xff]  ;;  %v5388_v30 = vld [vmem:[#allocation2 + $0x71] sm:$0xff]  ;;  %3005 = vst.msk [vmem:[#allocation3] sm:$0xff] %vm2263_vm11, %v5041_v0 }
  0x6a   : > { %1048 = vrot.lane.b32.xlu1 %v5338_v18, %s5044_s28  ;;  %v5381_v29 = vld [vmem:[#allocation2 + $0x6f] sm:$0xff]  ;;  %v5403_v33 = vld [vmem:[#allocation2 + $0x87] sm:$0xff]  ;;  %3006 = vst.msk [vmem:[#allocation3 + $0x8] sm:$0xff] %vm2263_vm11, %v5041_v0 }
  0x6b   : > { %1176 = vrot.lane.b32.xlu2 %v598_v19, %s5047_s16  ;;  %v5396_v31 = vld [vmem:[#allocation2 + $0x89] sm:$0xff]  ;;  %v5444_v52 = vld [vmem:[#allocation2 + $0x91] sm:$0xff]  ;;  %3009 = vst.msk [vmem:[#allocation3 + $0x18] sm:$0xff] %vm2263_vm11, %v5041_v0 }
  0x6c   : > { %1688 = vrot.lane.b32.xlu0 %v5340_v20, %s5049_s23  ;;  %v5408_v35 = vld [vmem:[#allocation2 + $0x88] sm:$0xff]  ;;  %v5441_v50 = vld [vmem:[#allocation2 + $0x90] sm:$0xff]  ;;  %3010 = vst.msk [vmem:[#allocation3 + $0x20] sm:$0xff] %vm2263_vm11, %v5041_v0 }
  0x6d   : > { %v5427_v42 = vld [vmem:[#allocation2 + $0x8f] sm:$0xff]  ;;  %v5468_v5 = vld [vmem:[#allocation2 + $0xa7] sm:$0xff]  ;;  %3012 = vst.msk [vmem:[#allocation3 + $0x30] sm:$0xff] %vm2263_vm11, %v5041_v0 }
  0x6e   : > { %v5457_v61 = vld [vmem:[#allocation2 + $0xa8] sm:$0xff]  ;;  %v5513_v41 = vld [vmem:[#allocation2 + $0xb0] sm:$0xff]  ;;  %3013 = vst.msk [vmem:[#allocation3 + $0x38] sm:$0xff] %vm2263_vm11, %v5041_v0 }
  0x6f   : > { %v5481_v15 = vld [vmem:[#allocation2 + $0xa9] sm:$0xff]  ;;  %v5585_v36 = vld [vmem:[#allocation2 + $0x151] sm:$0xff]  ;;  %3015 = vst.msk [vmem:[#allocation3 + $0x48] sm:$0xff] %vm2263_vm11, %v5041_v0 }
  0x70   : > { %3016 = vst.msk [vmem:[#allocation3 + $0x50] sm:$0xff] %vm2263_vm11, %v5041_v0 }
  0x71   : > { %3018 = vst.msk [vmem:[#allocation3 + $0x60] sm:$0xff] %vm2263_vm11, %v5041_v0 }
  0x72   : > { %1432 = vrot.lane.b32.xlu1 %v5347_v21, %s5048_s17  ;;  %3019 = vst.msk [vmem:[#allocation3 + $0x68] sm:$0xff] %vm2263_vm11, %v5041_v0 }
  0x73   : > { %1560 = vrot.lane.b32.xlu2 %v695_v22, %s7609_s14  ;;  %3021 = vst.msk [vmem:[#allocation3 + $0x78] sm:$0xff] %vm2263_vm11, %v5041_v0 }
  0x74   : > { %1050 = vrot.lane.b32.xlu0 %v5309_v11, %s5044_s28  ;;  %3022 = vst.msk [vmem:[#allocation3 + $0x80] sm:$0xff] %vm2263_vm11, %v5041_v0 }
  0x75   : > { %3024 = vst.msk [vmem:[#allocation3 + $0x90] sm:$0xff] %vm2263_vm11, %v5041_v0 }
  0x76   : > { %3025 = vst.msk [vmem:[#allocation3 + $0x98] sm:$0xff] %vm2263_vm11, %v5041_v0 }
  0x77   : > { %3027 = vst.msk [vmem:[#allocation3 + $0xa8] sm:$0xff] %vm2263_vm11, %v5041_v0 }
  0x78   : > { %3028 = vst.msk [vmem:[#allocation3 + $0xb0] sm:$0xff] %vm2263_vm11, %v5041_v0 }
  0x79   : > { %3030 = vst.msk [vmem:[#allocation3 + $0xc0] sm:$0xff] %vm2263_vm11, %v5041_v0 }
  0x7a   : > { %794 = vrot.lane.b32.xlu1 %v597_v10, %s5042_s21  ;;  %3031 = vst.msk [vmem:[#allocation3 + $0xc8] sm:$0xff] %vm2263_vm11, %v5041_v0 }
  0x7b   : > { %922 = vrot.lane.b32.xlu2 %v629_v8, %s5043_s22  ;;  %3033 = vst.msk [vmem:[#allocation3 + $0xd8] sm:$0xff] %vm2263_vm11, %v5041_v0 }
  0x7c   : > { %1434 = vrot.lane.b32.xlu0 %v5354_v23, %s5048_s17  ;;  %3034 = vst.msk [vmem:[#allocation3 + $0xe0] sm:$0xff] %vm2263_vm11, %v5041_v0 }
  0x7d   : > { %3014 = vst.msk [vmem:[#allocation3 + $0x40] sm:$0x1] %vm3007_vm13, %v5041_v0 }
  0x7e   : > { %3008 = vst.msk [vmem:[#allocation3 + $0x10] sm:$0x1] %vm3007_vm13, %v5041_v0 }
  0x7f   : > { %3011 = vst.msk [vmem:[#allocation3 + $0x28] sm:$0x1] %vm3007_vm13, %v5041_v0 }
  0x80   : > { %3017 = vst.msk [vmem:[#allocation3 + $0x58] sm:$0x1] %vm3007_vm13, %v5041_v0 }
  0x81   : > { %3020 = vst.msk [vmem:[#allocation3 + $0x70] sm:$0x1] %vm3007_vm13, %v5041_v0 }
  0x82   : > { %1178 = vrot.lane.b32.xlu1 %v5295_v9, %s5047_s16  ;;  %3023 = vst.msk [vmem:[#allocation3 + $0x88] sm:$0x1] %vm3007_vm13, %v5041_v0 }
  0x83   : > { %1306 = vrot.lane.b32.xlu2 %v726_v14, %s7605_s29  ;;  %3026 = vst.msk [vmem:[#allocation3 + $0xa0] sm:$0x1] %vm3007_vm13, %v5041_v0 }
  0x84   : > { %796 = vrot.lane.b32.xlu0 %v598_v19, %s5042_s21  ;;  %3029 = vst.msk [vmem:[#allocation3 + $0xb8] sm:$0x1] %vm3007_vm13, %v5041_v0 }
  0x85   : > { %3032 = vst.msk [vmem:[#allocation3 + $0xd0] sm:$0x1] %vm3007_vm13, %v5041_v0 }
  0x86   : > { %3035 = vst.msk [vmem:[#allocation3 + $0xe8] sm:$0x1] %vm3007_vm13, %v5041_v0  ;;  %vm3113_vm13 = vcmask 1045509  }
  0x8a   : > { %1562 = vrot.lane.b32.xlu1 %v696_v24, %s7609_s14 }
  0x8b   : > { %1690 = vrot.lane.b32.xlu2 %v5364_v25, %s5049_s23 }
  0x8c   : > { %1180 = vrot.lane.b32.xlu0 %v695_v22, %s5047_s16 }
  0x8e   : > { %v791_v37 = vpop.permute.xlu0 %790 }
  0x8f   : > { %v1782_v51 = vsel %vm362_vm0, %v469_v47, %v791_v37 }
  0x92   : > { %924 = vrot.lane.b32.xlu1 %v630_v16, %s5043_s22 }
  0x93   : > { %1052 = vrot.lane.b32.xlu2 %v5347_v21, %s5044_s28 }
  0x94   : > { %1564 = vrot.lane.b32.xlu0 %v5374_v28, %s7609_s14 }
  0x96   : > { %v919_v44 = vpop.permute.xlu0 %918 }
  0x97   : > { %v1815_v53 = vsel %vm7612_vm3, %v1782_v51, %v919_v44 }
  0x9a   : > { %1308 = vrot.lane.b32.xlu1 %v5340_v20, %s7605_s29 }
  0x9b   : > { %1436 = vrot.lane.b32.xlu2 %v5381_v29, %s5048_s17 }
  0x9c   : > { %926 = vrot.lane.b32.xlu0 %v726_v14, %s5043_s22 }
  0xa2   : > { %1692 = vrot.lane.b32.xlu1 %v5388_v30, %s5049_s23 }
  0xa3   : > { %798 = vrot.lane.b32.xlu2 %v5295_v9, %s5042_s21  ;;  %v340_v9 = vld [vmem:[%s5260_s27 + $0x50] sm:$0xff] }
  0xa4   : > { %1310 = vrot.lane.b32.xlu0 %v5364_v25, %s7605_s29  ;;  %447 = vst.msk [vmem:[#allocation2 + $0xc8] sm:$0xff] %vm362_vm0, %v340_v9 }
  0xaa   : > { %1054 = vrot.lane.b32.xlu1 %v5354_v23, %s5044_s28 }
  0xab   : > { %1182 = vrot.lane.b32.xlu2 %v696_v24, %s5047_s16 }
  0xac   : > { %1694 = vrot.lane.b32.xlu0 %v5396_v31, %s5049_s23 }
  0xad   : > { %v1303_v32 = vpop.permute.xlu2 %1302 }
  0xb2   : > { %1438 = vrot.lane.b32.xlu1 %v5403_v33, %s5048_s17 }
  0xb3   : > { %1566 = vrot.lane.b32.xlu2 %v5408_v35, %s7609_s14 }
  0xb4   : > { %1056 = vrot.lane.b32.xlu0 %v5381_v29, %s5044_s28 }
  0xb5   : > { %v1431_v40 = vpop.permute.xlu2 %1430 }
  0xba   : > { %800 = vrot.lane.b32.xlu1 %v695_v22, %s5042_s21 }
  0xbb   : > { %928 = vrot.lane.b32.xlu2 %v5340_v20, %s5043_s22 }
  0xbc   : > { %1440 = vrot.lane.b32.xlu0 %v5427_v42, %s5048_s17 }
  0xbd   : > { %v793_v45 = vpop.permute.xlu2 %792 }
  0xbe   : > { %v1783_v6 = vsel %vm362_vm0, %v470_v4, %v793_v45  ;;  %v5550_v4 = vld [vmem:[#allocation2 + $0x14f] sm:$0xff] }
  0xc2   : > { %1184 = vrot.lane.b32.xlu1 %v5374_v28, %s5047_s16 }
  0xc3   : > { %1312 = vrot.lane.b32.xlu2 %v5388_v30, %s7623_s24 }
  0xc4   : > { %v1047_v46 = vpop.permute.xlu1 %1046  ;;  %802 = vrot.lane.b32.xlu0 %v696_v24, %s5042_s21 }
  0xc5   : > { %v1177_v48 = vpop.permute.xlu2 %1176  ;;  %v1848_v54 = vsel %vm1847_vm4, %v1815_v53, %v1047_v46 }
  0xc6   : > { %v1559_v49 = vpop.permute.xlu0 %1558 }
  0xca   : > { %1568 = vrot.lane.b32.xlu1 %v5441_v50, %s7609_s14 }
  0xcb   : > { %1696 = vrot.lane.b32.xlu2 %v5444_v52, %s5049_s23 }
  0xcc   : > { %v1175_v55 = vpop.permute.xlu1 %1174  ;;  %1186 = vrot.lane.b32.xlu0 %v5408_v35, %s5047_s16 }
  0xcd   : > { %v1561_v56 = vpop.permute.xlu2 %1560  ;;  %v1881_v57 = vsel %vm1880_vm5, %v1848_v54, %v1175_v55  ;;  %v350_v54 = vld [vmem:[%s5260_s27 + $0xa0] sm:$0xff]  ;;  %v351_v55 = vld [vmem:[%s5260_s27 + $0xa8] sm:$0xff] }
  0xce   : > { %v1914_v58 = vsel %vm1913_vm6, %v1881_v57, %v1303_v32  ;;  %v921_v59 = vpop.permute.xlu0 %920  ;;  %457 = vst.msk [vmem:[#allocation2 + $0x168] sm:$0xff] %vm362_vm0, %v350_v54 }
  0xcf   : > { %v1947_v60 = vsel %vm1946_vm7, %v1914_v58, %v1431_v40  ;;  %v1816_v10 = vsel %vm7612_vm3, %v1783_v6, %v921_v59  ;;  %v669_v40 = vld [vmem:[#allocation2 + $0xaf] sm:$0xff]  ;;  %458 = vst.msk [vmem:[#allocation2 + $0x170] sm:$0xff] %vm362_vm0, %v351_v55 }
  0xd0   : > { %v1980_v62 = vsel %vm1979_vm8, %v1947_v60, %v1559_v49  ;;  %v5524_v49 = vld [vmem:[#allocation2 + $0xc7] sm:$0xff] }
  0xd2   : > { %930 = vrot.lane.b32.xlu1 %v5364_v25, %s5043_s22 }
  0xd3   : > { %1058 = vrot.lane.b32.xlu2 %v5403_v33, %s5044_s28 }
  0xd4   : > { %v1687_v63 = vpop.permute.xlu1 %1686  ;;  %1570 = vrot.lane.b32.xlu0 %v5457_v61, %s7609_s14 }
  0xd5   : > { %v923_v1 = vpop.permute.xlu2 %922  ;;  %v2013_v2 = vsel %vm7614_vm9, %v1980_v62, %v1687_v63 }
  0xd6   : > { %4740 = vmatmul.msk.f32.vlgmr.msra.gmra.mxu0 %vm2049_vm10, %v2013_v2  ;;  %v1305_v3 = vpop.permute.xlu0 %1304  ;;  %v520_v2 = vld [vmem:[#allocation2 + $0x130] sm:$0xff] }
  0xd7   : > { %v5617_v55 = vld [vmem:[#allocation2 + $0x171] sm:$0xff] }
  0xda   : > { %1314 = vrot.lane.b32.xlu1 %v5396_v31, %s7623_s24 }
  0xdb   : > { %1442 = vrot.lane.b32.xlu2 %v5468_v5, %s5048_s17 }
  0xdc   : > { %v1049_v8 = vpop.permute.xlu1 %1048  ;;  %932 = vrot.lane.b32.xlu0 %v5388_v30, %s5043_s22  ;;  %v341_v30 = vld [vmem:[%s5260_s27 + $0x58] sm:$0xff] }
  0xdd   : > { %v1307_v12 = vpop.permute.xlu2 %1306  ;;  %v1849_v13 = vsel %vm1847_vm4, %v1816_v10, %v1049_v8  ;;  %448 = vst.msk [vmem:[#allocation2 + $0xd0] sm:$0xff] %vm362_vm0, %v341_v30 }
  0xde   : > { %v1689_v14 = vpop.permute.xlu0 %1688  ;;  %v1882_v16 = vsel %vm1880_vm5, %v1849_v13, %v1177_v48 }
  0xdf   : > { %v1915_v19 = vsel %vm1913_vm6, %v1882_v16, %v1305_v3  ;;  %v5548_v3 = vld [vmem:[#allocation2 + $0xc8] sm:$0xff] }
  0xe2   : > { %1698 = vrot.lane.b32.xlu1 %v5481_v15, %s5049_s23 }
  0xe3   : > { %804 = vrot.lane.b32.xlu2 %v5374_v28, %s5042_s21  ;;  %v5497_v28 = vld [vmem:[#allocation2 + $0xb1] sm:$0xff] }
  0xe4   : > { %v1433_v20 = vpop.permute.xlu1 %1432  ;;  %1316 = vrot.lane.b32.xlu0 %v5444_v52, %s7623_s24  ;;  %v5560_v13 = vld [vmem:[#allocation2 + $0xc9] sm:$0xff] }
  0xe5   : > { %v1948_v22 = vsel %vm1946_vm7, %v1915_v19, %v1433_v20  ;;  %v1691_v24 = vpop.permute.xlu2 %1690 }
  0xe6   : > { %v1981_v25 = vsel %vm1979_vm8, %v1948_v22, %v1561_v56  ;;  %v1051_v26 = vpop.permute.xlu0 %1050 }
  0xe7   : > { %v2014_v27 = vsel %vm7614_vm9, %v1981_v25, %v1689_v14  ;;  %v5573_v25 = vld [vmem:[#allocation2 + $0x16f] sm:$0xff] }
  0xe8   : > { %4741 = vmatmul.msk.f32.gmra.mxu0 %vm2049_vm10, %v2014_v27 }
  0xea   : > { %1060 = vrot.lane.b32.xlu1 %v5427_v42, %s5044_s28 }
  0xeb   : > { %1188 = vrot.lane.b32.xlu2 %v5441_v50, %s5047_s16 }
  0xec   : > { %v795_v32 = vpop.permute.xlu1 %794  ;;  %1700 = vrot.lane.b32.xlu0 %v5497_v28, %s5049_s23 }
  0xed   : > { %v1053_v37 = vpop.permute.xlu2 %1052  ;;  %v1784_v39 = vsel %vm362_vm0, %v5286_v7, %v795_v32 }
  0xee   : > { %v1435_v38 = vpop.permute.xlu0 %1434  ;;  %v1817_v43 = vsel %vm7612_vm3, %v1784_v39, %v923_v1 }
  0xef   : > { %v1850_v45 = vsel %vm1847_vm4, %v1817_v43, %v1051_v26 }
  0xf2   : > { %1444 = vrot.lane.b32.xlu1 %v669_v40, %s5048_s17 }
  0xf3   : > { %1572 = vrot.lane.b32.xlu2 %v5513_v41, %s7609_s14 }
  0xf4   : > { %v1179_v44 = vpop.permute.xlu1 %1178  ;;  %1062 = vrot.lane.b32.xlu0 %v5468_v5, %s5044_s28 }
  0xf5   : > { %v1437_v46 = vpop.permute.xlu2 %1436  ;;  %v1883_v7 = vsel %vm1880_vm5, %v1850_v45, %v1179_v44 }
  0xf6   : > { %v797_v47 = vpop.permute.xlu0 %796  ;;  %v1916_v48 = vsel %vm1913_vm6, %v1883_v7, %v1307_v12  ;;  %v5603_v7 = vld [vmem:[#allocation2 + $0xd0] sm:$0xff] }
  0xf7   : > { %v1949_v51 = vsel %vm1946_vm7, %v1916_v48, %v1435_v38  ;;  %v1785_v62 = vsel %vm362_vm0, %v5338_v18, %v797_v47  ;;  %v352_v47 = vld [vmem:[%s5260_s27 + $0xb0] sm:$0xff] }
  0xf8   : > { %459 = vst.msk [vmem:[#allocation2 + $0x188] sm:$0xff] %vm362_vm0, %v352_v47 }
  0xfa   : > { %806 = vrot.lane.b32.xlu1 %v5408_v35, %s5042_s21 }
  0xfb   : > { %934 = vrot.lane.b32.xlu2 %v5396_v31, %s5043_s22  ;;  %v552_v31 = vld [vmem:[#allocation2 + $0x131] sm:$0xff] }
  0xfc   : > { %v1563_v53 = vpop.permute.xlu1 %1562  ;;  %1446 = vrot.lane.b32.xlu0 %v5524_v49, %s5048_s17 }
  0xfd   : > { %v799_v56 = vpop.permute.xlu2 %798  ;;  %v1982_v57 = vsel %vm1979_vm8, %v1949_v51, %v1563_v53 }
  0xfe   : > { %v2015_v58 = vsel %vm7614_vm9, %v1982_v57, %v1691_v24  ;;  %v1181_v59 = vpop.permute.xlu0 %1180  ;;  %v5571_v24 = vld [vmem:[#allocation2 + $0x150] sm:$0xff]  ;;  %v1786_v26 = vsel %vm362_vm0, %v5309_v11, %v799_v56  ;;  %v521_v56 = vld [vmem:[#allocation2 + $0x148] sm:$0xff] }
  0xff   : > { %4742 = vmatmul.msk.f32.gmra.mxu0 %vm2049_vm10, %v2015_v58  ;;  %v353_v58 = vld [vmem:[%s5260_s27 + $0xb8] sm:$0xff] }
 0x100   : > { %460 = vst.msk [vmem:[#allocation2 + $0x190] sm:$0xff] %vm362_vm0, %v353_v58 }
 0x102   : > { %1190 = vrot.lane.b32.xlu1 %v5457_v61, %s5047_s16 }
 0x103   : > { %1318 = vrot.lane.b32.xlu2 %v5481_v15, %s7623_s24 }
 0x104   : > { %v925_v35 = vpop.permute.xlu1 %924  ;;  %956 = vrot.lane.b32.xlu0 %v552_v31, %s5043_s22 }
 0x105   : > { %v1183_v60 = vpop.permute.xlu2 %1182  ;;  %v1818_v1 = vsel %vm7612_vm3, %v1785_v62, %v925_v35  ;;  %v553_v62 = vld [vmem:[#allocation2 + $0x149] sm:$0xff] }
 0x106   : > { %v1565_v63 = vpop.permute.xlu0 %1564  ;;  %v1851_v6 = vsel %vm1847_vm4, %v1818_v1, %v1053_v37  ;;  %v5588_v37 = vld [vmem:[#allocation2 + $0xcf] sm:$0xff] }
 0x107   : > { %v1884_v18 = vsel %vm1880_vm5, %v1851_v6, %v1181_v59  ;;  %v5642_v1 = vld [vmem:[#allocation2 + $0x168] sm:$0xff] }
 0x10a   : > { %828 = vrot.lane.b32.xlu1 %v520_v2, %s5042_s21 }
 0x10b   : > { %1574 = vrot.lane.b32.xlu2 %v5548_v3, %s7609_s14 }
 0x10c   : > { %v1309_v8 = vpop.permute.xlu1 %1308  ;;  %1084 = vrot.lane.b32.xlu0 %v5550_v4, %s5044_s28 }
 0x10d   : > { %v1567_v9 = vpop.permute.xlu2 %1566  ;;  %v1917_v10 = vsel %vm1913_vm6, %v1884_v18, %v1309_v8 }
 0x10e   : > { %v927_v12 = vpop.permute.xlu0 %926  ;;  %v1950_v14 = vsel %vm1946_vm7, %v1917_v10, %v1437_v46  ;;  %v5601_v46 = vld [vmem:[#allocation2 + $0x170] sm:$0xff] }
 0x10f   : > { %v1983_v16 = vsel %vm1979_vm8, %v1950_v14, %v1565_v63  ;;  %v1819_v27 = vsel %vm7612_vm3, %v1786_v26, %v927_v12  ;;  %v585_v12 = vld [vmem:[#allocation2 + $0x167] sm:$0xff] }
 0x110   : > { %v5693_v26 = vld [vmem:[#allocation2 + $0x169] sm:$0xff] }
 0x112   : > { %1702 = vrot.lane.b32.xlu1 %v5560_v13, %s5049_s23 }
 0x113   : > { %808 = vrot.lane.b32.xlu2 %v5441_v50, %s5042_s21 }
 0x114   : > { %v1693_v17 = vpop.permute.xlu1 %1692  ;;  %1064 = vrot.lane.b32.xlu0 %v669_v40, %s5044_s28 }
 0x115   : > { %v929_v19 = vpop.permute.xlu2 %928  ;;  %v2016_v20 = vsel %vm7614_vm9, %v1983_v16, %v1693_v17  ;;  %v342_v17 = vld [vmem:[%s5260_s27 + $0x60] sm:$0xff] }
 0x116   : > { %4743 = vmatmul.msk.f32.gmra.mxu0 %vm2049_vm10, %v2016_v20  ;;  %v1311_v22 = vpop.permute.xlu0 %1310  ;;  %449 = vst.msk [vmem:[#allocation2 + $0xe8] sm:$0xff] %vm362_vm0, %v342_v17 }
 0x11a   : > { %936 = vrot.lane.b32.xlu1 %v5444_v52, %s5043_s22 }
 0x11b   : > { %1212 = vrot.lane.b32.xlu2 %v5571_v24, %s5047_s16 }
 0x11c   : > { %v1055_v50 = vpop.permute.xlu1 %1054  ;;  %1468 = vrot.lane.b32.xlu0 %v5573_v25, %s5048_s17 }
 0x11d   : > { %v1313_v30 = vpop.permute.xlu2 %1312  ;;  %v1852_v32 = vsel %vm1847_vm4, %v1819_v27, %v1055_v50  ;;  %v5696_v50 = vld [vmem:[#allocation2 + $0x188] sm:$0xff] }
 0x11e   : > { %v1695_v34 = vpop.permute.xlu0 %1694  ;;  %v1885_v11 = vsel %vm1880_vm5, %v1852_v32, %v1183_v60  ;;  %v5723_v47 = vld [vmem:[#allocation2 + $0xe7] sm:$0xff] }
 0x11f   : > { %v1918_v52 = vsel %vm1913_vm6, %v1885_v11, %v1311_v22 }
 0x122   : > { %1340 = vrot.lane.b32.xlu1 %v5585_v36, %s7623_s24 }
 0x123   : > { %1192 = vrot.lane.b32.xlu2 %v5513_v41, %s5047_s16 }
 0x124   : > { %v1439_v38 = vpop.permute.xlu1 %1438  ;;  %1448 = vrot.lane.b32.xlu0 %v5588_v37, %s5048_s17 }
 0x125   : > { %v1697_v39 = vpop.permute.xlu2 %1696  ;;  %v1951_v40 = vsel %vm1946_vm7, %v1918_v52, %v1439_v38  ;;  %v5709_v52 = vld [vmem:[#allocation2 + $0x187] sm:$0xff] }
 0x126   : > { %v1984_v43 = vsel %vm1979_vm8, %v1951_v40, %v1567_v9  ;;  %v1057_v44 = vpop.permute.xlu0 %1056 }
 0x127   : > { %v2017_v45 = vsel %vm7614_vm9, %v1984_v43, %v1695_v34 }
 0x128   : > { %4744 = vmatmul.msk.f32.gmra.mxu0 %vm2049_vm10, %v2017_v45 }
 0x12a   : > { %1320 = vrot.lane.b32.xlu1 %v5497_v28, %s7623_s24 }
 0x12b   : > { %1596 = vrot.lane.b32.xlu2 %v5601_v46, %s7609_s14 }
 0x12c   : > { %v801_v48 = vpop.permute.xlu1 %800  ;;  %1576 = vrot.lane.b32.xlu0 %v5603_v7, %s7609_s14 }
 0x12d   : > { %v5613_v51 = vpop.permute.xlu2 %1058  ;;  %v1787_v54 = vsel %vm362_vm0, %v5347_v21, %v801_v48  ;;  %v5725_v48 = vld [vmem:[#allocation2 + $0x189] sm:$0xff] }
 0x12e   : > { %v1441_v53 = vpop.permute.xlu0 %1440  ;;  %v1820_v57 = vsel %vm7612_vm3, %v1787_v54, %v929_v19 }
 0x12f   : > { %v1853_v21 = vsel %vm1847_vm4, %v1820_v57, %v1057_v44  ;;  %v346_v44 = vld [vmem:[%s5260_s27 + $0x80] sm:$0xff] }
 0x130   : > { %453 = vst.msk [vmem:[#allocation2 + $0x128] sm:$0xff] %vm362_vm0, %v346_v44 }
 0x132   : > { %1724 = vrot.lane.b32.xlu1 %v5617_v55, %s5049_s23 }
 0x133   : > { %830 = vrot.lane.b32.xlu2 %v521_v56, %s5042_s21 }
 0x134   : > { %v1185_v59 = vpop.permute.xlu1 %1184  ;;  %810 = vrot.lane.b32.xlu0 %v5457_v61, %s5042_s21  ;;  %v5637_v61 = vld [vmem:[#allocation2 + $0xd1] sm:$0xff] }
 0x135   : > { %v1443_v31 = vpop.permute.xlu2 %1442  ;;  %v1886_v35 = vsel %vm1880_vm5, %v1853_v21, %v1185_v59  ;;  %v5739_v59 = vld [vmem:[#allocation2 + $0xe8] sm:$0xff] }
 0x136   : > { %v803_v60 = vpop.permute.xlu0 %802  ;;  %v1919_v63 = vsel %vm1913_vm6, %v1886_v35, %v1313_v30 }
 0x137   : > { %v1952_v2 = vsel %vm1946_vm7, %v1919_v63, %v1441_v53  ;;  %v1788_v19 = vsel %vm362_vm0, %v5354_v23, %v803_v60 }
 0x13a   : > { %958 = vrot.lane.b32.xlu1 %v553_v62, %s5043_s22 }
 0x13b   : > { %1704 = vrot.lane.b32.xlu2 %v5637_v61, %s5049_s23 }
 0x13c   : > { %v1569_v6 = vpop.permute.xlu1 %1568  ;;  %1214 = vrot.lane.b32.xlu0 %v5642_v1, %s5047_s16 }
 0x13d   : > { %v805_v8 = vpop.permute.xlu2 %804  ;;  %v1985_v18 = vsel %vm1979_vm8, %v1952_v2, %v1569_v6 }
 0x13e   : > { %v2018_v9 = vsel %vm7614_vm9, %v1985_v18, %v1697_v39  ;;  %v1187_v10 = vpop.permute.xlu0 %1186  ;;  %v1789_v53 = vsel %vm362_vm0, %v5381_v29, %v805_v8 }
 0x13f   : > { %4745 = vmatmul.msk.f32.gmra.mxu0 %vm2049_vm10, %v2018_v9 }
 0x142   : > { %1086 = vrot.lane.b32.xlu1 %v585_v12, %s5044_s28 }
 0x143   : > { %938 = vrot.lane.b32.xlu2 %v5481_v15, %s5043_s22  ;;  %v343_v15 = vld [vmem:[%s5260_s27 + $0x68] sm:$0xff] }
 0x144   : > { %v931_v14 = vpop.permute.xlu1 %930  ;;  %1194 = vrot.lane.b32.xlu0 %v5548_v3, %s5047_s16  ;;  %450 = vst.msk [vmem:[#allocation2 + $0xf0] sm:$0xff] %vm362_vm0, %v343_v15 }
 0x145   : > { %v1189_v16 = vpop.permute.xlu2 %1188  ;;  %v1821_v22 = vsel %vm7612_vm3, %v1788_v19, %v931_v14  ;;  %v5776_v14 = vld [vmem:[#allocation2 + $0x18f] sm:$0xff] }
 0x146   : > { %v1571_v20 = vpop.permute.xlu0 %1570  ;;  %v1854_v23 = vsel %vm1847_vm4, %v1821_v22, %v5613_v51 }
 0x147   : > { %v1887_v30 = vsel %vm1880_vm5, %v1854_v23, %v1187_v10 }
 0x14a   : > { %1066 = vrot.lane.b32.xlu1 %v5524_v49, %s5044_s28 }
 0x14b   : > { %1342 = vrot.lane.b32.xlu2 %v5693_v26, %s7623_s24  ;;  %v5727_v51 = vld [vmem:[#allocation2 + $0xe9] sm:$0xff] }
 0x14c   : > { %v1315_v27 = vpop.permute.xlu1 %1314  ;;  %1598 = vrot.lane.b32.xlu0 %v5696_v50, %s7609_s14 }
 0x14d   : > { %v1573_v32 = vpop.permute.xlu2 %1572  ;;  %v1920_v34 = vsel %vm1913_vm6, %v1887_v30, %v1315_v27 }
 0x14e   : > { %v933_v11 = vpop.permute.xlu0 %932  ;;  %v1953_v38 = vsel %vm1946_vm7, %v1920_v34, %v1443_v31  ;;  %v5799_v34 = vld [vmem:[#allocation2 + $0x190] sm:$0xff] }
 0x14f   : > { %v1986_v49 = vsel %vm1979_vm8, %v1953_v38, %v1571_v20  ;;  %v1822_v54 = vsel %vm7612_vm3, %v1789_v53, %v933_v11  ;;  %v354_v20 = vld [vmem:[%s5260_s27 + $0xc0] sm:$0xff] }
 0x150   : > { %461 = vst.msk [vmem:[#allocation2 + $0x1a8] sm:$0xff] %vm362_vm0, %v354_v20 }
 0x152   : > { %1470 = vrot.lane.b32.xlu1 %v5709_v52, %s5048_s17 }
 0x153   : > { %1322 = vrot.lane.b32.xlu2 %v5560_v13, %s7623_s24 }
 0x154   : > { %v1699_v39 = vpop.permute.xlu1 %1698  ;;  %832 = vrot.lane.b32.xlu0 %v5571_v24, %s5042_s21 }
 0x155   : > { %v935_v40 = vpop.permute.xlu2 %934  ;;  %v2019_v43 = vsel %vm7614_vm9, %v1986_v49, %v1699_v39 }
 0x156   : > { %4746 = vmatmul.msk.f32.gmra.mxu0 %vm2049_vm10, %v2019_v43  ;;  %v1317_v45 = vpop.permute.xlu0 %1316 }
 0x15a   : > { %1450 = vrot.lane.b32.xlu1 %v5723_v47, %s5048_s17 }
 0x15b   : > { %1726 = vrot.lane.b32.xlu2 %v5725_v48, %s5049_s23 }
 0x15c   : > { %v1061_v24 = vpop.permute.xlu1 %1060  ;;  %1706 = vrot.lane.b32.xlu0 %v5727_v51, %s5049_s23 }
 0x15d   : > { %v1319_v56 = vpop.permute.xlu2 %1318  ;;  %v1855_v57 = vsel %vm1847_vm4, %v1822_v54, %v1061_v24 }
 0x15e   : > { %v1701_v58 = vpop.permute.xlu0 %1700  ;;  %v1888_v29 = vsel %vm1880_vm5, %v1855_v57, %v1189_v16  ;;  %v5778_v16 = vld [vmem:[#allocation2 + $0x191] sm:$0xff] }
 0x15f   : > { %v1921_v21 = vsel %vm1913_vm6, %v1888_v29, %v1317_v45  ;;  %v344_v29 = vld [vmem:[%s5260_s27 + $0x70] sm:$0xff] }
 0x160   : > { %451 = vst.msk [vmem:[#allocation2 + $0x108] sm:$0xff] %vm362_vm0, %v344_v29 }
 0x162   : > { %1578 = vrot.lane.b32.xlu1 %v5739_v59, %s7609_s14 }
 0x163   : > { %960 = vrot.lane.b32.xlu2 %v5585_v36, %s5043_s22  ;;  %v2167_v36 = vpop.f32.mrf.mxu0 }
 0x164   : > { %v1445_v31 = vpop.permute.xlu1 %1444  ;;  %940 = vrot.lane.b32.xlu0 %v5497_v28, %s5043_s22  ;;  %v2264_v15 = vsel %vm2263_vm11, %v2167_v36, -inf }
 0x165   : > { %v1575_v35 = vpop.permute.xlu2 %1574  ;;  %v1954_v60 = vsel %vm1946_vm7, %v1921_v21, %v1445_v31 }
 0x166   : > { %v1987_v62 = vsel %vm1979_vm8, %v1954_v60, %v1573_v32  ;;  %v1063_v63 = vpop.permute.xlu0 %1062 }
 0x167   : > { %v2020_v2 = vsel %vm7614_vm9, %v1987_v62, %v1701_v58 }
 0x168   : > { %4747 = vmatmul.msk.f32.gmra.mxu0 %vm2049_vm10, %v2020_v2 }
 0x16a   : > { %812 = vrot.lane.b32.xlu1 %v5513_v41, %s5042_s21 }
 0x16b   : > { %1088 = vrot.lane.b32.xlu2 %v5573_v25, %s5044_s28  ;;  %v5765_v18 = vpop.f32.mrf.mxu0 }
 0x16c   : > { %v807_v6 = vpop.permute.xlu1 %806  ;;  %1344 = vrot.lane.b32.xlu0 %v5617_v55, %s7623_s24 }
 0x16d   : > { %v5759_v28 = vpop.permute.xlu2 %808  ;;  %v1790_v41 = vsel %vm362_vm0, %v5403_v33, %v807_v6 }
 0x16e   : > { %v1447_v8 = vpop.permute.xlu0 %1446  ;;  %v1823_v12 = vsel %vm7612_vm3, %v1790_v41, %v935_v40  ;;  %v5802_v40 = vld [vmem:[#allocation2 + $0xef] sm:$0xff] }
 0x16f   : > { %v5821_v41 = vld [vmem:[#allocation2 + $0xf0] sm:$0xff] }
 0x172   : > { %1216 = vrot.lane.b32.xlu1 %v5601_v46, %s5047_s16 }
 0x173   : > { %1068 = vrot.lane.b32.xlu2 %v5588_v37, %s5044_s28  ;;  %v1856_v37 = vsel %vm1847_vm4, %v1823_v12, %v1063_v63  ;;  %v355_v12 = vld [vmem:[%s5260_s27 + $0xc8] sm:$0xff] }
 0x174   : > { %v1191_v25 = vpop.permute.xlu1 %1190  ;;  %1324 = vrot.lane.b32.xlu0 %v5637_v61, %s7623_s24  ;;  %462 = vst.msk [vmem:[#allocation2 + $0x1b0] sm:$0xff] %vm362_vm0, %v355_v12 }
 0x175   : > { %v5771_v9 = vpop.permute.xlu2 %1212  ;;  %v1889_v33 = vsel %vm1880_vm5, %v1856_v37, %v1191_v25 }
 0x176   : > { %v5773_v10 = vpop.permute.xlu0 %956  ;;  %v1922_v27 = vsel %vm1913_vm6, %v1889_v33, %v1319_v56 }
 0x177   : > { %v1955_v43 = vsel %vm1946_vm7, %v1922_v27, %v1447_v8 }
 0x178   : > { %v1988_v60 = vsel %vm1979_vm8, %v1955_v43, %v1575_v35 }
 0x17a   : > { %1196 = vrot.lane.b32.xlu1 %v5603_v7, %s5047_s16 }
 0x17b   : > { %1472 = vrot.lane.b32.xlu2 %v5776_v14, %s5048_s17 }
 0x17c   : > { %v5786_v17 = vpop.permute.xlu1 %828  ;;  %v2173_v19 = vpop.f32.mrf.mxu0  ;;  %1728 = vrot.lane.b32.xlu0 %v5778_v16, %s5049_s23 }
 0x17d   : > { %v5792_v22 = vpop.permute.xlu2 %1192  ;;  %v2265_v23 = vsel %vm2263_vm11, %v2173_v19, -inf }
 0x17e   : > { %v2266_v30 = vmax.f32 %v2264_v15, %v2265_v23  ;;  %v5797_v32 = vpop.permute.xlu0 %1084 }
 0x180   : > { %v2328_v11 = vrot.slane %v2266_v30, 2  ;;  %v2329_v38 = vrot.slane %v2266_v30, 4  ;;  %v2330_v49 = vrot.slane %v2266_v30, 6  ;;  %v2425_v39 = vsel %vm7611_vm12, %v2266_v30, -inf  ;;  %v5835_v30 = vld [vmem:[#allocation2 + $0xf1] sm:$0xff] }
 0x181   : > { %v2426_v44 = vrot.slane %v2425_v39, 4 }
 0x182   : > { %v2432_v45 = vsel %vm7611_vm12, %v2328_v11, -inf  ;;  %v2439_v53 = vsel %vm7611_vm12, %v2329_v38, -inf  ;;  %v2446_v24 = vsel %vm7611_vm12, %v2330_v49, -inf  ;;  %1600 = vrot.lane.b32.xlu1 %v5799_v34, %s7609_s14 }
 0x183   : > { %v2433_v54 = vrot.slane %v2432_v45, 4  ;;  %v2440_v56 = vrot.slane %v2439_v53, 4  ;;  %1452 = vrot.lane.b32.xlu2 %v5802_v40, %s5048_s17  ;;  %v2447_v57 = vrot.slane %v2446_v24, 4  ;;  %v2427_v62 = vmax.f32 %v2425_v39, %v2426_v44  ;;  %v345_v39 = vld [vmem:[%s5260_s27 + $0x78] sm:$0xff] }
 0x184   : > { %v1703_v58 = vpop.permute.xlu1 %1702  ;;  %962 = vrot.lane.b32.xlu0 %v5693_v26, %s5043_s22  ;;  %452 = vst.msk [vmem:[#allocation2 + $0x110] sm:$0xff] %vm362_vm0, %v345_v39 }
 0x185   : > { %v2434_v21 = vmax.f32 %v2432_v45, %v2433_v54  ;;  %v5815_v31 = vpop.permute.xlu2 %1596  ;;  %v2441_v63 = vmax.f32 %v2439_v53, %v2440_v56  ;;  %v2021_v2 = vsel %vm7614_vm9, %v1988_v60, %v1703_v58  ;;  %v2448_v8 = vmax.f32 %v2446_v24, %v2447_v57 }
 0x186   : > { %v1065_v36 = vpop.permute.xlu0 %1064  ;;  %4748 = vmatmul.msk.f32.gmra.mxu0 %vm2049_vm10, %v2021_v2  ;;  %v2428_v26 = vrot.slane %v2427_v62, 2  ;;  %v2267_v45 = vsel %vm2263_vm11, %v5765_v18, -inf }
 0x187   : > { %v2435_v6 = vrot.slane %v2434_v21, 2  ;;  %v2442_v25 = vrot.slane %v2441_v63, 2  ;;  %v2449_v37 = vrot.slane %v2448_v8, 2 }
 0x188   : > { %v2429_v20 = vmax.f32 %v2427_v62, %v2428_v26 }
 0x189   : > { %v2436_v35 = vmax.f32 %v2434_v21, %v2435_v6  ;;  %v2443_v15 = vmax.f32 %v2441_v63, %v2442_v25  ;;  %v2450_v11 = vmax.f32 %v2448_v8, %v2449_v37  ;;  %v5878_v8 = vld [vmem:[#allocation2 + $0x1a7] sm:$0xff] }
 0x18a   : > { %834 = vrot.lane.b32.xlu1 %v5642_v1, %s5042_s21  ;;  %v488_v1 = vld [vmem:[#allocation2 + $0x12f] sm:$0xff]  ;;  %v2430_v49 = vrot.slane %v2429_v20, 1 }
 0x18b   : > { %1580 = vrot.lane.b32.xlu2 %v5821_v41, %s7609_s14  ;;  %v2437_v27 = vrot.slane %v2436_v35, 1  ;;  %v1801_v38 = vsel %vm362_vm0, %v488_v1, %v5786_v17  ;;  %v1791_v17 = vsel %vm362_vm0, %v5427_v42, %v5759_v28  ;;  %v2451_v53 = vrot.slane %v2450_v11, 1 }
 0x18c   : > { %v937_v33 = vpop.permute.xlu1 %936  ;;  %1090 = vrot.lane.b32.xlu0 %v5709_v52, %s5044_s28  ;;  %v2444_v52 = vrot.slane %v2443_v15, 1  ;;  %v1834_v18 = vsel %vm7612_vm3, %v1801_v38, %v5773_v10  ;;  %v2431_v57 = vmax.f32 %v2429_v20, %v2430_v49 }
 0x18d   : > { %v5831_v19 = vpop.permute.xlu2 %830  ;;  %v2438_v43 = vmax.f32 %v2436_v35, %v2437_v27  ;;  %v1824_v42 = vsel %vm7612_vm3, %v1791_v17, %v937_v33  ;;  %v1867_v58 = vsel %vm1847_vm4, %v1834_v18, %v5797_v32  ;;  %v2452_v63 = vmax.f32 %v2450_v11, %v2451_v53 }
 0x18e   : > { %v5833_v23 = vpop.permute.xlu0 %1468  ;;  %v1857_v2 = vsel %vm1847_vm4, %v1824_v42, %v1065_v36  ;;  %v1900_v33 = vsel %vm1880_vm5, %v1867_v58, %v5771_v9 }
 0x192   : > { %1708 = vrot.lane.b32.xlu1 %v5835_v30, %s5049_s23 }
 0x193   : > { %814 = vrot.lane.b32.xlu2 %v5548_v3, %s5042_s21  ;;  %v2176_v44 = vpop.f32.mrf.mxu0  ;;  %v5862_v3 = vld [vmem:[%s7597_s2] ss:$0 sm:$0xff] }
 0x194   : > { %v2268_v24 = vsel %vm2263_vm11, %v2176_v44, -inf  ;;  %v1341_v54 = vpop.permute.xlu1 %1340  ;;  %1070 = vrot.lane.b32.xlu0 %v5723_v47, %s5044_s28  ;;  %v2445_v47 = vmax.f32 %v2443_v15, %v2444_v52  ;;  %v2878_v21 = vadd.f32 %v5862_v3, %v2438_v43  ;;  %v2877_v20 = vadd.f32 %v5862_v3, %v2431_v57 }
 0x195   : > { %v2269_v28 = vmax.f32 %v2267_v45, %v2268_v24  ;;  %v1705_v56 = vpop.permute.xlu2 %1704  ;;  %v2880_v52 = vadd.f32 %v5862_v3, %v2452_v63  ;;  %v1933_v43 = vsel %vm1913_vm6, %v1900_v33, %v1341_v54 }
 0x196   : > { %v1449_v29 = vpop.permute.xlu0 %1448  ;;  %v2879_v15 = vadd.f32 %v5862_v3, %v2445_v47  ;;  %v2942_v1 = vmax.f32 %v2878_v21, 0.0  ;;  %v1966_v63 = vsel %vm1946_vm7, %v1933_v43, %v5833_v23 }
 0x197   : > { %v2331_v60 = vrot.slane %v2269_v28, 2  ;;  %v2332_v10 = vrot.slane %v2269_v28, 4  ;;  %v2333_v62 = vrot.slane %v2269_v28, 6  ;;  %v2453_v6 = vsel %vm7611_vm12, %v2269_v28, -inf }
 0x198   : > { %v2454_v32 = vrot.slane %v2453_v6, 4  ;;  %v3100_v28 = vrot.slane %v2942_v1, 7  ;;  %v1999_v33 = vsel %vm1979_vm8, %v1966_v63, %v5815_v31 }
 0x199   : > { %v2460_v26 = vsel %vm7611_vm12, %v2331_v60, -inf  ;;  %v2467_v25 = vsel %vm7611_vm12, %v2332_v10, -inf  ;;  %v2474_v12 = vsel %vm7611_vm12, %v2333_v62, -inf  ;;  %v2941_v10 = vmax.f32 %v2877_v20, 0.0 }
 0x19a   : > { %v2461_v35 = vrot.slane %v2460_v26, 4  ;;  %v2468_v37 = vrot.slane %v2467_v25, 4  ;;  %v2475_v36 = vrot.slane %v2474_v12, 4  ;;  %942 = vrot.lane.b32.xlu1 %v5560_v13, %s5043_s22  ;;  %v2455_v27 = vmax.f32 %v2453_v6, %v2454_v32 }
 0x19b   : > { %1218 = vrot.lane.b32.xlu2 %v5696_v50, %s5047_s16  ;;  %v1890_v13 = vsel %vm1880_vm5, %v1857_v2, %v5792_v22  ;;  %v2943_v22 = vmax.f32 %v2879_v15, 0.0  ;;  %v5914_v2 = vld [vmem:[#allocation2 + $0x107] sm:$0xff] }
 0x19c   : > { %v2462_v11 = vmax.f32 %v2460_v26, %v2461_v35  ;;  %v2469_v9 = vmax.f32 %v2467_v25, %v2468_v37  ;;  %v2476_v38 = vmax.f32 %v2474_v12, %v2475_v36  ;;  %v1321_v49 = vpop.permute.xlu1 %1320  ;;  %1474 = vrot.lane.b32.xlu0 %v5878_v8, %s5048_s17  ;;  %v2456_v39 = vrot.slane %v2455_v27, 2 }
 0x19d   : > { %v5905_v44 = vpop.permute.xlu2 %938  ;;  %v1923_v45 = vsel %vm1913_vm6, %v1890_v13, %v1321_v49  ;;  %v2944_v26 = vmax.f32 %v2880_v52, 0.0  ;;  %v3102_v25 = vsel %vm7607_vm14, %v3100_v28, %v2941_v10  ;;  %vm3116_vm14 = vcmask 1046534   ;;  %v5948_v10 = vld [vmem:[#allocation2 + $0x1a9] sm:$0xff] }
 0x19e   : > { %v2463_v17 = vrot.slane %v2462_v11, 2  ;;  %v2470_v53 = vrot.slane %v2469_v9, 2  ;;  %v2477_v24 = vrot.slane %v2476_v38, 2  ;;  %v1956_v18 = vsel %vm1946_vm7, %v1923_v45, %v1449_v29  ;;  %v1577_v42 = vpop.permute.xlu0 %1576  ;;  %v5932_v45 = vld [vmem:[#allocation2 + $0x1a8] sm:$0xff] }
 0x19f   : > { %v2457_v57 = vmax.f32 %v2455_v27, %v2456_v39  ;;  %v1989_v47 = vsel %vm1979_vm8, %v1956_v18, %v1577_v42  ;;  %v3106_v49 = vrot.slane %v2944_v26, 5 }
 0x1a0   : > { %v2464_v58 = vmax.f32 %v2462_v11, %v2463_v17  ;;  %v2471_v21 = vmax.f32 %v2469_v9, %v2470_v53  ;;  %v2478_v60 = vmax.f32 %v2476_v38, %v2477_v24  ;;  %v2022_v54 = vsel %vm7614_vm9, %v1989_v47, %v1705_v56  ;;  %v5934_v53 = vld [vmem:[#allocation2 + $0x108] sm:$0xff] }
 0x1a1   : > { %v2458_v62 = vrot.slane %v2457_v57, 1  ;;  %4749 = vmatmul.msk.f32.gmra.mxu0 %vm2049_vm10, %v2022_v54  ;;  %v3103_v56 = vrot.slane %v2943_v22, 6 }
 0x1a2   : > { %v2465_v29 = vrot.slane %v2464_v58, 1  ;;  %v2472_v6 = vrot.slane %v2471_v21, 1  ;;  %v2479_v32 = vrot.slane %v2478_v60, 1  ;;  %1346 = vrot.lane.b32.xlu1 %v5725_v48, %s7623_s24 }
 0x1a3   : > { %v2459_v12 = vmax.f32 %v2457_v57, %v2458_v62  ;;  %1198 = vrot.lane.b32.xlu2 %v5739_v59, %s5047_s16  ;;  %v3105_v13 = vsel %vm7608_vm15, %v3103_v56, %v3102_v25  ;;  %vm7613_vm15 = vcmask 1047559  }
 0x1a4   : > { %v2466_v23 = vmax.f32 %v2464_v58, %v2465_v29  ;;  %v2473_v35 = vmax.f32 %v2471_v21, %v2472_v6  ;;  %v2480_v37 = vmax.f32 %v2478_v60, %v2479_v32  ;;  %v1725_v36 = vpop.permute.xlu1 %1724  ;;  %1454 = vrot.lane.b32.xlu0 %v5914_v2, %s5048_s17  ;;  %v3108_v24 = vsel %vm3107_vm1, %v3106_v49, %v3105_v13  ;;  %v5956_v6 = vld [vmem:[#allocation2 + $0x109] sm:$0xff] }
 0x1a5   : > { %v2881_v20 = vadd.f32 %v5862_v3, %v2459_v12  ;;  %v1343_v15 = vpop.permute.xlu2 %1342  ;;  %v2032_v1 = vsel %vm7614_vm9, %v1999_v33, %v1725_v36  ;;  %v489_v32 = vld [vmem:[#allocation2 + $0x147] sm:$0xff]  ;;  %v6003_v13 = vld [vmem:[#allocation2 + $0x1af] sm:$0xff] }
 0x1a6   : > { %v2882_v27 = vadd.f32 %v5862_v3, %v2466_v23  ;;  %v2883_v11 = vadd.f32 %v5862_v3, %v2473_v35  ;;  %v2884_v9 = vadd.f32 %v5862_v3, %v2480_v37  ;;  %4759 = vmatmul.msk.f32.vlgmr.msra.gmra.mxu2 %vm2049_vm10, %v2032_v1  ;;  %v811_v38 = vpop.permute.xlu0 %810  ;;  %v1802_v26 = vsel %vm362_vm0, %v489_v32, %v5831_v19  ;;  %v356_v49 = vld [vmem:[%s5260_s27 + $0xd0] sm:$0xff]  ;;  %v6033_v32 = vld [vmem:[#allocation2 + $0x111] sm:$0xff] }
 0x1a7   : > { %v2945_v31 = vmax.f32 %v2881_v20, 0.0  ;;  %463 = vst.msk [vmem:[#allocation2 + $0x1c8] sm:$0xff] %vm362_vm0, %v356_v49 }
 0x1a8   : > { %v2946_v52 = vmax.f32 %v2882_v27, 0.0  ;;  %v2947_v39 = vmax.f32 %v2883_v11, 0.0  ;;  %v2948_v43 = vmax.f32 %v2884_v9, 0.0 }
 0x1a9   : > { %v3109_v17 = vrot.slane %v2945_v31, 4 }
 0x1aa   : > { %v3112_v18 = vrot.slane %v2946_v52, 3  ;;  %v3115_v42 = vrot.slane %v2947_v39, 2  ;;  %1326 = vrot.lane.b32.xlu1 %v5727_v51, %s7623_s24  ;;  %v3118_v57 = vrot.slane %v2948_v43, 1 }
 0x1ab   : > { %v3111_v22 = vsel %vm3110_vm2, %v3109_v17, %v3108_v24  ;;  %1602 = vrot.lane.b32.xlu2 %v5932_v45, %s7609_s14 }
 0x1ac   : > { %v3114_v28 = vsel %vm3113_vm13, %v3112_v18, %v3111_v22  ;;  %v959_v47 = vpop.permute.xlu1 %958  ;;  %1582 = vrot.lane.b32.xlu0 %v5934_v53, %s7609_s14 }
 0x1ad   : > { %v3117_v58 = vsel %vm3116_vm14, %v3115_v42, %v3114_v28  ;;  %v1323_v21 = vpop.permute.xlu2 %1322 }
 0x1ae   : > { %v3120_v60 = vsel %vm7613_vm15, %v3118_v57, %v3117_v58  ;;  %v1215_v54 = vpop.permute.xlu0 %1214 }
 0x1af   : > { %3228 = vst.msk [vmem:[#allocation3 + $0x20] sm:$0xff] %vm2263_vm11, %v3120_v60  ;;  %v6026_v60 = vld [vmem:[#allocation2 + $0x10f] sm:$0xff] }
 0x1b2   : > { %1730 = vrot.lane.b32.xlu1 %v5948_v10, %s5049_s23 }
 0x1b3   : > { %836 = vrot.lane.b32.xlu2 %v5601_v46, %s5042_s21  ;;  %v1835_v46 = vsel %vm7612_vm3, %v1802_v26, %v959_v47 }
 0x1b4   : > { %v1087_v62 = vpop.permute.xlu1 %1086  ;;  %816 = vrot.lane.b32.xlu0 %v5603_v7, %s5042_s21 }
 0x1b5   : > { %v1727_v63 = vpop.permute.xlu2 %1726  ;;  %v1868_v56 = vsel %vm1847_vm4, %v1835_v46, %v1087_v62 }
 0x1b6   : > { %v1195_v29 = vpop.permute.xlu0 %1194  ;;  %v1901_v23 = vsel %vm1880_vm5, %v1868_v56, %v1215_v54  ;;  %v6028_v54 = vld [vmem:[#allocation2 + $0x1b1] sm:$0xff] }
 0x1b7   : > { %v1934_v19 = vsel %vm1913_vm6, %v1901_v23, %v1343_v15  ;;  %v5988_v15 = vld [vmem:[#allocation2 + $0x1b0] sm:$0xff] }
 0x1ba   : > { %964 = vrot.lane.b32.xlu1 %v5617_v55, %s5043_s22  ;;  %v2179_v55 = vpop.f32.mrf.mxu0 }
 0x1bb   : > { %1710 = vrot.lane.b32.xlu2 %v5956_v6, %s5049_s23  ;;  %v2270_v52 = vsel %vm2263_vm11, %v2179_v55, -inf }
 0x1bc   : > { %v1067_v25 = vpop.permute.xlu1 %1066  ;;  %1220 = vrot.lane.b32.xlu0 %v5799_v34, %s5047_s16 }
 0x1bd   : > { %v5967_v7 = vpop.permute.xlu2 %960 }
 0x1be   : > { %v1599_v12 = vpop.permute.xlu0 %1598 }
 0x1c2   : > { %1092 = vrot.lane.b32.xlu1 %v5776_v14, %s5044_s28  ;;  %v5992_v1 = vpop.f32.mrf.mxu0 }
 0x1c3   : > { %944 = vrot.lane.b32.xlu2 %v5637_v61, %s5043_s22  ;;  %v1792_v61 = vsel %vm362_vm0, %v5468_v5, %v811_v38 }
 0x1c4   : > { %v1471_v35 = vpop.permute.xlu1 %1470  ;;  %1200 = vrot.lane.b32.xlu0 %v5821_v41, %s5047_s16  ;;  %v1825_v27 = vsel %vm7612_vm3, %v1792_v61, %v5905_v44 }
 0x1c5   : > { %v5978_v37 = vpop.permute.xlu2 %1088  ;;  %v1967_v36 = vsel %vm1946_vm7, %v1934_v19, %v1471_v35  ;;  %v1858_v5 = vsel %vm1847_vm4, %v1825_v27, %v1067_v25  ;;  %v357_v35 = vld [vmem:[%s5260_s27 + $0xd8] sm:$0xff] }
 0x1c6   : > { %v2000_v33 = vsel %vm1979_vm8, %v1967_v36, %v1599_v12  ;;  %v5982_v20 = vpop.permute.xlu0 %832  ;;  %464 = vst.msk [vmem:[#allocation2 + $0x1d0] sm:$0xff] %vm362_vm0, %v357_v35  ;;  %v6049_v27 = vld [vmem:[#allocation2 + $0x110] sm:$0xff] }
 0x1c7   : > { %v2033_v14 = vsel %vm7614_vm9, %v2000_v33, %v1727_v63 }
 0x1c8   : > { %4760 = vmatmul.msk.f32.gmra.mxu2 %vm2049_vm10, %v2033_v14 }
 0x1ca   : > { %1072 = vrot.lane.b32.xlu1 %v5802_v40, %s5044_s28  ;;  %v1891_v40 = vsel %vm1880_vm5, %v1858_v5, %v1195_v29 }
 0x1cb   : > { %1348 = vrot.lane.b32.xlu2 %v5778_v16, %s7623_s24  ;;  %v1924_v31 = vsel %vm1913_vm6, %v1891_v40, %v1323_v21 }
 0x1cc   : > { %v1451_v11 = vpop.permute.xlu1 %1450  ;;  %1604 = vrot.lane.b32.xlu0 %v5988_v15, %s7609_s14 }
 0x1cd   : > { %v6001_v9 = vpop.permute.xlu2 %1068  ;;  %v1957_v39 = vsel %vm1946_vm7, %v1924_v31, %v1451_v11 }
 0x1ce   : > { %v1707_v38 = vpop.permute.xlu0 %1706 }
 0x1d2   : > { %1476 = vrot.lane.b32.xlu1 %v6003_v13, %s5048_s17 }
 0x1d3   : > { %1328 = vrot.lane.b32.xlu2 %v5835_v30, %s7623_s24  ;;  %v2185_v44 = vpop.f32.mrf.mxu0 }
 0x1d4   : > { %v2271_v43 = vsel %vm2263_vm11, %v2185_v44, -inf  ;;  %v1579_v17 = vpop.permute.xlu1 %1578  ;;  %838 = vrot.lane.b32.xlu0 %v5696_v50, %s5042_s21 }
 0x1d5   : > { %v2272_v24 = vmax.f32 %v2270_v52, %v2271_v43  ;;  %v6018_v18 = vpop.permute.xlu2 %1472  ;;  %v1990_v42 = vsel %vm1979_vm8, %v1957_v39, %v1579_v17  ;;  %v3612_v17 = vld [vmem:[%s7598_s3 + $0x88] sm:$0xff] }
 0x1d6   : > { %v2023_v22 = vsel %vm7614_vm9, %v1990_v42, %v1707_v38  ;;  %v6022_v28 = vpop.permute.xlu0 %940  ;;  %3692 = vmatpush.msra.mxu3 %v3612_v17 }
 0x1d7   : > { %v2334_v57 = vrot.slane %v2272_v24, 2  ;;  %v2335_v47 = vrot.slane %v2272_v24, 4  ;;  %v2336_v58 = vrot.slane %v2272_v24, 6  ;;  %v2481_v21 = vsel %vm7611_vm12, %v2272_v24, -inf  ;;  %4750 = vmatmul.msk.f32.gmra.mxu0 %vm2049_vm10, %v2023_v22 }
 0x1d8   : > { %v2482_v50 = vrot.slane %v2481_v21, 4  ;;  %v1803_v24 = vsel %vm362_vm0, %v5550_v4, %v5982_v20 }
 0x1d9   : > { %v2488_v62 = vsel %vm7611_vm12, %v2334_v57, -inf  ;;  %v2495_v63 = vsel %vm7611_vm12, %v2335_v47, -inf  ;;  %v2502_v29 = vsel %vm7611_vm12, %v2336_v58, -inf  ;;  %v1836_v4 = vsel %vm7612_vm3, %v1803_v24, %v5967_v7 }
 0x1da   : > { %v2489_v26 = vrot.slane %v2488_v62, 4  ;;  %v2496_v25 = vrot.slane %v2495_v63, 4  ;;  %v2503_v46 = vrot.slane %v2502_v29, 4  ;;  %1456 = vrot.lane.b32.xlu1 %v6026_v60, %s5048_s17  ;;  %v2483_v56 = vmax.f32 %v2481_v21, %v2482_v50 }
 0x1db   : > { %1732 = vrot.lane.b32.xlu2 %v6028_v54, %s5049_s23 }
 0x1dc   : > { %v2490_v12 = vmax.f32 %v2488_v62, %v2489_v26  ;;  %v2497_v23 = vmax.f32 %v2495_v63, %v2496_v25  ;;  %v6039_v55 = vpop.permute.xlu1 %812  ;;  %1712 = vrot.lane.b32.xlu0 %v6033_v32, %s5049_s23  ;;  %v2504_v14 = vmax.f32 %v2502_v29, %v2503_v46  ;;  %v2484_v11 = vrot.slane %v2483_v56, 2 }
 0x1dd   : > { %v6043_v19 = vpop.permute.xlu2 %1452  ;;  %v1869_v46 = vsel %vm1847_vm4, %v1836_v4, %v5978_v37 }
 0x1de   : > { %v2491_v36 = vrot.slane %v2490_v12, 2  ;;  %v2498_v33 = vrot.slane %v2497_v23, 2  ;;  %v6046_v61 = vpop.permute.xlu0 %1344  ;;  %v2505_v40 = vrot.slane %v2504_v14, 2  ;;  %v2485_v44 = vmax.f32 %v2483_v56, %v2484_v11 }
 0x1e0   : > { %v2492_v5 = vmax.f32 %v2490_v12, %v2491_v36  ;;  %v2499_v38 = vmax.f32 %v2497_v23, %v2498_v33  ;;  %v2506_v42 = vmax.f32 %v2504_v14, %v2505_v40  ;;  %v2486_v58 = vrot.slane %v2485_v44, 1  ;;  %v480_v23 = vld [vmem:[#allocation2 + $0xaf] sm:$0xff] }
 0x1e2   : > { %1584 = vrot.lane.b32.xlu1 %v6049_v27, %s7609_s14  ;;  %v2493_v31 = vrot.slane %v2492_v5, 1  ;;  %v2500_v52 = vrot.slane %v2499_v38, 1  ;;  %v2507_v50 = vrot.slane %v2506_v42, 1  ;;  %v2487_v25 = vmax.f32 %v2485_v44, %v2486_v58  ;;  %s7626_s14 = smov 21  }
 0x1e3   : > { %966 = vrot.lane.b32.xlu2 %v5725_v48, %s5043_s22  ;;  %v3611_v48 = vld [vmem:[%s7598_s3 + $0x80] sm:$0xff] }
 0x1e4   : > { %v1217_v49 = vpop.permute.xlu1 %1216  ;;  %946 = vrot.lane.b32.xlu0 %v5727_v51, %s5043_s22  ;;  %v2273_v51 = vsel %vm2263_vm11, %v5992_v1, -inf  ;;  %v2494_v57 = vmax.f32 %v2492_v5, %v2493_v31  ;;  %3693 = vmatpush.msra.mxu3 %v3611_v48  ;;  %v2501_v20 = vmax.f32 %v2499_v38, %v2500_v52  ;;  %v2508_v40 = vmax.f32 %v2506_v42, %v2507_v50 }
 0x1e5   : > { %v6057_v39 = vpop.permute.xlu2 %1580  ;;  %v2188_v43 = vpop.f32.mrf.mxu0  ;;  %v1902_v37 = vsel %vm1880_vm5, %v1869_v46, %v1217_v49  ;;  %v1793_v52 = vsel %vm362_vm0, %v480_v23, %v6039_v55  ;;  %v2885_v48 = vadd.f32 %v5862_v3, %v2487_v25 }
 0x1e6   : > { %v6065_v22 = vpop.permute.xlu0 %1324  ;;  %v2274_v47 = vsel %vm2263_vm11, %v2188_v43, -inf  ;;  %v2886_v63 = vadd.f32 %v5862_v3, %v2494_v57  ;;  %v1935_v49 = vsel %vm1913_vm6, %v1902_v37, %v6046_v61  ;;  %v2888_v42 = vadd.f32 %v5862_v3, %v2508_v40 }
 0x1e7   : > { %v2275_v21 = vmax.f32 %v2273_v51, %v2274_v47  ;;  %v1826_v55 = vsel %vm7612_vm3, %v1793_v52, %v6022_v28  ;;  %v1968_v61 = vsel %vm1946_vm7, %v1935_v49, %v6018_v18  ;;  %vm7625_vm3 = vcmask 1042434  }
 0x1e8   : > { %v2950_v31 = vmax.f32 %v2886_v63, 0.0  ;;  %v1859_v40 = vsel %vm1847_vm4, %v1826_v55, %v6001_v9 }
 0x1e9   : > { %v2337_v62 = vrot.slane %v2275_v21, 2  ;;  %v2338_v29 = vrot.slane %v2275_v21, 4  ;;  %v2339_v26 = vrot.slane %v2275_v21, 6  ;;  %v2509_v1 = vsel %vm7611_vm12, %v2275_v21, -inf }
 0x1ea   : > { %818 = vrot.lane.b32.xlu1 %v5739_v59, %s5042_s21  ;;  %v2510_v7 = vrot.slane %v2509_v1, 4  ;;  %v2887_v59 = vadd.f32 %v5862_v3, %v2501_v20  ;;  %v3121_v4 = vrot.slane %v2950_v31, 7 }
 0x1eb   : > { %1094 = vrot.lane.b32.xlu2 %v5878_v8, %s5044_s28  ;;  %v2516_v56 = vsel %vm7611_vm12, %v2337_v62, -inf  ;;  %v2523_v36 = vsel %vm7611_vm12, %v2338_v29, -inf  ;;  %v2530_v8 = vsel %vm7611_vm12, %v2339_v26, -inf  ;;  %v2949_v26 = vmax.f32 %v2885_v48, 0.0 }
 0x1ec   : > { %v6084_v12 = vpop.permute.xlu1 %1196  ;;  %1350 = vrot.lane.b32.xlu0 %v5948_v10, %s7623_s24  ;;  %v2517_v35 = vrot.slane %v2516_v56, 4  ;;  %v2511_v14 = vmax.f32 %v2509_v1, %v2510_v7  ;;  %v2524_v11 = vrot.slane %v2523_v36, 4  ;;  %v2531_v5 = vrot.slane %v2530_v8, 4 }
 0x1ed   : > { %v6091_v33 = vpop.permute.xlu2 %814  ;;  %v2951_v51 = vmax.f32 %v2887_v59, 0.0  ;;  %vm7624_vm12 = vcmask 1041409   ;;  %v1892_v48 = vsel %vm1880_vm5, %v1859_v40, %v6084_v12 }
 0x1ee   : > { %v1729_v38 = vpop.permute.xlu0 %1728  ;;  %v2518_v44 = vmax.f32 %v2516_v56, %v2517_v35  ;;  %v2512_v43 = vrot.slane %v2511_v14, 2  ;;  %v2525_v17 = vmax.f32 %v2523_v36, %v2524_v11  ;;  %v2532_v24 = vmax.f32 %v2530_v8, %v2531_v5  ;;  %v6119_v11 = vld [vmem:[#allocation2 + $0x1c7] sm:$0xff] }
 0x1ef   : > { %v3123_v1 = vrot.slane %v2951_v51, 6  ;;  %v2952_v35 = vmax.f32 %v2888_v42, 0.0  ;;  %v3122_v18 = vsel %vm7624_vm12, %v3121_v4, %v2949_v26  ;;  %v1925_v12 = vsel %vm1913_vm6, %v1892_v48, %v6065_v22 }
 0x1f0   : > { %v2519_v57 = vrot.slane %v2518_v44, 2  ;;  %v2513_v47 = vmax.f32 %v2511_v14, %v2512_v43  ;;  %v2526_v58 = vrot.slane %v2525_v17, 2  ;;  %v2533_v21 = vrot.slane %v2532_v24, 2 }
 0x1f1   : > { %v3124_v31 = vsel %vm7625_vm3, %v3123_v1, %v3122_v18  ;;  %vm7627_vm3 = vcmask 48128  }
 0x1f2   : > { %1222 = vrot.lane.b32.xlu1 %v5932_v45, %s5047_s16  ;;  %v2520_v20 = vmax.f32 %v2518_v44, %v2519_v57  ;;  %v2514_v50 = vrot.slane %v2513_v47, 1  ;;  %v2527_v62 = vmax.f32 %v2525_v17, %v2526_v58  ;;  %v2534_v63 = vmax.f32 %v2532_v24, %v2533_v21  ;;  %vm7628_vm12 = vmmov %vm7627_vm3 }
 0x1f3   : > { %1074 = vrot.lane.b32.xlu2 %v5914_v2, %s5044_s28  ;;  %v3125_v17 = vrot.slane %v2952_v35, 5  ;;  %v6176_v35 = vld [vmem:[#allocation2 + $0x167] sm:$0xff] }
 0x1f4   : > { %v1601_v29 = vpop.permute.xlu1 %1600  ;;  %1330 = vrot.lane.b32.xlu0 %v5956_v6, %s7623_s24  ;;  %v2521_v25 = vrot.slane %v2520_v20, 1  ;;  %v2515_v7 = vmax.f32 %v2513_v47, %v2514_v50  ;;  %v2528_v56 = vrot.slane %v2527_v62, 1  ;;  %v2535_v2 = vrot.slane %v2534_v63, 1  ;;  %v6142_v50 = vld [vmem:[#allocation2 + $0x1c8] sm:$0xff] }
 0x1f5   : > { %v6110_v46 = vpop.permute.xlu2 %1218  ;;  %v2001_v28 = vsel %vm1979_vm8, %v1968_v61, %v1601_v29  ;;  %v1958_v29 = vsel %vm1946_vm7, %v1925_v12, %v6043_v19 }
 0x1f6   : > { %v2034_v59 = vsel %vm7614_vm9, %v2001_v28, %v1729_v38  ;;  %v6114_v23 = vpop.permute.xlu0 %962  ;;  %v2522_v36 = vmax.f32 %v2520_v20, %v2521_v25  ;;  %v2529_v8 = vmax.f32 %v2527_v62, %v2528_v56  ;;  %v2536_v37 = vmax.f32 %v2534_v63, %v2535_v2  ;;  %v6124_v38 = vld [vmem:[#allocation2 + $0x1c9] sm:$0xff] }
 0x1f7   : > { %4761 = vmatmul.msk.f32.gmra.mxu2 %vm2049_vm10, %v2034_v59  ;;  %v2889_v14 = vadd.f32 %v5862_v3, %v2515_v7  ;;  %v6145_v63 = vld [vmem:[#allocation2 + $0x127] sm:$0xff]  ;;  %v1991_v26 = vsel %vm1979_vm8, %v1958_v29, %v6057_v39 }
 0x1f8   : > { %v2890_v5 = vadd.f32 %v5862_v3, %v2522_v36  ;;  %v2891_v44 = vadd.f32 %v5862_v3, %v2529_v8  ;;  %v2892_v52 = vadd.f32 %v5862_v3, %v2536_v37  ;;  %v3126_v3 = vsel %vm3107_vm1, %v3125_v17, %v3124_v31  ;;  %v6161_v28 = vld [vmem:[#allocation2 + $0x128] sm:$0xff] }
 0x1f9   : > { %v2953_v43 = vmax.f32 %v2889_v14, 0.0  ;;  %v6172_v2 = vld [vmem:[#allocation2 + $0x129] sm:$0xff] }
 0x1fa   : > { %1202 = vrot.lane.b32.xlu1 %v5934_v53, %s5047_s16  ;;  %v2954_v24 = vmax.f32 %v2890_v5, 0.0  ;;  %v2955_v9 = vmax.f32 %v2891_v44, 0.0  ;;  %v2956_v51 = vmax.f32 %v2892_v52, 0.0  ;;  %v481_v59 = vld [vmem:[#allocation2 + $0xc7] sm:$0xff] }
 0x1fb   : > { %1478 = vrot.lane.b32.xlu2 %v6119_v11, %s5048_s17  ;;  %v3127_v57 = vrot.slane %v2953_v43, 4 }
 0x1fc   : > { %v835_v49 = vpop.permute.xlu1 %834  ;;  %1734 = vrot.lane.b32.xlu0 %v6124_v38, %s5049_s23  ;;  %v3129_v47 = vrot.slane %v2954_v24, 3  ;;  %v3131_v42 = vrot.slane %v2955_v9, 2  ;;  %v3133_v20 = vrot.slane %v2956_v51, 1  ;;  %v6211_v9 = vld [vmem:[#allocation2 + $0x12f] sm:$0xff] }
 0x1fd   : > { %v1199_v58 = vpop.permute.xlu2 %1198  ;;  %v3128_v21 = vsel %vm3110_vm2, %v3127_v57, %v3126_v3  ;;  %v1804_v36 = vsel %vm362_vm0, %v6176_v35, %v835_v49 }
 0x1fe   : > { %v1091_v4 = vpop.permute.xlu0 %1090  ;;  %v3130_v55 = vsel %vm3113_vm13, %v3129_v47, %v3128_v21  ;;  %v1837_v14 = vsel %vm7628_vm12, %v1804_v36, %v6114_v23  ;;  %v6222_v47 = vld [vmem:[#allocation2 + $0x1d0] sm:$0xff]  ;;  %v358_v21 = vld [vmem:[%s5260_s27 + $0xe0] sm:$0xff]  ;;  %vm7629_vm12 = vmmov %vm7627_vm3 }
 0x1ff   : > { %v3132_v62 = vsel %vm3116_vm14, %v3131_v42, %v3130_v55  ;;  %v1870_v40 = vsel %vm1847_vm4, %v1837_v14, %v1091_v4  ;;  %465 = vst.msk [vmem:[#allocation2 + $0x1e8] sm:$0xff] %vm362_vm0, %v358_v21  ;;  %v6234_v55 = vld [vmem:[#allocation2 + $0x1d1] sm:$0xff] }
 0x200   : > { %v3134_v61 = vsel %vm7613_vm15, %v3133_v20, %v3132_v62  ;;  %v1903_v23 = vsel %vm1880_vm5, %v1870_v40, %v6110_v46  ;;  %v359_v20 = vld [vmem:[%s5260_s27 + $0xe8] sm:$0xff] }
 0x201   : > { %3229 = vst.msk [vmem:[#allocation3 + $0x38] sm:$0xff] %vm2263_vm11, %v3134_v61 }
 0x202   : > { %1606 = vrot.lane.b32.xlu1 %v6142_v50, %s7626_s14  ;;  %466 = vst.msk [vmem:[#allocation2 + $0x1f0] sm:$0xff] %vm362_vm0, %v359_v20  ;;  %v493_v20 = vld [vmem:[#allocation2 + $0x187] sm:$0xff] }
 0x203   : > { %1458 = vrot.lane.b32.xlu2 %v6145_v63, %s5048_s17 }
 0x204   : > { %v1709_v22 = vpop.permute.xlu1 %1708  ;;  %968 = vrot.lane.b32.xlu0 %v5778_v16, %s5043_s22 }
 0x205   : > { %v1603_v1 = vpop.permute.xlu2 %1602  ;;  %v2024_v25 = vsel %vm7614_vm9, %v1991_v26, %v1709_v22  ;;  %v6244_v22 = vld [vmem:[#allocation2 + $0x131] sm:$0xff] }
 0x206   : > { %4751 = vmatmul.msk.f32.gmra.mxu0 %vm2049_vm10, %v2024_v25  ;;  %v1071_v19 = vpop.permute.xlu0 %1070  ;;  %v492_v26 = vld [vmem:[#allocation2 + $0x16f] sm:$0xff] }
 0x208   : > { %v3301_v7 = vld [vmem:[#allocation3 + $0x39] sm:$0xff] }
 0x209   : > { %4772 = vmatmul.msk.f32.vlgmr.msra.gmra.mxu3 %vm2263_vm11, %v3301_v7 }
 0x20a   : > { %840 = vrot.lane.b32.xlu1 %v5799_v34, %s5042_s21 }
 0x20b   : > { %1586 = vrot.lane.b32.xlu2 %v6161_v28, %s7626_s14 }
 0x20c   : > { %v943_v39 = vpop.permute.xlu1 %942  ;;  %1096 = vrot.lane.b32.xlu0 %v6003_v13, %s5044_s28  ;;  %v1794_v13 = vsel %vm362_vm0, %v481_v59, %v6091_v33 }
 0x20d   : > { %v6170_v16 = vpop.permute.xlu2 %836  ;;  %v1827_v8 = vsel %vm7627_vm3, %v1794_v13, %v943_v39 }
 0x20e   : > { %v1475_v56 = vpop.permute.xlu0 %1474  ;;  %v1860_v5 = vsel %vm1847_vm4, %v1827_v8, %v1071_v19  ;;  %v2191_v8 = vpop.f32.mrf.mxu0 }
 0x212   : > { %1714 = vrot.lane.b32.xlu1 %v6172_v2, %s5049_s23 }
 0x213   : > { %820 = vrot.lane.b32.xlu2 %v5821_v41, %s5042_s21  ;;  %v6190_v41 = vld [vmem:[#allocation2 + $0x1cf] sm:$0xff] }
 0x214   : > { %v1347_v34 = vpop.permute.xlu1 %1346  ;;  %1076 = vrot.lane.b32.xlu0 %v6026_v60, %s5044_s28  ;;  %v1893_v60 = vsel %vm1880_vm5, %v1860_v5, %v1199_v58  ;;  %v6224_v58 = vld [vmem:[#allocation2 + $0x130] sm:$0xff] }
 0x215   : > { %v1711_v18 = vpop.permute.xlu2 %1710  ;;  %v1936_v52 = vsel %vm1913_vm6, %v1903_v23, %v1347_v34  ;;  %v482_v34 = vld [vmem:[#allocation2 + $0xcf] sm:$0xff] }
 0x216   : > { %v1455_v37 = vpop.permute.xlu0 %1454  ;;  %v1969_v48 = vsel %vm1946_vm7, %v1936_v52, %v1475_v56 }
 0x217   : > { %v2002_v51 = vsel %vm1979_vm8, %v1969_v48, %v1603_v1  ;;  %v6302_v48 = vld [vmem:[#allocation2 + $0x147] sm:$0xff] }
 0x21a   : > { %948 = vrot.lane.b32.xlu1 %v5835_v30, %s5043_s22 }
 0x21b   : > { %1224 = vrot.lane.b32.xlu2 %v5988_v15, %s5047_s16 }
 0x21c   : > { %v1327_v33 = vpop.permute.xlu1 %1326  ;;  %1480 = vrot.lane.b32.xlu0 %v6190_v41, %s5048_s17 }
 0x21d   : > { %v6202_v31 = vpop.permute.xlu2 %944  ;;  %v1926_v44 = vsel %vm1913_vm6, %v1893_v60, %v1327_v33  ;;  %v6286_v33 = vld [vmem:[#allocation2 + $0x1e7] sm:$0xff] }
 0x21e   : > { %v1959_v30 = vsel %vm1946_vm7, %v1926_v44, %v1455_v37  ;;  %v1583_v43 = vpop.permute.xlu0 %1582 }
 0x21f   : > { %v1992_v17 = vsel %vm1979_vm8, %v1959_v30, %v1583_v43 }
 0x220   : > { %v2025_v24 = vsel %vm7614_vm9, %v1992_v17, %v1711_v18 }
 0x221   : > { %4752 = vmatmul.msk.f32.gmra.mxu0 %vm2049_vm10, %v2025_v24 }
 0x222   : > { %1352 = vrot.lane.b32.xlu1 %v6028_v54, %s7623_s24 }
 0x223   : > { %1204 = vrot.lane.b32.xlu2 %v6049_v27, %s5047_s16 }
 0x224   : > { %v1731_v46 = vpop.permute.xlu1 %1730  ;;  %1460 = vrot.lane.b32.xlu0 %v6211_v9, %s5048_s17 }
 0x225   : > { %v1349_v57 = vpop.permute.xlu2 %1348  ;;  %v2035_v49 = vsel %vm7614_vm9, %v2002_v51, %v1731_v46  ;;  %v6304_v46 = vld [vmem:[#allocation2 + $0x1e9] sm:$0xff] }
 0x226   : > { %4762 = vmatmul.msk.f32.gmra.mxu2 %vm2049_vm10, %v2035_v49  ;;  %v817_v3 = vpop.permute.xlu0 %816  ;;  %v6306_v51 = vld [vmem:[#allocation2 + $0x149] sm:$0xff] }
 0x22a   : > { %1332 = vrot.lane.b32.xlu1 %v6033_v32, %s7623_s24 }
 0x22b   : > { %1608 = vrot.lane.b32.xlu2 %v6222_v47, %s7626_s14 }
 0x22c   : > { %v965_v42 = vpop.permute.xlu1 %964  ;;  %1588 = vrot.lane.b32.xlu0 %v6224_v58, %s7626_s14 }
 0x22d   : > { %v1329_v12 = vpop.permute.xlu2 %1328 }
 0x22e   : > { %v1221_v4 = vpop.permute.xlu0 %1220 }
 0x232   : > { %1736 = vrot.lane.b32.xlu1 %v6234_v55, %s5049_s23 }
 0x233   : > { %842 = vrot.lane.b32.xlu2 %v5932_v45, %s5042_s21  ;;  %v1805_v45 = vsel %vm362_vm0, %v492_v26, %v6170_v16 }
 0x234   : > { %v1093_v62 = vpop.permute.xlu1 %1092  ;;  %822 = vrot.lane.b32.xlu0 %v5934_v53, %s5042_s21  ;;  %v1838_v53 = vsel %vm7627_vm3, %v1805_v45, %v965_v42  ;;  %v6317_v42 = vld [vmem:[#allocation2 + $0x148] sm:$0xff] }
 0x235   : > { %v1733_v61 = vpop.permute.xlu2 %1732  ;;  %v1871_v19 = vsel %vm1847_vm4, %v1838_v53, %v1093_v62 }
 0x236   : > { %v1201_v29 = vpop.permute.xlu0 %1200  ;;  %v1904_v39 = vsel %vm1880_vm5, %v1871_v19, %v1221_v4 }
 0x23a   : > { %970 = vrot.lane.b32.xlu1 %v5948_v10, %s5043_s22  ;;  %v1937_v10 = vsel %vm1913_vm6, %v1904_v39, %v1349_v57 }
 0x23b   : > { %1716 = vrot.lane.b32.xlu2 %v6244_v22, %s5049_s23 }
 0x23c   : > { %v1073_v1 = vpop.permute.xlu1 %1072  ;;  %1226 = vrot.lane.b32.xlu0 %v6142_v50, %s5047_s16 }
 0x23d   : > { %v6255_v25 = vpop.permute.xlu2 %966 }
 0x23e   : > { %v1605_v7 = vpop.permute.xlu0 %1604 }
 0x242   : > { %1098 = vrot.lane.b32.xlu1 %v6119_v11, %s5044_s28  ;;  %v6273_v11 = vld [vmem:[#allocation2 + $0x1e8] sm:$0xff] }
 0x243   : > { %950 = vrot.lane.b32.xlu2 %v5956_v6, %s5043_s22  ;;  %v1795_v6 = vsel %vm362_vm0, %v482_v34, %v817_v3 }
 0x244   : > { %v1477_v16 = vpop.permute.xlu1 %1476  ;;  %1206 = vrot.lane.b32.xlu0 %v6161_v28, %s5047_s16  ;;  %v1828_v37 = vsel %vm7629_vm12, %v1795_v6, %v6202_v31  ;;  %v6294_v31 = vpop.f32.mrf.mxu0  ;;  %vm7630_vm12 = vcmask 123904  }
 0x245   : > { %v6266_v56 = vpop.permute.xlu2 %1094  ;;  %v1970_v59 = vsel %vm1946_vm7, %v1937_v10, %v1477_v16  ;;  %v1861_v5 = vsel %vm1847_vm4, %v1828_v37, %v1073_v1  ;;  %vm7631_vm15 = vmmov %vm7630_vm12 }
 0x246   : > { %v2003_v13 = vsel %vm1979_vm8, %v1970_v59, %v1605_v7  ;;  %v839_v18 = vpop.permute.xlu0 %838 }
 0x247   : > { %v2036_v36 = vsel %vm7614_vm9, %v2003_v13, %v1733_v61  ;;  %v1806_v45 = vsel %vm362_vm0, %v493_v20, %v839_v18  ;;  %v483_v13 = vld [vmem:[#allocation2 + $0xe7] sm:$0xff] }
 0x248   : > { %4763 = vmatmul.msk.f32.gmra.mxu2 %vm2049_vm10, %v2036_v36  ;;  %v1839_v53 = vsel %vm7627_vm3, %v1806_v45, %v6255_v25  ;;  %vm7632_vm3 = vmmov %vm7630_vm12 }
 0x249   : > { %v1872_v39 = vsel %vm1847_vm4, %v1839_v53, %v6266_v56  ;;  %v6385_v53 = vld [vmem:[#allocation2 + $0x1f0] sm:$0xff] }
 0x24a   : > { %1078 = vrot.lane.b32.xlu1 %v6145_v63, %s5044_s28  ;;  %v1894_v63 = vsel %vm1880_vm5, %v1861_v5, %v1201_v29 }
 0x24b   : > { %1354 = vrot.lane.b32.xlu2 %v6124_v38, %s7623_s24  ;;  %v1927_v23 = vsel %vm1913_vm6, %v1894_v63, %v1329_v12  ;;  %v2276_v12 = vsel %vm2263_vm11, %v2191_v8, -inf }
 0x24c   : > { %v1457_v14 = vpop.permute.xlu1 %1456  ;;  %1610 = vrot.lane.b32.xlu0 %v6273_v11, %s7626_s14 }
 0x24d   : > { %v6284_v40 = vpop.permute.xlu2 %1074  ;;  %v1960_v44 = vsel %vm1946_vm7, %v1927_v23, %v1457_v14 }
 0x24e   : > { %v1713_v60 = vpop.permute.xlu0 %1712 }
 0x252   : > { %1482 = vrot.lane.b32.xlu1 %v6286_v33, %s5048_s17 }
 0x253   : > { %1334 = vrot.lane.b32.xlu2 %v6172_v2, %s7623_s24 }
 0x254   : > { %v1585_v52 = vpop.permute.xlu1 %1584  ;;  %844 = vrot.lane.b32.xlu0 %v5988_v15, %s5042_s21  ;;  %v2197_v15 = vpop.f32.mrf.mxu0 }
 0x255   : > { %v1479_v30 = vpop.permute.xlu2 %1478  ;;  %v1993_v43 = vsel %vm1979_vm8, %v1960_v44, %v1585_v52  ;;  %v2277_v21 = vsel %vm2263_vm11, %v2197_v15, -inf  ;;  %v6365_v15 = vld [vmem:[#allocation2 + $0x1f1] sm:$0xff] }
 0x256   : > { %v2026_v17 = vsel %vm7614_vm9, %v1993_v43, %v1713_v60  ;;  %v947_v24 = vpop.permute.xlu0 %946  ;;  %v2278_v4 = vmax.f32 %v2276_v12, %v2277_v21 }
 0x257   : > { %4753 = vmatmul.msk.f32.gmra.mxu0 %vm2049_vm10, %v2026_v17  ;;  %v6363_v17 = vld [vmem:[#allocation2 + $0x1ef] sm:$0xff] }
 0x258   : > { %v2340_v29 = vrot.slane %v2278_v4, 2  ;;  %v2341_v1 = vrot.slane %v2278_v4, 4  ;;  %v2342_v59 = vrot.slane %v2278_v4, 6 }
 0x25a   : > { %1462 = vrot.lane.b32.xlu1 %v6302_v48, %s5048_s17  ;;  %v2544_v19 = vsel %vm7630_vm12, %v2340_v29, -inf  ;;  %v2551_v7 = vsel %vm7631_vm15, %v2341_v1, -inf  ;;  %vm7633_vm15 = vmmov %vm7632_vm3  ;;  %vm7634_vm12 = vcmask 48128   ;;  %v360_v29 = vld [vmem:[%s5260_s27 + $0xf0] sm:$0xff] }
 0x25b   : > { %1738 = vrot.lane.b32.xlu2 %v6304_v46, %s5049_s23  ;;  %v2552_v34 = vrot.slane %v2551_v7, 4  ;;  %v2558_v6 = vsel %vm7633_vm15, %v2342_v59, -inf  ;;  %467 = vst.msk [vmem:[#allocation2 + $0x208] sm:$0xff] %vm362_vm0, %v360_v29  ;;  %vm7635_vm15 = vmmov %vm7632_vm3 }
 0x25c   : > { %v819_v57 = vpop.permute.xlu1 %818  ;;  %1718 = vrot.lane.b32.xlu0 %v6306_v51, %s5049_s23  ;;  %v2559_v44 = vrot.slane %v2558_v6, 4 }
 0x25d   : > { %v6314_v49 = vpop.permute.xlu2 %1458  ;;  %v2553_v56 = vmax.f32 %v2551_v7, %v2552_v34  ;;  %v1796_v8 = vsel %vm362_vm0, %v483_v13, %v819_v57 }
 0x25e   : > { %v1351_v3 = vpop.permute.xlu0 %1350 }
 0x262   : > { %1590 = vrot.lane.b32.xlu1 %v6317_v42, %s7626_s14 }
 0x263   : > { %972 = vrot.lane.b32.xlu2 %v6028_v54, %s5043_s22 }
 0x264   : > { %v1223_v62 = vpop.permute.xlu1 %1222  ;;  %952 = vrot.lane.b32.xlu0 %v6033_v32, %s5043_s22  ;;  %v2545_v32 = vrot.slane %v2544_v19, 4 }
 0x265   : > { %v6326_v61 = vpop.permute.xlu2 %1586  ;;  %v1905_v25 = vsel %vm1880_vm5, %v1872_v39, %v1223_v62 }
 0x266   : > { %v1331_v26 = vpop.permute.xlu0 %1330  ;;  %v1938_v18 = vsel %vm1913_vm6, %v1905_v25, %v1351_v3  ;;  %v2560_v3 = vmax.f32 %v2558_v6, %v2559_v44 }
 0x267   : > { %v1971_v37 = vsel %vm1946_vm7, %v1938_v18, %v1479_v30  ;;  %v2554_v30 = vrot.slane %v2553_v56, 2 }
 0x26a   : > { %824 = vrot.lane.b32.xlu1 %v6049_v27, %s5042_s21  ;;  %v2537_v27 = vsel %vm7632_vm3, %v2278_v4, -inf }
 0x26b   : > { %1100 = vrot.lane.b32.xlu2 %v6190_v41, %s5044_s28  ;;  %v2546_v41 = vmax.f32 %v2544_v19, %v2545_v32  ;;  %v2538_v36 = vrot.slane %v2537_v27, 4 }
 0x26c   : > { %v1203_v54 = vpop.permute.xlu1 %1202  ;;  %1356 = vrot.lane.b32.xlu0 %v6234_v55, %s7623_s24 }
 0x26d   : > { %v6341_v10 = vpop.permute.xlu2 %820  ;;  %v2547_v5 = vrot.slane %v2546_v41, 2  ;;  %v2539_v23 = vmax.f32 %v2537_v27, %v2538_v36 }
 0x26e   : > { %v1735_v16 = vpop.permute.xlu0 %1734 }
 0x26f   : > { %v2540_v57 = vrot.slane %v2539_v23, 2 }
 0x271   : > { %v2541_v45 = vmax.f32 %v2539_v23, %v2540_v57  ;;  %v711_v23 = vld [vmem:[#allocation2 + $0x150] sm:$0xff] }
 0x272   : > { %1228 = vrot.lane.b32.xlu1 %v6222_v47, %s5047_s16 }
 0x273   : > { %1080 = vrot.lane.b32.xlu2 %v6211_v9, %s5044_s28  ;;  %v1829_v9 = vsel %vm7634_vm12, %v1796_v8, %v947_v24  ;;  %v2555_v24 = vmax.f32 %v2553_v56, %v2554_v30  ;;  %v2542_v39 = vrot.slane %v2541_v45, 1  ;;  %vm7636_vm12 = vmmov %vm7632_vm3 }
 0x274   : > { %v1607_v14 = vpop.permute.xlu1 %1606  ;;  %1336 = vrot.lane.b32.xlu0 %v6244_v22, %s7623_s24  ;;  %v2548_v22 = vmax.f32 %v2546_v41, %v2547_v5  ;;  %v1862_v21 = vsel %vm1847_vm4, %v1829_v9, %v6284_v40  ;;  %v2561_v40 = vrot.slane %v2560_v3, 2 }
 0x275   : > { %v6355_v60 = vpop.permute.xlu2 %1224  ;;  %v2004_v63 = vsel %vm1979_vm8, %v1971_v37, %v1607_v14  ;;  %v1895_v12 = vsel %vm1880_vm5, %v1862_v21, %v1203_v54  ;;  %v2556_v19 = vrot.slane %v2555_v24, 1  ;;  %v679_v54 = vld [vmem:[#allocation2 + $0x14f] sm:$0xff]  ;;  %v2543_v6 = vmax.f32 %v2541_v45, %v2542_v39 }
 0x276   : > { %v2037_v52 = vsel %vm7614_vm9, %v2004_v63, %v1735_v16  ;;  %v6359_v43 = vpop.permute.xlu0 %968  ;;  %v2549_v20 = vrot.slane %v2548_v22, 1  ;;  %v1928_v1 = vsel %vm1913_vm6, %v1895_v12, %v1331_v26  ;;  %v2562_v25 = vmax.f32 %v2560_v3, %v2561_v40 }
 0x277   : > { %4764 = vmatmul.msk.f32.gmra.mxu2 %vm2049_vm10, %v2037_v52  ;;  %v1961_v7 = vsel %vm1946_vm7, %v1928_v1, %v6314_v49  ;;  %v2279_v16 = vsel %vm2263_vm11, %v6294_v31, -inf  ;;  %v2557_v59 = vmax.f32 %v2555_v24, %v2556_v19  ;;  %v6402_v49 = vld [vmem:[%s7597_s2] ss:$0 sm:$0xff] }
 0x278   : > { %v2550_v32 = vmax.f32 %v2548_v22, %v2549_v20  ;;  %v1994_v41 = vsel %vm1979_vm8, %v1961_v7, %v6326_v61  ;;  %v2563_v56 = vrot.slane %v2562_v25, 1  ;;  %v2893_v24 = vadd.f32 %v6402_v49, %v2543_v6  ;;  %v361_v20 = vld [vmem:[%s5260_s27 + $0xf8] sm:$0xff]  ;;  %v6429_v6 = vpop.f32.mrf.mxu2  ;;  %s7619_s27 = smov 32  }
 0x279   : > { %v2895_v5 = vadd.f32 %v6402_v49, %v2557_v59  ;;  %468 = vst.msk [vmem:[#allocation2 + $0x210] sm:$0xff] %vm362_vm0, %v361_v20 }
 0x27a   : > { %1208 = vrot.lane.b32.xlu1 %v6224_v58, %s5047_s16  ;;  %v2894_v13 = vadd.f32 %v6402_v49, %v2550_v32  ;;  %v2564_v12 = vmax.f32 %v2562_v25, %v2563_v56 }
 0x27b   : > { %1484 = vrot.lane.b32.xlu2 %v6363_v17, %s5048_s17 }
 0x27c   : > { %v6374_v4 = vpop.permute.xlu1 %840  ;;  %1740 = vrot.lane.b32.xlu0 %v6365_v15, %s5049_s23  ;;  %v2958_v44 = vmax.f32 %v2894_v13, 0.0  ;;  %v2896_v59 = vadd.f32 %v6402_v49, %v2564_v12 }
 0x27d   : > { %v6378_v62 = vpop.permute.xlu2 %1204 }
 0x27e   : > { %v6382_v58 = vpop.permute.xlu0 %1096  ;;  %v3135_v32 = vrot.slane %v2958_v44, 7 }
 0x282   : > { %1612 = vrot.lane.b32.xlu1 %v6385_v53, %s7626_s14 }
 0x283   : > { %1464 = vrot.lane.b32.xlu2 %v679_v54, %s5048_s17  ;;  %v2200_v26 = vpop.f32.mrf.mxu0  ;;  %v2959_v54 = vmax.f32 %v2895_v5, 0.0 }
 0x284   : > { %v2280_v27 = vsel %vm2263_vm11, %v2200_v26, -inf  ;;  %v1715_v34 = vpop.permute.xlu1 %1714  ;;  %974 = vrot.lane.b32.xlu0 %v6124_v38, %s5043_s22 }
 0x285   : > { %v2281_v18 = vmax.f32 %v2279_v16, %v2280_v27  ;;  %v6405_v36 = vpop.permute.xlu2 %1608  ;;  %v2027_v31 = vsel %vm7614_vm9, %v1994_v41, %v1715_v34  ;;  %vm7637_vm9 = vmmov %vm7632_vm3  ;;  %v2957_v27 = vmax.f32 %v2893_v24, 0.0  ;;  %v743_v34 = vld [vmem:[#allocation2 + $0x151] sm:$0xff] }
 0x286   : > { %4754 = vmatmul.msk.f32.gmra.mxu0 %vm2049_vm10, %v2027_v31  ;;  %v6409_v61 = vpop.permute.xlu0 %1076  ;;  %v484_v41 = vld [vmem:[#allocation2 + $0xef] sm:$0xff] }
 0x287   : > { %v2343_v8 = vrot.slane %v2281_v18, 2  ;;  %v2344_v38 = vrot.slane %v2281_v18, 4  ;;  %v2345_v37 = vrot.slane %v2281_v18, 6  ;;  %v2565_v14 = vsel %vm7632_vm3, %v2281_v18, -inf }
 0x288   : > { %v2566_v63 = vrot.slane %v2565_v14, 4  ;;  %v1797_v44 = vsel %vm362_vm0, %v484_v41, %v6341_v10  ;;  %vm7639_vm3 = vcmask 1042434  }
 0x289   : > { %v2572_v52 = vsel %vm7635_vm15, %v2343_v8, -inf  ;;  %v2579_v9 = vsel %vm7636_vm12, %v2344_v38, -inf  ;;  %v2586_v30 = vsel %vm7637_vm9, %v2345_v37, -inf  ;;  %vm7638_vm9 = vcmask 1041409   ;;  %v494_v38 = vld [vmem:[#allocation2 + $0x18f] sm:$0xff] }
 0x28a   : > { %v2567_v22 = vmax.f32 %v2565_v14, %v2566_v63  ;;  %v2573_v57 = vrot.slane %v2572_v52, 4  ;;  %v2580_v3 = vrot.slane %v2579_v9, 4  ;;  %v2587_v21 = vrot.slane %v2586_v30, 4  ;;  %846 = vrot.lane.b32.xlu1 %v6142_v50, %s5042_s21 }
 0x28b   : > { %1592 = vrot.lane.b32.xlu2 %v711_v23, %s7626_s14  ;;  %v3136_v56 = vsel %vm7638_vm9, %v3135_v32, %v2957_v27  ;;  %v3137_v8 = vrot.slane %v2959_v54, 6  ;;  %v2960_v23 = vmax.f32 %v2896_v59, 0.0  ;;  %vm7640_vm15 = vcmask 48128  }
 0x28c   : > { %v2568_v29 = vrot.slane %v2567_v22, 2  ;;  %v2574_v45 = vmax.f32 %v2572_v52, %v2573_v57  ;;  %v2581_v40 = vmax.f32 %v2579_v9, %v2580_v3  ;;  %v2588_v1 = vmax.f32 %v2586_v30, %v2587_v21  ;;  %v949_v19 = vpop.permute.xlu1 %948  ;;  %1102 = vrot.lane.b32.xlu0 %v6286_v33, %s5044_s28  ;;  %vm7641_vm12 = vmmov %vm7640_vm15 }
 0x28d   : > { %v6424_v7 = vpop.permute.xlu2 %842  ;;  %v3138_v3 = vsel %vm7639_vm3, %v3137_v8, %v3136_v56  ;;  %v1807_v21 = vsel %vm362_vm0, %v494_v38, %v6374_v4  ;;  %v1830_v12 = vsel %vm7640_vm15, %v1797_v44, %v949_v19  ;;  %vm7642_vm9 = vcmask 1047559  }
 0x28e   : > { %v2569_v50 = vmax.f32 %v2567_v22, %v2568_v29  ;;  %v2575_v39 = vrot.slane %v2574_v45, 2  ;;  %v2582_v25 = vrot.slane %v2581_v40, 2  ;;  %v2589_v26 = vrot.slane %v2588_v1, 2  ;;  %v6426_v16 = vpop.permute.xlu0 %1480 }
 0x28f   : > { %v1840_v4 = vsel %vm7641_vm12, %v1807_v21, %v6359_v43  ;;  %v1863_v19 = vsel %vm1847_vm4, %v1830_v12, %v6409_v61  ;;  %vm7643_vm3 = vcmask 195584   ;;  %vm7645_vm12 = vcmask 123904  }
 0x290   : > { %v2570_v13 = vrot.slane %v2569_v50, 1  ;;  %v2576_v18 = vmax.f32 %v2574_v45, %v2575_v39  ;;  %v2583_v33 = vmax.f32 %v2581_v40, %v2582_v25  ;;  %v2590_v31 = vmax.f32 %v2588_v1, %v2589_v26  ;;  %v6452_v25 = vld [vmem:[#allocation2 + $0x207] sm:$0xff]  ;;  %vm7644_vm15 = vmmov %vm7643_vm3 }
 0x291   : > { %v3139_v40 = vrot.slane %v2960_v23, 5  ;;  %v1896_v61 = vsel %vm1880_vm5, %v1863_v19, %v6378_v62 }
 0x292   : > { %v2571_v37 = vmax.f32 %v2569_v50, %v2570_v13  ;;  %v2577_v14 = vrot.slane %v2576_v18, 1  ;;  %v2584_v5 = vrot.slane %v2583_v33, 1  ;;  %v2591_v63 = vrot.slane %v2590_v31, 1  ;;  %1720 = vrot.lane.b32.xlu1 %v743_v34, %s5049_s23  ;;  %v2227_v50 = vpop.f32.mrf.mxu2 }
 0x293   : > { %826 = vrot.lane.b32.xlu2 %v6161_v28, %s5042_s21  ;;  %v3140_v39 = vsel %vm3107_vm1, %v3139_v40, %v3138_v3  ;;  %v1873_v34 = vsel %vm1847_vm4, %v1840_v4, %v6382_v58  ;;  %v6525_v4 = vld [vmem:[#allocation2 + $0x20f] sm:$0xff] }
 0x294   : > { %v2578_v52 = vmax.f32 %v2576_v18, %v2577_v14  ;;  %v2585_v9 = vmax.f32 %v2583_v33, %v2584_v5  ;;  %v2592_v30 = vmax.f32 %v2590_v31, %v2591_v63  ;;  %v2897_v22 = vadd.f32 %v6402_v49, %v2571_v37  ;;  %v1353_v57 = vpop.permute.xlu1 %1352  ;;  %1082 = vrot.lane.b32.xlu0 %v6302_v48, %s5044_s28 }
 0x295   : > { %v1717_v10 = vpop.permute.xlu2 %1716  ;;  %v1906_v58 = vsel %vm1880_vm5, %v1873_v34, %v6355_v60 }
 0x296   : > { %v2898_v24 = vadd.f32 %v6402_v49, %v2578_v52  ;;  %v2899_v28 = vadd.f32 %v6402_v49, %v2585_v9  ;;  %v2900_v20 = vadd.f32 %v6402_v49, %v2592_v30  ;;  %v2961_v29 = vmax.f32 %v2897_v22, 0.0  ;;  %v1461_v45 = vpop.permute.xlu0 %1460 }
 0x297   : > { %v1939_v56 = vsel %vm1913_vm6, %v1906_v58, %v1353_v57  ;;  %v2294_v30 = vsel %vm2263_vm11, %v2227_v50, -inf  ;;  %v744_v50 = vld [vmem:[#allocation2 + $0x169] sm:$0xff] }
 0x298   : > { %v2962_v1 = vmax.f32 %v2898_v24, 0.0  ;;  %v2963_v54 = vmax.f32 %v2899_v28, 0.0  ;;  %v2964_v48 = vmax.f32 %v2900_v20, 0.0  ;;  %v3141_v32 = vrot.slane %v2961_v29, 4 }
 0x299   : > { %v1972_v60 = vsel %vm1946_vm7, %v1939_v56, %v6426_v16 }
 0x29a   : > { %v3142_v26 = vsel %vm3110_vm2, %v3141_v32, %v3140_v39  ;;  %v3143_v59 = vrot.slane %v2962_v1, 3  ;;  %v3145_v27 = vrot.slane %v2963_v54, 2  ;;  %954 = vrot.lane.b32.xlu1 %v6172_v2, %s5043_s22  ;;  %v3147_v41 = vrot.slane %v2964_v48, 1  ;;  %v6478_v14 = vpop.f32.mrf.mxu2  ;;  %v495_v39 = vld [vmem:[#allocation2 + $0x1a7] sm:$0xff] }
 0x29b   : > { %1230 = vrot.lane.b32.xlu2 %v6273_v11, %s5047_s16  ;;  %v2005_v63 = vsel %vm1979_vm8, %v1972_v60, %v6405_v36  ;;  %v712_v36 = vld [vmem:[#allocation2 + $0x168] sm:$0xff]  ;;  %v1808_v19 = vsel %vm362_vm0, %v495_v39, %v6424_v7 }
 0x29c   : > { %v3144_v43 = vsel %vm3113_vm13, %v3143_v59, %v3142_v26  ;;  %v1333_v13 = vpop.permute.xlu1 %1332  ;;  %1486 = vrot.lane.b32.xlu0 %v6452_v25, %s5048_s17 }
 0x29d   : > { %v3146_v18 = vsel %vm3116_vm14, %v3145_v27, %v3144_v43  ;;  %v6469_v33 = vpop.permute.xlu2 %950  ;;  %v1929_v2 = vsel %vm1913_vm6, %v1896_v61, %v1333_v13 }
 0x29e   : > { %v3148_v31 = vsel %vm7642_vm9, %v3147_v41, %v3146_v18  ;;  %v1962_v8 = vsel %vm1946_vm7, %v1929_v2, %v1461_v45  ;;  %v1589_v62 = vpop.permute.xlu0 %1588  ;;  %vm7646_vm9 = vmmov %vm7645_vm12 }
 0x29f   : > { %3230 = vst.msk [vmem:[#allocation3 + $0x50] sm:$0xff] %vm2263_vm11, %v3148_v31  ;;  %v1995_v38 = vsel %vm1979_vm8, %v1962_v8, %v1589_v62  ;;  %v485_v62 = vld [vmem:[#allocation2 + $0x107] sm:$0xff] }
 0x2a0   : > { %v2028_v37 = vsel %vm7643_vm3, %v1995_v38, %v1717_v10  ;;  %v6512_v10 = vld [vmem:[#allocation2 + $0x209] sm:$0xff]  ;;  %vm7647_vm3 = vmmov %vm7646_vm9 }
 0x2a1   : > { %4755 = vmatmul.msk.f32.gmra.mxu0 %vm2049_vm10, %v2028_v37 }
 0x2a2   : > { %1358 = vrot.lane.b32.xlu1 %v6304_v46, %s7623_s24 }
 0x2a3   : > { %1210 = vrot.lane.b32.xlu2 %v6317_v42, %s5047_s16  ;;  %v6501_v42 = vld [vmem:[#allocation2 + $0x208] sm:$0xff] }
 0x2a4   : > { %v1737_v5 = vpop.permute.xlu1 %1736  ;;  %1466 = vrot.lane.b32.xlu0 %v6176_v35, %s5048_s17 }
 0x2a5   : > { %v6491_v23 = vpop.permute.xlu2 %1354  ;;  %v2038_v44 = vsel %vm7644_vm15, %v2005_v63, %v1737_v5  ;;  %vm7648_vm15 = vmmov %vm7647_vm3 }
 0x2a6   : > { %4765 = vmatmul.msk.f32.gmra.mxu2 %vm2049_vm10, %v2038_v44  ;;  %v6495_v16 = vld [vmem:[#allocation3 + $0x51] sm:$0xff]  ;;  %v6497_v52 = vpop.permute.xlu0 %822 }
 0x2a7   : > { %4773 = vmatmul.msk.f32.gmra.mxu3 %vm2263_vm11, %v6495_v16 }
 0x2a9   : > { %v2233_v9 = vpop.f32.mrf.mxu2 }
 0x2aa   : > { %v2295_v35 = vsel %vm2263_vm11, %v2233_v9, -inf  ;;  %1338 = vrot.lane.b32.xlu1 %v6306_v51, %s7623_s24 }
 0x2ab   : > { %v2296_v22 = vmax.f32 %v2294_v30, %v2295_v35  ;;  %1614 = vrot.lane.b32.xlu2 %v6501_v42, %s7626_s14  ;;  %v1798_v30 = vsel %vm362_vm0, %v485_v62, %v6497_v52 }
 0x2ac   : > { %v971_v57 = vpop.permute.xlu1 %970  ;;  %1594 = vrot.lane.b32.xlu0 %v712_v36, %s7626_s14 }
 0x2ad   : > { %v2358_v3 = vrot.slane %v2296_v22, 2  ;;  %v6510_v21 = vpop.permute.xlu2 %1334  ;;  %v2359_v24 = vrot.slane %v2296_v22, 4  ;;  %v2360_v1 = vrot.slane %v2296_v22, 6  ;;  %v2705_v54 = vsel %vm7647_vm3, %v2296_v22, -inf }
 0x2ae   : > { %v1227_v12 = vpop.permute.xlu0 %1226 }
 0x2af   : > { %v2712_v28 = vsel %vm7645_vm12, %v2358_v3, -inf  ;;  %v2719_v29 = vsel %vm7646_vm9, %v2359_v24, -inf  ;;  %vm7649_vm12 = vcmask 48128   ;;  %vm7650_vm9 = vcmask 195584  }
 0x2b0   : > { %v2713_v51 = vrot.slane %v2712_v28, 4  ;;  %v2720_v32 = vrot.slane %v2719_v29, 4  ;;  %v1841_v34 = vsel %vm7649_vm12, %v1808_v19, %v971_v57  ;;  %vm7651_vm3 = vmmov %vm7649_vm12 }
 0x2b1   : > { %v1831_v24 = vsel %vm7651_vm3, %v1798_v30, %v6469_v33  ;;  %vm7652_vm12 = vmmov %vm7648_vm15 }
 0x2b2   : > { %1742 = vrot.lane.b32.xlu1 %v6512_v10, %s5049_s23  ;;  %v2714_v48 = vmax.f32 %v2712_v28, %v2713_v51  ;;  %v2721_v59 = vmax.f32 %v2719_v29, %v2720_v32  ;;  %v2297_v51 = vsel %vm2263_vm11, %v6478_v14, -inf }
 0x2b3   : > { %848 = vrot.lane.b32.xlu2 %v6222_v47, %s5042_s21  ;;  %v2706_v47 = vrot.slane %v2705_v54, 4 }
 0x2b4   : > { %v1099_v20 = vpop.permute.xlu1 %1098  ;;  %1104 = vrot.lane.b32.xlu0 %v6363_v17, %s5044_s28  ;;  %v2726_v17 = vsel %vm7648_vm15, %v2360_v1, -inf  ;;  %v2715_v26 = vrot.slane %v2714_v48, 2  ;;  %v2722_v58 = vrot.slane %v2721_v59, 2 }
 0x2b5   : > { %v1739_v45 = vpop.permute.xlu2 %1738  ;;  %v2707_v41 = vmax.f32 %v2705_v54, %v2706_v47  ;;  %v2727_v61 = vrot.slane %v2726_v17, 4 }
 0x2b6   : > { %v6522_v40 = vpop.permute.xlu0 %1206  ;;  %v2716_v18 = vmax.f32 %v2714_v48, %v2715_v26  ;;  %v2723_v8 = vmax.f32 %v2721_v59, %v2722_v58 }
 0x2b7   : > { %v2708_v7 = vrot.slane %v2707_v41, 2  ;;  %v2728_v31 = vmax.f32 %v2726_v17, %v2727_v61 }
 0x2b8   : > { %v2717_v56 = vrot.slane %v2716_v18, 1  ;;  %v2724_v57 = vrot.slane %v2723_v8, 1 }
 0x2b9   : > { %v2709_v63 = vmax.f32 %v2707_v41, %v2708_v7  ;;  %v2729_v44 = vrot.slane %v2728_v31, 2 }
 0x2ba   : > { %976 = vrot.lane.b32.xlu1 %v6234_v55, %s5043_s22  ;;  %v1874_v55 = vsel %vm1847_vm4, %v1841_v34, %v1099_v20  ;;  %v2718_v22 = vmax.f32 %v2716_v18, %v2717_v56  ;;  %v2725_v20 = vmax.f32 %v2723_v8, %v2724_v57 }
 0x2bb   : > { %1722 = vrot.lane.b32.xlu2 %v744_v50, %s5049_s23  ;;  %v1907_v2 = vsel %vm1880_vm5, %v1874_v55, %v1227_v12  ;;  %v2710_v3 = vrot.slane %v2709_v63, 1  ;;  %v2730_v12 = vmax.f32 %v2728_v31, %v2729_v44 }
 0x2bc   : > { %v1079_v27 = vpop.permute.xlu1 %1078  ;;  %1488 = vrot.lane.b32.xlu0 %v6525_v4, %s5048_s17  ;;  %v1940_v38 = vsel %vm1913_vm6, %v1907_v2, %v6491_v23  ;;  %v6557_v23 = vld [vmem:[#allocation2 + $0x210] sm:$0xff]  ;;  %v2918_v29 = vadd.f32 %v6402_v49, %v2718_v22  ;;  %v2919_v26 = vadd.f32 %v6402_v49, %v2725_v20 }
 0x2bd   : > { %v6536_v43 = vpop.permute.xlu2 %972  ;;  %v1864_v52 = vsel %vm1847_vm4, %v1831_v24, %v1079_v27  ;;  %v2711_v48 = vmax.f32 %v2709_v63, %v2710_v3  ;;  %v2731_v32 = vrot.slane %v2730_v12, 1 }
 0x2be   : > { %v1611_v13 = vpop.permute.xlu0 %1610  ;;  %v1897_v50 = vsel %vm1880_vm5, %v1864_v52, %v6522_v40  ;;  %v2982_v59 = vmax.f32 %v2918_v29, 0.0  ;;  %v724_v40 = vld [vmem:[#allocation2 + $0x228] sm:$0xff] }
 0x2bf   : > { %v1930_v61 = vsel %vm1913_vm6, %v1897_v50, %v6510_v21  ;;  %v2732_v2 = vmax.f32 %v2730_v12, %v2731_v32  ;;  %v2917_v7 = vadd.f32 %v6402_v49, %v2711_v48 }
 0x2c1   : > { %v2981_v57 = vmax.f32 %v2917_v7, 0.0 }
 0x2c2   : > { %1232 = vrot.lane.b32.xlu1 %v6385_v53, %s5047_s16 }
 0x2c3   : > { %1360 = vrot.lane.b32.xlu2 %v6365_v15, %s7623_s24 }
 0x2c4   : > { %v1483_v37 = vpop.permute.xlu1 %1482  ;;  %850 = vrot.lane.b32.xlu0 %v6273_v11, %s5042_s21  ;;  %v6560_v11 = vld [vmem:[#allocation2 + $0x211] sm:$0xff] }
 0x2c5   : > { %v6548_v60 = vpop.permute.xlu2 %1100  ;;  %v1973_v5 = vsel %vm1946_vm7, %v1940_v38, %v1483_v37  ;;  %v2983_v37 = vmax.f32 %v2919_v26, 0.0 }
 0x2c6   : > { %v2006_v9 = vsel %vm1979_vm8, %v1973_v5, %v1611_v13  ;;  %v6552_v36 = vpop.permute.xlu0 %844  ;;  %v3177_v5 = vrot.slane %v2982_v59, 7 }
 0x2c7   : > { %v2039_v35 = vsel %vm7650_vm9, %v2006_v9, %v1739_v45  ;;  %vm7653_vm9 = vmmov %vm7652_vm12  ;;  %v3179_v29 = vrot.slane %v2983_v37, 6 }
 0x2c8   : > { %4766 = vmatmul.msk.f32.gmra.mxu2 %vm2049_vm10, %v2039_v35  ;;  %vm7654_vm3 = vmmov %vm7653_vm9 }
 0x2ca   : > { %1616 = vrot.lane.b32.xlu1 %v6557_v23, %s7626_s14 }
 0x2cb   : > { %1744 = vrot.lane.b32.xlu2 %v6560_v11, %s5049_s23  ;;  %v2236_v28 = vpop.f32.mrf.mxu2 }
 0x2cc   : > { %v2298_v45 = vsel %vm2263_vm11, %v2236_v28, -inf  ;;  %v1463_v1 = vpop.permute.xlu1 %1462  ;;  %1234 = vrot.lane.b32.xlu0 %v6501_v42, %s5047_s16 }
 0x2cd   : > { %v6575_v33 = vpop.permute.xlu2 %1080  ;;  %v2299_v54 = vmax.f32 %v2297_v51, %v2298_v45  ;;  %v1963_v31 = vsel %vm1946_vm7, %v1930_v61, %v1463_v1  ;;  %v692_v51 = vld [vmem:[#allocation2 + $0x227] sm:$0xff] }
 0x2ce   : > { %v1719_v39 = vpop.permute.xlu0 %1718  ;;  %v756_v61 = vld [vmem:[#allocation2 + $0x229] sm:$0xff] }
 0x2cf   : > { %v2361_v47 = vrot.slane %v2299_v54, 2  ;;  %v2362_v14 = vrot.slane %v2299_v54, 4  ;;  %v2363_v17 = vrot.slane %v2299_v54, 6  ;;  %v2733_v19 = vsel %vm7648_vm15, %v2299_v54, -inf }
 0x2d0   : > { %v2734_v27 = vrot.slane %v2733_v19, 4  ;;  %vm7655_vm15 = vcmask 195584  }
 0x2d1   : > { %v2740_v42 = vsel %vm7652_vm12, %v2361_v47, -inf  ;;  %v2747_v34 = vsel %vm7653_vm9, %v2362_v14, -inf  ;;  %v2754_v41 = vsel %vm7654_vm3, %v2363_v17, -inf  ;;  %vm7656_vm12 = vcmask 1041409  }
 0x2d2   : > { %v2735_v55 = vmax.f32 %v2733_v19, %v2734_v27  ;;  %v2741_v13 = vrot.slane %v2740_v42, 4  ;;  %v2748_v18 = vrot.slane %v2747_v34, 4  ;;  %v2755_v58 = vrot.slane %v2754_v41, 4  ;;  %978 = vrot.lane.b32.xlu1 %v6304_v46, %s5043_s22 }
 0x2d3   : > { %1106 = vrot.lane.b32.xlu2 %v6452_v25, %s5044_s28  ;;  %v2920_v25 = vadd.f32 %v6402_v49, %v2732_v2  ;;  %v3178_v20 = vsel %vm7656_vm12, %v3177_v5, %v2981_v57  ;;  %vm7657_vm9 = vcmask 1042434   ;;  %vm7658_vm3 = vcmask 1047559   ;;  %v3261_v57 = vld [vmem:[#allocation3 + $0x37] sm:$0xff] }
 0x2d4   : > { %v2736_v56 = vrot.slane %v2735_v55, 2  ;;  %v2742_v8 = vmax.f32 %v2740_v42, %v2741_v13  ;;  %v2749_v62 = vmax.f32 %v2747_v34, %v2748_v18  ;;  %v2756_v21 = vmax.f32 %v2754_v41, %v2755_v58  ;;  %v1591_v38 = vpop.permute.xlu1 %1590  ;;  %1618 = vrot.lane.b32.xlu0 %v724_v40, %s7626_s14 }
 0x2d5   : > { %v6593_v63 = vpop.permute.xlu2 %1484  ;;  %v1996_v46 = vsel %vm1979_vm8, %v1963_v31, %v1591_v38  ;;  %v2984_v32 = vmax.f32 %v2920_v25, 0.0  ;;  %v3180_v19 = vsel %vm7657_vm9, %v3179_v29, %v3178_v20  ;;  %v693_v25 = vld [vmem:[#allocation2 + $0x22f] sm:$0xff]  ;;  %vm7660_vm12 = vcmask 195584  }
 0x2d6   : > { %v2737_v44 = vmax.f32 %v2735_v55, %v2736_v56  ;;  %v2743_v9 = vrot.slane %v2742_v8, 2  ;;  %v2750_v30 = vrot.slane %v2749_v62, 2  ;;  %v2757_v35 = vrot.slane %v2756_v21, 2  ;;  %v6596_v22 = vpop.permute.xlu0 %952  ;;  %v3244_v29 = vld [vmem:[#allocation3 + $0x8] sm:$0xff] }
 0x2d7   : > { %v2029_v3 = vsel %vm7655_vm15, %v1996_v46, %v1719_v39  ;;  %v3181_v41 = vrot.slane %v2984_v32, 5  ;;  %v757_v46 = vld [vmem:[#allocation2 + $0x231] sm:$0xff]  ;;  %vm7659_vm15 = vcmask 48128  }
 0x2d8   : > { %v2738_v12 = vrot.slane %v2737_v44, 1  ;;  %v2744_v24 = vmax.f32 %v2742_v8, %v2743_v9  ;;  %v2751_v52 = vmax.f32 %v2749_v62, %v2750_v30  ;;  %v2758_v28 = vmax.f32 %v2756_v21, %v2757_v35  ;;  %4756 = vmatmul.msk.f32.gmra.mxu0 %vm2049_vm10, %v2029_v3  ;;  %v496_v8 = vld [vmem:[#allocation2 + $0x1af] sm:$0xff]  ;;  %vm7661_vm9 = vmmov %vm7659_vm15 }
 0x2d9   : > { %v486_v3 = vld [vmem:[#allocation2 + $0x10f] sm:$0xff] }
 0x2da   : > { %v2739_v45 = vmax.f32 %v2737_v44, %v2738_v12  ;;  %v2745_v1 = vrot.slane %v2744_v24, 1  ;;  %v2752_v54 = vrot.slane %v2751_v52, 1  ;;  %v2759_v48 = vrot.slane %v2758_v28, 1  ;;  %1362 = vrot.lane.b32.xlu1 %v6512_v10, %s7623_s24  ;;  %v6642_v12 = vld [vmem:[#allocation3 + $0x1f] sm:$0xff] }
 0x2db   : > { %1490 = vrot.lane.b32.xlu2 %v692_v51, %s5048_s17 }
 0x2dc   : > { %v2746_v50 = vmax.f32 %v2744_v24, %v2745_v1  ;;  %v2753_v39 = vmax.f32 %v2751_v52, %v2752_v54  ;;  %v2760_v47 = vmax.f32 %v2758_v28, %v2759_v48  ;;  %v2921_v14 = vadd.f32 %v6402_v49, %v2739_v45  ;;  %v825_v17 = vpop.permute.xlu1 %824  ;;  %980 = vrot.lane.b32.xlu0 %v6365_v15, %s5043_s22  ;;  %v2203_v24 = vpop.f32.mrf.mxu0  ;;  %v3245_v45 = vld [vmem:[#allocation3 + $0x20] sm:$0xff]  ;;  %v3252_v54 = vld [vmem:[#allocation3 + $0x9] sm:$0xff]  ;;  %s5051_s22 = smov 16  }
 0x2dd   : > { %v6609_v26 = vpop.permute.xlu2 %1464  ;;  %v3182_v15 = vsel %vm3107_vm1, %v3181_v41, %v3180_v19  ;;  %v3253_v48 = vld [vmem:[#allocation3 + $0x21] sm:$0xff] }
 0x2de   : > { %v2922_v59 = vadd.f32 %v6402_v49, %v2746_v50  ;;  %v2923_v10 = vadd.f32 %v6402_v49, %v2753_v39  ;;  %v2924_v27 = vadd.f32 %v6402_v49, %v2760_v47  ;;  %v2985_v42 = vmax.f32 %v2921_v14, 0.0  ;;  %v1357_v34 = vpop.permute.xlu0 %1356 }
 0x2df   : > { %v4845_v39 = vpack.i.bf16 %v3245_v45, %v3244_v29  ;;  %v4850_v47 = vpack.i.bf16 %v3253_v48, %v3252_v54 }
 0x2e0   : > { %v2986_v40 = vmax.f32 %v2922_v59, 0.0  ;;  %v2987_v55 = vmax.f32 %v2923_v10, 0.0  ;;  %v2988_v13 = vmax.f32 %v2924_v27, 0.0  ;;  %v3183_v18 = vrot.slane %v2985_v42, 4  ;;  %v3269_v27 = vld [vmem:[#allocation3 + $0x38] sm:$0xff] }
 0x2e1   : > { %v3277_v42 = vld [vmem:[#allocation3 + $0x39] sm:$0xff]  ;;  %v4860_v41 = vpack.i.bf16 %v3269_v27, %v3245_v45 }
 0x2e2   : > { %v3184_v58 = vsel %vm3110_vm2, %v3183_v18, %v3182_v15  ;;  %v3185_v2 = vrot.slane %v2986_v40, 3  ;;  %v3187_v7 = vrot.slane %v2987_v55, 2  ;;  %1746 = vrot.lane.b32.xlu1 %v756_v61, %s5049_s23  ;;  %v3189_v56 = vrot.slane %v2988_v13, 1 }
 0x2e3   : > { %852 = vrot.lane.b32.xlu2 %v6385_v53, %s5042_s21  ;;  %v1809_v53 = vsel %vm362_vm0, %v496_v8, %v6552_v36  ;;  %s5050_s21 = smov 48   ;;  %v4865_v40 = vpack.i.bf16 %v3277_v42, %v3253_v48  ;;  %v4885_v55 = vpack.i.bf16 %v6495_v16, %v3277_v42  ;;  %v2282_v18 = vsel %vm2263_vm11, %v2203_v24, -inf }
 0x2e4   : > { %v3186_v31 = vsel %vm3113_vm13, %v3185_v2, %v3184_v58  ;;  %v1229_v62 = vpop.permute.xlu1 %1228  ;;  %1364 = vrot.lane.b32.xlu0 %v6560_v11, %s7623_s24  ;;  %v1842_v44 = vsel %vm7659_vm15, %v1809_v53, %v6536_v43  ;;  %v725_v43 = vld [vmem:[#allocation2 + $0x230] sm:$0xff]  ;;  %v6666_v19 = vpop.f32.mrf.mxu0  ;;  %vm7663_vm15 = vcmask 123904   ;;  %s4997_s24 = scalar_lea.hbm %s7604_s9, 2 }
 0x2e5   : > { %v3188_v21 = vsel %vm3116_vm14, %v3187_v7, %v3186_v31  ;;  %v6623_v38 = vpop.permute.xlu2 %1592  ;;  %v1875_v9 = vsel %vm1847_vm4, %v1842_v44, %v6548_v60  ;;  %v1799_v60 = vsel %vm362_vm0, %v486_v3, %v825_v17  ;;  %v6685_v31 = vld [vmem:[#allocation3 + $0x50] sm:$0xff] }
 0x2e6   : > { %v3190_v37 = vsel %vm7658_vm3, %v3189_v56, %v3188_v21  ;;  %v1337_v5 = vpop.permute.xlu0 %1336  ;;  %v1908_v36 = vsel %vm1880_vm5, %v1875_v9, %v1229_v62  ;;  %v1832_v50 = vsel %vm7661_vm9, %v1799_v60, %v6596_v22  ;;  %vm7662_vm3 = vmmov %vm7660_vm12  ;;  %v487_v60 = vld [vmem:[#allocation2 + $0x127] sm:$0xff] }
 0x2e7   : > { %3233 = vst.msk [vmem:[#allocation3 + $0x98] sm:$0xff] %vm2263_vm11, %v3190_v37  ;;  %v1865_v14 = vsel %vm1847_vm4, %v1832_v50, %v6575_v33  ;;  %v4875_v37 = vpack.i.bf16 %v6685_v31, %v3269_v27 }
 0x2ea   : > { %1108 = vrot.lane.b32.xlu1 %v6525_v4, %s5044_s28  ;;  %v1941_v4 = vsel %vm1913_vm6, %v1908_v36, %v1357_v34  ;;  %s5053_s28 = smov 96  }
 0x2eb   : > { %1236 = vrot.lane.b32.xlu2 %v6557_v23, %s5047_s16  ;;  %v4855_v23 = vpack.i.bf16 %v3261_v57, %v6642_v12  ;;  %v1974_v52 = vsel %vm1946_vm7, %v1941_v4, %v6593_v63  ;;  %v6660_v63 = vld [vmem:[#allocation3 + $0x4f] sm:$0xff]  ;;  %s7617_s16 = smov 64  }
 0x2ec   : > { %v1209_v11 = vpop.permute.xlu1 %1208  ;;  %1748 = vrot.lane.b32.xlu0 %v757_v46, %s5049_s23  ;;  %v4870_v17 = vpack.i.bf16 %v6660_v63, %v3261_v57  ;;  %s5056_s23 = smov 112  }
 0x2ed   : > { %v6638_v30 = vpop.permute.xlu2 %826  ;;  %v1898_v59 = vsel %vm1880_vm5, %v1865_v14, %v1209_v11 }
 0x2ee   : > { %v1741_v35 = vpop.permute.xlu0 %1740  ;;  %v1931_v33 = vsel %vm1913_vm6, %v1898_v59, %v1337_v5  ;;  %v1800_v45 = vsel %vm362_vm0, %v487_v60, %v6638_v30 }
 0x2ef   : > { %v1964_v61 = vsel %vm1946_vm7, %v1931_v33, %v6609_v26 }
 0x2f0   : > { %v1997_v2 = vsel %vm1979_vm8, %v1964_v61, %v6623_v38 }
 0x2f2   : > { %1492 = vrot.lane.b32.xlu1 %v693_v25, %s5048_s17  ;;  %s7615_s17 = smov 80  }
 0x2f3   : > { %1620 = vrot.lane.b32.xlu2 %v725_v43, %s7626_s14  ;;  %s7702_s14 = smov 32  }
 0x2f4   : > { %v1613_v28 = vpop.permute.xlu1 %1612  ;;  %4856 = vrot.lane.b32.xlu0 %v4855_v23, %s5050_s21 }
 0x2f5   : > { %v6651_v51 = vpop.permute.xlu2 %1230  ;;  %v2007_v20 = vsel %vm1979_vm8, %v1974_v52, %v1613_v28  ;;  %v497_v52 = vld [vmem:[#allocation2 + $0x1c7] sm:$0xff] }
 0x2f6   : > { %v2040_v1 = vsel %vm7660_vm12, %v2007_v20, %v1741_v35  ;;  %v6655_v32 = vpop.permute.xlu0 %974  ;;  %vm7664_vm12 = vmmov %vm7663_vm15 }
 0x2f7   : > { %4767 = vmatmul.msk.f32.gmra.mxu2 %vm2049_vm10, %v2040_v1  ;;  %vm7665_vm9 = vmmov %vm7664_vm12 }
 0x2fa   : > { %4846 = vrot.lane.b32.xlu1 %v4845_v39, %s5051_s22 }
 0x2fb   : > { %4851 = vrot.lane.b32.xlu2 %v4850_v47, %s7619_s27 }
 0x2fc   : > { %v847_v22 = vpop.permute.xlu1 %846  ;;  %4871 = vrot.lane.b32.xlu0 %v4870_v17, %s5053_s28 }
 0x2fd   : > { %v6671_v10 = vpop.permute.xlu2 %1210  ;;  %v1810_v48 = vsel %vm362_vm0, %v497_v52, %v847_v22 }
 0x2fe   : > { %v1103_v34 = vpop.permute.xlu0 %1102 }
 0x302   : > { %4861 = vrot.lane.b32.xlu1 %v4860_v41, %s7617_s16 }
 0x303   : > { %4866 = vrot.lane.b32.xlu2 %v4865_v40, %s7615_s17  ;;  %v2209_v13 = vpop.f32.mrf.mxu0 }
 0x304   : > { %v2283_v15 = vsel %vm2263_vm11, %v2209_v13, -inf  ;;  %v1721_v58 = vpop.permute.xlu1 %1720  ;;  %4886 = vrot.lane.b32.xlu0 %v4885_v55, %s7619_s27  ;;  %s4674_s27 = scalar_lea.hbm %s7604_s9, %s5128_s13 }
 0x305   : > { %v2284_v26 = vmax.f32 %v2282_v18, %v2283_v15  ;;  %v2030_v7 = vsel %vm7662_vm3, %v1997_v2, %v1721_v58  ;;  %v6688_v21 = vpop.permute.xlu2 %1614  ;;  %vm7666_vm3 = vmmov %vm7665_vm9  ;;  %v2285_v15 = vsel %vm2263_vm11, %v6666_v19, -inf }
 0x306   : > { %4757 = vmatmul.msk.f32.gmra.mxu0 %vm2049_vm10, %v2030_v7  ;;  %v1083_v56 = vpop.permute.xlu0 %1082 }
 0x307   : > { %v2346_v8 = vrot.slane %v2284_v26, 2  ;;  %v2347_v62 = vrot.slane %v2284_v26, 4  ;;  %v2348_v53 = vrot.slane %v2284_v26, 6  ;;  %v2593_v46 = vsel %vm7665_vm9, %v2284_v26, -inf }
 0x308   : > { %v2594_v35 = vrot.slane %v2593_v46, 4  ;;  %vm7669_vm9 = vcmask 195584  }
 0x309   : > { %v2600_v5 = vsel %vm7663_vm15, %v2346_v8, -inf  ;;  %v2607_v38 = vsel %vm7664_vm12, %v2347_v62, -inf  ;;  %v2614_v25 = vsel %vm7666_vm3, %v2348_v53, -inf  ;;  %vm7667_vm15 = vcmask 48128  }
 0x30a   : > { %v2601_v44 = vrot.slane %v2600_v5, 4  ;;  %4876 = vrot.lane.b32.xlu1 %v4875_v37, %s5056_s23  ;;  %v2608_v11 = vrot.slane %v2607_v38, 4  ;;  %v2595_v4 = vmax.f32 %v2593_v46, %v2594_v35  ;;  %v2615_v23 = vrot.slane %v2614_v25, 4  ;;  %vm7668_vm12 = vmmov %vm7667_vm15 }
 0x30b   : > { %4881 = vrot.lane.b32.xlu2 %v4875_v37, %s5051_s22  ;;  %v1843_v17 = vsel %vm7668_vm12, %v1810_v48, %v6655_v32  ;;  %vm7671_vm12 = vmmov %vm7666_vm3 }
 0x30c   : > { %v2602_v9 = vmax.f32 %v2600_v5, %v2601_v44  ;;  %v955_v36 = vpop.permute.xlu1 %954  ;;  %v2609_v3 = vmax.f32 %v2607_v38, %v2608_v11  ;;  %v2596_v1 = vrot.slane %v2595_v4, 2  ;;  %v2616_v54 = vmax.f32 %v2614_v25, %v2615_v23 }
 0x30d   : > { %v6697_v24 = vpop.permute.xlu2 %848  ;;  %v1833_v50 = vsel %vm7667_vm15, %v1800_v45, %v955_v36  ;;  %v1876_v42 = vsel %vm1847_vm4, %v1843_v17, %v1103_v34  ;;  %vm7670_vm15 = vmmov %vm7666_vm3 }
 0x30e   : > { %v1487_v57 = vpop.permute.xlu0 %1486  ;;  %v2603_v43 = vrot.slane %v2602_v9, 2  ;;  %v2610_v20 = vrot.slane %v2609_v3, 2  ;;  %v2597_v59 = vmax.f32 %v2595_v4, %v2596_v1  ;;  %v2617_v27 = vrot.slane %v2616_v54, 2 }
 0x30f   : > { %v1866_v33 = vsel %vm1847_vm4, %v1833_v50, %v1083_v56  ;;  %v1909_v18 = vsel %vm1880_vm5, %v1876_v42, %v6651_v51 }
 0x310   : > { %v2604_v28 = vmax.f32 %v2602_v9, %v2603_v43  ;;  %v2611_v14 = vmax.f32 %v2609_v3, %v2610_v20  ;;  %v1899_v22 = vsel %vm1880_vm5, %v1866_v33, %v6671_v10  ;;  %v2598_v55 = vrot.slane %v2597_v59, 1 }
 0x311   : > { %v2618_v13 = vmax.f32 %v2616_v54, %v2617_v27 }
 0x312   : > { %v2605_v47 = vrot.slane %v2604_v28, 1  ;;  %v2612_v30 = vrot.slane %v2611_v14, 1  ;;  %v2599_v37 = vmax.f32 %v2597_v59, %v2598_v55 }
 0x313   : > { %v2619_v5 = vrot.slane %v2618_v13, 1 }
 0x314   : > { %v1359_v29 = vpop.permute.xlu1 %1358  ;;  %v2606_v41 = vmax.f32 %v2604_v28, %v2605_v47  ;;  %v2613_v7 = vmax.f32 %v2611_v14, %v2612_v30 }
 0x315   : > { %v1723_v61 = vpop.permute.xlu2 %1722  ;;  %v1942_v58 = vsel %vm1913_vm6, %v1909_v18, %v1359_v29  ;;  %v2620_v20 = vmax.f32 %v2618_v13, %v2619_v5  ;;  %v2901_v29 = vadd.f32 %v6402_v49, %v2599_v37  ;;  %v498_v18 = vld [vmem:[#allocation2 + $0x1cf] sm:$0xff] }
 0x316   : > { %v1467_v39 = vpop.permute.xlu0 %1466  ;;  %v2902_v10 = vadd.f32 %v6402_v49, %v2606_v41  ;;  %v1975_v19 = vsel %vm1946_vm7, %v1942_v58, %v1487_v57  ;;  %v2903_v11 = vadd.f32 %v6402_v49, %v2613_v7  ;;  %v1811_v37 = vsel %vm362_vm0, %v498_v18, %v6697_v24 }
 0x317   : > { %v2008_v57 = vsel %vm1979_vm8, %v1975_v19, %v6688_v21  ;;  %v2904_v33 = vadd.f32 %v6402_v49, %v2620_v20  ;;  %v2965_v42 = vmax.f32 %v2901_v29, 0.0 }
 0x318   : > { %v2966_v9 = vmax.f32 %v2902_v10, 0.0  ;;  %v2967_v47 = vmax.f32 %v2903_v11, 0.0 }
 0x31a   : > { %v3149_v21 = vrot.slane %v2966_v9, 7  ;;  %v3151_v55 = vrot.slane %v2967_v47, 6 }
 0x31c   : > { %v1339_v40 = vpop.permute.xlu1 %1338 }
 0x31d   : > { %v1932_v32 = vsel %vm1913_vm6, %v1899_v22, %v1339_v40  ;;  %v6729_v4 = vpop.permute.xlu2 %1360 }
 0x31e   : > { %v1965_v34 = vsel %vm1946_vm7, %v1932_v32, %v1467_v39  ;;  %v1595_v2 = vpop.permute.xlu0 %1594  ;;  %v2212_v26 = vpop.f32.mrf.mxu0 }
 0x31f   : > { %v1998_v56 = vsel %vm1979_vm8, %v1965_v34, %v1595_v2  ;;  %v2286_v8 = vsel %vm2263_vm11, %v2212_v26, -inf  ;;  %v2968_v2 = vmax.f32 %v2904_v33, 0.0 }
 0x320   : > { %v2287_v62 = vmax.f32 %v2285_v15, %v2286_v8  ;;  %v2031_v51 = vsel %vm7669_vm9, %v1998_v56, %v1723_v61  ;;  %vm7672_vm9 = vmmov %vm7666_vm3 }
 0x321   : > { %4758 = vmatmul.msk.f32.gmra.mxu0 %vm2049_vm10, %v2031_v51 }
 0x322   : > { %v2349_v38 = vrot.slane %v2287_v62, 2  ;;  %v2350_v53 = vrot.slane %v2287_v62, 4  ;;  %v2351_v46 = vrot.slane %v2287_v62, 6  ;;  %v2621_v44 = vsel %vm7666_vm3, %v2287_v62, -inf }
 0x323   : > { %v2622_v36 = vrot.slane %v2621_v44, 4  ;;  %vm7673_vm3 = vcmask 195584  }
 0x324   : > { %v1743_v35 = vpop.permute.xlu1 %1742  ;;  %v2628_v25 = vsel %vm7670_vm15, %v2349_v38, -inf  ;;  %v2635_v43 = vsel %vm7671_vm12, %v2350_v53, -inf  ;;  %v2642_v3 = vsel %vm7672_vm9, %v2351_v46, -inf  ;;  %vm7674_vm15 = vcmask 1041409  }
 0x325   : > { %v2623_v23 = vmax.f32 %v2621_v44, %v2622_v36  ;;  %v2629_v60 = vrot.slane %v2628_v25, 4  ;;  %v2636_v52 = vrot.slane %v2635_v43, 4  ;;  %v2643_v28 = vrot.slane %v2642_v3, 4  ;;  %v1745_v7 = vpop.permute.xlu2 %1744 }
 0x326   : > { %v2041_v45 = vsel %vm7673_vm3, %v2008_v57, %v1743_v35  ;;  %v1105_v1 = vpop.permute.xlu0 %1104  ;;  %v3150_v40 = vsel %vm7674_vm15, %v3149_v21, %v2965_v42  ;;  %vm7675_vm12 = vcmask 1042434   ;;  %v3153_v46 = vrot.slane %v2968_v2, 5  ;;  %v3610_v42 = vld [vmem:[%s7598_s3 + $0x78] sm:$0xff] }
 0x327   : > { %v2624_v54 = vrot.slane %v2623_v23, 2  ;;  %v2630_v48 = vmax.f32 %v2628_v25, %v2629_v60  ;;  %v2637_v50 = vmax.f32 %v2635_v43, %v2636_v52  ;;  %v2644_v39 = vmax.f32 %v2642_v3, %v2643_v28  ;;  %4768 = vmatmul.msk.f32.gmra.mxu2 %vm2049_vm10, %v2041_v45  ;;  %3637 = vmatpush.msra.mxu1 %v3610_v42 }
 0x328   : > { %v3152_v51 = vsel %vm7675_vm12, %v3151_v55, %v3150_v40  ;;  %vm7676_vm9 = vcmask 48128   ;;  %vm7677_vm3 = vcmask 1047559   ;;  %vm7678_vm15 = vcmask 195584   ;;  %v3607_v55 = vld [vmem:[%s7598_s3 + $0x60] sm:$0xff] }
 0x329   : > { %v2625_v14 = vmax.f32 %v2623_v23, %v2624_v54  ;;  %v2631_v17 = vrot.slane %v2630_v48, 2  ;;  %v2638_v59 = vrot.slane %v2637_v50, 2  ;;  %v2645_v27 = vrot.slane %v2644_v39, 2  ;;  %vm7679_vm12 = vmmov %vm7676_vm9 }
 0x32a   : > { %v3154_v25 = vsel %vm3107_vm1, %v3153_v46, %v3152_v51  ;;  %v3600_v46 = vld [vmem:[%s7598_s3 + $0x28] sm:$0xff] }
 0x32b   : > { %v2626_v41 = vrot.slane %v2625_v14, 1  ;;  %v2632_v30 = vmax.f32 %v2630_v48, %v2631_v17  ;;  %v2639_v61 = vmax.f32 %v2637_v50, %v2638_v59  ;;  %v2646_v22 = vmax.f32 %v2644_v39, %v2645_v27  ;;  %v2239_v59 = vpop.f32.mrf.mxu2 }
 0x32c   : > { %v977_v13 = vpop.permute.xlu1 %976 }
 0x32d   : > { %v2627_v32 = vmax.f32 %v2625_v14, %v2626_v41  ;;  %v2633_v15 = vrot.slane %v2632_v30, 1  ;;  %v2640_v58 = vrot.slane %v2639_v61, 1  ;;  %v2647_v34 = vrot.slane %v2646_v22, 1  ;;  %v1107_v45 = vpop.permute.xlu2 %1106 }
 0x32e   : > { %v1489_v26 = vpop.permute.xlu0 %1488  ;;  %v1844_v44 = vsel %vm7676_vm9, %v1811_v37, %v977_v13  ;;  %v3606_v13 = vld [vmem:[%s7598_s3 + $0x58] sm:$0xff]  ;;  %vm3541_vm9 = vcmask 261120   ;;  %v3601_v37 = vld [vmem:[%s7598_s3 + $0x30] sm:$0xff] }
 0x32f   : > { %v2634_v10 = vmax.f32 %v2632_v30, %v2633_v15  ;;  %v2641_v56 = vmax.f32 %v2639_v61, %v2640_v58  ;;  %v2648_v8 = vmax.f32 %v2646_v22, %v2647_v34  ;;  %v2905_v62 = vadd.f32 %v6402_v49, %v2627_v32  ;;  %v499_v30 = vld [vmem:[#allocation2 + $0x1e7] sm:$0xff]  ;;  %3908 = vst.msk [vmem:[#allocation4] sm:$0xff] %vm3541_vm9, %v5041_v0 }
 0x330   : > { %v1877_v23 = vsel %vm1847_vm4, %v1844_v44, %v1105_v1  ;;  %v3608_v22 = vld [vmem:[%s7598_s3 + $0x68] sm:$0xff]  ;;  %v3605_v15 = vld [vmem:[%s7598_s3 + $0x50] sm:$0xff]  ;;  %3911 = vst.msk [vmem:[#allocation4 + $0x10] sm:$0xff] %vm3541_vm9, %v5041_v0  ;;  %v2300_v44 = vsel %vm2263_vm11, %v2239_v59, -inf }
 0x331   : > { %v2906_v5 = vadd.f32 %v6402_v49, %v2634_v10  ;;  %v2907_v19 = vadd.f32 %v6402_v49, %v2641_v56  ;;  %v2908_v38 = vadd.f32 %v6402_v49, %v2648_v8  ;;  %v2969_v53 = vmax.f32 %v2905_v62, 0.0  ;;  %v3604_v10 = vld [vmem:[%s7598_s3 + $0x48] sm:$0xff]  ;;  %v3603_v56 = vld [vmem:[%s7598_s3 + $0x40] sm:$0xff]  ;;  %v3602_v62 = vld [vmem:[%s7598_s3 + $0x38] sm:$0xff]  ;;  %3913 = vst.msk [vmem:[#allocation4 + $0x20] sm:$0xff] %vm3541_vm9, %v5041_v0 }
 0x332   : > { %3915 = vst.msk [vmem:[#allocation4 + $0x30] sm:$0xff] %vm3541_vm9, %v5041_v0 }
 0x333   : > { %v2970_v11 = vmax.f32 %v2906_v5, 0.0  ;;  %v2971_v9 = vmax.f32 %v2907_v19, 0.0  ;;  %v2972_v36 = vmax.f32 %v2908_v38, 0.0  ;;  %v3155_v35 = vrot.slane %v2969_v53, 4  ;;  %v6792_v18 = vpop.f32.mrf.mxu2  ;;  %3917 = vst.msk [vmem:[#allocation4 + $0x40] sm:$0xff] %vm3541_vm9, %v5041_v0 }
 0x334   : > { %v1233_v43 = vpop.permute.xlu1 %1232  ;;  %3919 = vst.msk [vmem:[#allocation4 + $0x50] sm:$0xff] %vm3541_vm9, %v5041_v0 }
 0x335   : > { %v3156_v3 = vsel %vm3110_vm2, %v3155_v35, %v3154_v25  ;;  %v3157_v24 = vrot.slane %v2970_v11, 3  ;;  %v3159_v57 = vrot.slane %v2971_v9, 2  ;;  %v1910_v60 = vsel %vm1880_vm5, %v1877_v23, %v1233_v43  ;;  %v1491_v41 = vpop.permute.xlu2 %1490  ;;  %v500_v11 = vld [vmem:[#allocation2 + $0x1ef] sm:$0xff] }
 0x336   : > { %v851_v49 = vpop.permute.xlu0 %850  ;;  %v3161_v28 = vrot.slane %v2972_v36, 1  ;;  %v1943_v54 = vsel %vm1913_vm6, %v1910_v60, %v6729_v4  ;;  %v3599_v36 = vld [vmem:[%s7598_s3 + $0x20] sm:$0xff]  ;;  %v3598_v43 = vld [vmem:[%s7598_s3 + $0x18] sm:$0xff]  ;;  %v3597_v23 = vld [vmem:[%s7598_s3 + $0x10] sm:$0xff] }
 0x337   : > { %v3158_v52 = vsel %vm3113_vm13, %v3157_v24, %v3156_v3  ;;  %v1976_v48 = vsel %vm1946_vm7, %v1943_v54, %v1489_v26 }
 0x338   : > { %v3160_v20 = vsel %vm3116_vm14, %v3159_v57, %v3158_v52 }
 0x339   : > { %v3162_v29 = vsel %vm7677_vm3, %v3161_v28, %v3160_v20  ;;  %vm7680_vm3 = vmmov %vm7678_vm15  ;;  %v3596_v28 = vld [vmem:[%s7598_s3 + $0x8] sm:$0xff] }
 0x33a   : > { %3231 = vst.msk [vmem:[#allocation3 + $0x68] sm:$0xff] %vm2263_vm11, %v3162_v29  ;;  %v3595_v29 = vld [vmem:[%s7598_s3] sm:$0xff] }
 0x33c   : > { %v1617_v50 = vpop.permute.xlu1 %1616 }
 0x33d   : > { %v2009_v1 = vsel %vm1979_vm8, %v1976_v48, %v1617_v50  ;;  %v853_v34 = vpop.permute.xlu2 %852 }
 0x33e   : > { %v2042_v39 = vsel %vm7678_vm15, %v2009_v1, %v1745_v7  ;;  %v1235_v47 = vpop.permute.xlu0 %1234  ;;  %vm3559_vm15 = vcmask 523264   ;;  %v1813_v3 = vsel %vm362_vm0, %v500_v11, %v853_v34 }
 0x33f   : > { %4769 = vmatmul.msk.f32.gmra.mxu2 %vm2049_vm10, %v2042_v39  ;;  %4353 = vst.msk [vmem:[#allocation5] sm:$0xff] %vm3559_vm15, %v5041_v0 }
 0x340   : > { %4356 = vst.msk [vmem:[#allocation5 + $0x10] sm:$0xff] %vm3559_vm15, %v5041_v0 }
 0x341   : > { %v6758_v21 = vld [vmem:[#allocation3 + $0x69] sm:$0xff]  ;;  %4358 = vst.msk [vmem:[#allocation5 + $0x20] sm:$0xff] %vm3559_vm15, %v5041_v0 }
 0x342   : > { %v6760_v14 = vld [vmem:[#allocation3 + $0x68] sm:$0xff]  ;;  %4774 = vmatmul.msk.f32.gmra.mxu3 %vm2263_vm11, %v6758_v21  ;;  %v4900_v4 = vpack.i.bf16 %v6758_v21, %v6495_v16  ;;  %4360 = vst.msk [vmem:[#allocation5 + $0x30] sm:$0xff] %vm3559_vm15, %v5041_v0 }
 0x343   : > { %v6762_v17 = vld [vmem:[#allocation3 + $0x67] sm:$0xff]  ;;  %v4895_v27 = vpack.i.bf16 %v6760_v14, %v6685_v31 }
 0x344   : > { %v4890_v33 = vpack.i.bf16 %v6762_v17, %v6660_v63  ;;  %v979_v61 = vpop.permute.xlu1 %978  ;;  %4901 = vrot.lane.b32.xlu0 %v4900_v4, %s7615_s17  ;;  %v3609_v16 = vld [vmem:[%s7598_s3 + $0x70] sm:$0xff]  ;;  %v1812_v63 = vsel %vm362_vm0, %v499_v30, %v851_v49  ;;  %vm7681_vm0 = vcmask 123904   ;;  %s4678_s17 = sshll.u32 %s4674_s27, 4  ;;  %s4679_s17 = int_to_ptr.hbm [resolvable:$true] %s4678_s17 }
 0x345   : > { %4896 = vrot.lane.b32.xlu2 %v4895_v27, %s7617_s16  ;;  %3638 = vmatpush.msra.mxu1 %v3609_v16  ;;  %v1845_v40 = vsel %vm7679_vm12, %v1812_v63, %v979_v61  ;;  %v1237_v9 = vpop.permute.xlu2 %1236  ;;  %s7704_s16 = smov 80  }
 0x346   : > { %4891 = vrot.lane.b32.xlu1 %v4890_v33, %s5050_s21  ;;  %v1619_v31 = vpop.permute.xlu0 %1618  ;;  %v1878_v32 = vsel %vm1847_vm4, %v1845_v40, %v1107_v45 }
 0x347   : > { %3639 = vmatpush.msra.mxu1 %v3608_v22  ;;  %v1911_v2 = vsel %vm1880_vm5, %v1878_v32, %v1235_v47 }
 0x349   : > { %3640 = vmatpush.msra.mxu1 %v3607_v55 }
 0x34b   : > { %3641 = vmatpush.msra.mxu1 %v3606_v13  ;;  %v2245_v51 = vpop.f32.mrf.mxu2 }
 0x34c   : > { %v1363_v58 = vpop.permute.xlu1 %1362  ;;  %v2301_v38 = vsel %vm2263_vm11, %v2245_v51, -inf }
 0x34d   : > { %3642 = vmatpush.msra.mxu1 %v3605_v15  ;;  %v1944_v26 = vsel %vm1913_vm6, %v1911_v2, %v1363_v58  ;;  %v2302_v35 = vmax.f32 %v2300_v44, %v2301_v38  ;;  %v1621_v45 = vpop.permute.xlu2 %1620  ;;  %v3236_v58 = vld [vmem:[#allocation3 + $0x7] sm:$0xff] }
 0x34e   : > { %v981_v7 = vpop.permute.xlu0 %980  ;;  %v1977_v8 = vsel %vm1946_vm7, %v1944_v26, %v1491_v41 }
 0x34f   : > { %3643 = vmatpush.msra.mxu1 %v3604_v10  ;;  %v2010_v5 = vsel %vm1979_vm8, %v1977_v8, %v1619_v31  ;;  %v2364_v24 = vrot.slane %v2302_v35, 2  ;;  %v2365_v60 = vrot.slane %v2302_v35, 4  ;;  %v1846_v49 = vsel %vm7679_vm12, %v1813_v3, %v981_v7  ;;  %vm7683_vm12 = vmmov %vm7681_vm0 }
 0x350   : > { %v2761_v1 = vsel %vm7683_vm12, %v2302_v35, -inf  ;;  %v2366_v47 = vrot.slane %v2302_v35, 6  ;;  %vm7687_vm12 = vmmov %vm7681_vm0 }
 0x351   : > { %3644 = vmatpush.msra.mxu1 %v3603_v56  ;;  %v2768_v20 = vsel %vm7681_vm0, %v2364_v24, -inf  ;;  %v2762_v42 = vrot.slane %v2761_v1, 4 }
 0x352   : > { %v2769_v39 = vrot.slane %v2768_v20, 4 }
 0x353   : > { %3645 = vmatpush.msra.mxu1 %v3602_v62  ;;  %v2763_v31 = vmax.f32 %v2761_v1, %v2762_v42 }
 0x354   : > { %v1747_v19 = vpop.permute.xlu1 %1746  ;;  %v2770_v30 = vmax.f32 %v2768_v20, %v2769_v39 }
 0x355   : > { %v2043_v53 = vsel %vm7680_vm3, %v2010_v5, %v1747_v19  ;;  %3646 = vmatpush.msra.mxu1 %v3601_v37  ;;  %vm7682_vm3 = vmmov %vm7681_vm0  ;;  %v4852_v55 = vpop.permute.xlu2 %4851  ;;  %v2764_v2 = vrot.slane %v2763_v31, 2 }
 0x356   : > { %4770 = vmatmul.msk.f32.gmra.mxu2 %vm2049_vm10, %v2043_v53  ;;  %v1365_v25 = vpop.permute.xlu0 %1364  ;;  %v2775_v54 = vsel %vm7682_vm3, %v2365_v60, -inf  ;;  %v2771_v22 = vrot.slane %v2770_v30, 2  ;;  %v4853_v8 = vunpack.i.l.bf16 %v4852_v55  ;;  %vm7686_vm3 = vmmov %vm7681_vm0 }
 0x357   : > { %3647 = vmatpush.msra.mxu1 %v3600_v46  ;;  %v2776_v59 = vrot.slane %v2775_v54, 4  ;;  %v2765_v62 = vmax.f32 %v2763_v31, %v2764_v2 }
 0x358   : > { %v2772_v26 = vmax.f32 %v2770_v30, %v2771_v22 }
 0x359   : > { %3648 = vmatpush.msra.mxu1 %v3599_v36  ;;  %v2777_v16 = vmax.f32 %v2775_v54, %v2776_v59  ;;  %v4854_v36 = vunpack.i.h.bf16 %v4852_v55 }
 0x35a   : > { %v2773_v5 = vrot.slane %v2772_v26, 1 }
 0x35b   : > { %3649 = vmatpush.msra.mxu1 %v3598_v43  ;;  %v2778_v13 = vrot.slane %v2777_v16, 2 }
 0x35c   : > { %v1109_v57 = vpop.permute.xlu1 %1108  ;;  %v2774_v3 = vmax.f32 %v2772_v26, %v2773_v5 }
 0x35d   : > { %3650 = vmatpush.msra.mxu1 %v3597_v23  ;;  %v1879_v52 = vsel %vm1847_vm4, %v1846_v49, %v1109_v57  ;;  %vm7684_vm4 = vcmask 195584   ;;  %v2779_v10 = vmax.f32 %v2777_v16, %v2778_v13  ;;  %v4867_v44 = vpop.permute.xlu2 %4866 }
 0x35e   : > { %v1912_v48 = vsel %vm1880_vm5, %v1879_v52, %v1237_v9  ;;  %v1749_v50 = vpop.permute.xlu0 %1748  ;;  %vm7685_vm5 = vmmov %vm7681_vm0  ;;  %v2766_v9 = vrot.slane %v2765_v62, 1  ;;  %v4868_v60 = vunpack.i.l.bf16 %v4867_v44 }
 0x35f   : > { %3651 = vmatpush.msra.mxu1 %v3596_v28  ;;  %v1945_v4 = vsel %vm1913_vm6, %v1912_v48, %v1365_v25  ;;  %v2782_v63 = vsel %vm7685_vm5, %v2366_v47, -inf  ;;  %vm3550_vm6 = vcmask 392192   ;;  %v2780_v53 = vrot.slane %v2779_v10, 1 }
 0x360   : > { %v2783_v40 = vrot.slane %v2782_v63, 4  ;;  %v2767_v54 = vmax.f32 %v2765_v62, %v2766_v9  ;;  %vm7689_vm5 = vcmask 1041409  }
 0x361   : > { %3652 = vmatpush.msra.mxu1 %v3595_v29  ;;  %v2781_v23 = vmax.f32 %v2779_v10, %v2780_v53  ;;  %v2303_v29 = vsel %vm2263_vm11, %v6792_v18, -inf }
 0x362   : > { %v2784_v7 = vmax.f32 %v2782_v63, %v2783_v40 }
 0x364   : > { %v1493_v27 = vpop.permute.xlu1 %1492  ;;  %v2785_v19 = vrot.slane %v2784_v7, 2 }
 0x365   : > { %v1978_v33 = vsel %vm1946_vm7, %v1945_v4, %v1493_v27  ;;  %vm3568_vm7 = vcmask 654336   ;;  %v6888_v27 = vpop.f32.mrf.mxu0 }
 0x366   : > { %v2011_v41 = vsel %vm1979_vm8, %v1978_v33, %v1621_v45  ;;  %v4857_v15 = vpop.permute.xlu0 %4856  ;;  %v2786_v24 = vmax.f32 %v2784_v7, %v2785_v19  ;;  %vm3577_vm8 = vcmask 785408   ;;  %v4869_v33 = vunpack.i.h.bf16 %v4867_v44 }
 0x367   : > { %v2044_v61 = vsel %vm7684_vm4, %v2011_v41, %v1749_v50  ;;  %v4858_v37 = vunpack.i.l.bf16 %v4857_v15  ;;  %v4859_v49 = vunpack.i.h.bf16 %v4857_v15  ;;  %v6882_v50 = vld [vmem:[%s7597_s2] ss:$0 sm:$0xff]  ;;  %vm7688_vm4 = vmmov %vm7681_vm0 }
 0x368   : > { %4771 = vmatmul.msk.f32.gmra.mxu2 %vm2049_vm10, %v2044_v61  ;;  %v2787_v48 = vrot.slane %v2786_v24, 1  ;;  %v2926_v1 = vadd.f32 %v6882_v50, %v2774_v3  ;;  %v2927_v47 = vadd.f32 %v6882_v50, %v2781_v23  ;;  %vm3586_vm10 = vcmask 916480  }
 0x36a   : > { %v2990_v22 = vmax.f32 %v2926_v1, 0.0 }
 0x36c   : > { %v4847_v32 = vpop.permute.xlu1 %4846  ;;  %v3191_v53 = vrot.slane %v2990_v22, 7 }
 0x36d   : > { %v4848_v34 = vunpack.i.l.bf16 %v4847_v32  ;;  %v4849_v51 = vunpack.i.h.bf16 %v4847_v32 }
 0x36e   : > { %v4872_v43 = vpop.permute.xlu0 %4871 }
 0x36f   : > { %v3533_v56 = vsel %vm2263_vm11, %v3236_v58, %v4848_v34  ;;  %v3534_v35 = vsel %vm2263_vm11, %v6642_v12, %v4849_v51  ;;  %v4873_v20 = vunpack.i.l.bf16 %v4872_v43  ;;  %v4874_v40 = vunpack.i.h.bf16 %v4872_v43 }
 0x370   : > { %v3542_v38 = vsel %vm3541_vm9, %v3533_v56, %v4853_v8  ;;  %v3543_v52 = vsel %vm3541_vm9, %v3534_v35, %v4854_v36  ;;  %v2788_v56 = vmax.f32 %v2786_v24, %v2787_v48  ;;  %v2925_v8 = vadd.f32 %v6882_v50, %v2767_v54 }
 0x371   : > { %v3551_v25 = vsel %vm3550_vm6, %v3542_v38, %v4858_v37  ;;  %v3552_v59 = vsel %vm3550_vm6, %v3543_v52, %v4859_v49  ;;  %v2991_v38 = vmax.f32 %v2927_v47, 0.0  ;;  %v2292_v54 = vsel %vm2263_vm11, %v6429_v6, -inf }
 0x372   : > { %v2989_v43 = vmax.f32 %v2925_v8, 0.0 }
 0x373   : > { %v3193_v52 = vrot.slane %v2991_v38, 6 }
 0x374   : > { %v4862_v46 = vpop.permute.xlu1 %4861  ;;  %v3192_v49 = vsel %vm7689_vm5, %v3191_v53, %v2989_v43  ;;  %vm7693_vm5 = vmmov %vm7686_vm3 }
 0x375   : > { %v4863_v11 = vunpack.i.l.bf16 %v4862_v46  ;;  %v4864_v28 = vunpack.i.h.bf16 %v4862_v46 }
 0x377   : > { %v3560_v57 = vsel %vm3559_vm15, %v3551_v25, %v4863_v11  ;;  %v3561_v42 = vsel %vm3559_vm15, %v3552_v59, %v4864_v28  ;;  %v2928_v25 = vadd.f32 %v6882_v50, %v2788_v56 }
 0x378   : > { %v3569_v12 = vsel %vm3568_vm7, %v3560_v57, %v4868_v60  ;;  %v3570_v34 = vsel %vm3568_vm7, %v3561_v42, %v4869_v33 }
 0x379   : > { %v3578_v30 = vsel %vm3577_vm8, %v3569_v12, %v4873_v20  ;;  %v3579_v46 = vsel %vm3577_vm8, %v3570_v34, %v4874_v40  ;;  %v2992_v48 = vmax.f32 %v2928_v25, 0.0 }
 0x37a   : > { %v2248_v45 = vpop.f32.mrf.mxu2 }
 0x37b   : > { %v2304_v39 = vsel %vm2263_vm11, %v2248_v45, -inf }
 0x37c   : > { %v2305_v18 = vmax.f32 %v2303_v29, %v2304_v39  ;;  %v4877_v4 = vpop.permute.xlu1 %4876 }
 0x37d   : > { %v4878_v41 = vunpack.i.l.bf16 %v4877_v4  ;;  %v4879_v62 = vunpack.i.h.bf16 %v4877_v4 }
 0x37e   : > { %v2367_v61 = vrot.slane %v2305_v18, 2  ;;  %v2368_v16 = vrot.slane %v2305_v18, 4  ;;  %v2369_v63 = vrot.slane %v2305_v18, 6  ;;  %v2789_v31 = vsel %vm7681_vm0, %v2305_v18, -inf }
 0x37f   : > { %v2790_v55 = vrot.slane %v2789_v31, 4  ;;  %v3587_v13 = vsel %vm3586_vm10, %v3578_v30, %v4878_v41  ;;  %v3588_v3 = vsel %vm3586_vm10, %v3579_v46, %v4879_v62  ;;  %vm7690_vm0 = vcmask 1042434  }
 0x380   : > { %v2796_v32 = vsel %vm7686_vm3, %v2367_v61, -inf  ;;  %v2803_v15 = vsel %vm7687_vm12, %v2368_v16, -inf  ;;  %v2810_v58 = vsel %vm7688_vm4, %v2369_v63, -inf  ;;  %3653 = vmatmul.f32.vlgmr.msra.gmra.mxu1 %v3587_v13  ;;  %v3194_v18 = vsel %vm7690_vm0, %v3193_v52, %v3192_v49  ;;  %vm7692_vm4 = vmmov %vm7686_vm3 }
 0x381   : > { %v2791_v2 = vmax.f32 %v2789_v31, %v2790_v55  ;;  %v2797_v26 = vrot.slane %v2796_v32, 4  ;;  %v2804_v7 = vrot.slane %v2803_v15, 4  ;;  %v2811_v10 = vrot.slane %v2810_v58, 4  ;;  %vm7694_vm0 = vmmov %vm7686_vm3 }
 0x382   : > { %v3195_v61 = vrot.slane %v2992_v48, 5  ;;  %vm7691_vm12 = vcmask 1047559  }
 0x383   : > { %v2792_v51 = vrot.slane %v2791_v2, 2  ;;  %v2798_v37 = vmax.f32 %v2796_v32, %v2797_v26  ;;  %v2805_v5 = vmax.f32 %v2803_v15, %v2804_v7  ;;  %v2812_v19 = vmax.f32 %v2810_v58, %v2811_v10  ;;  %v2218_v35 = vpop.f32.mrf.mxu0 }
 0x384   : > { %v2291_v28 = vsel %vm2263_vm11, %v2218_v35, -inf  ;;  %v3196_v22 = vsel %vm3107_vm1, %v3195_v61, %v3194_v18 }
 0x385   : > { %v2793_v44 = vmax.f32 %v2791_v2, %v2792_v51  ;;  %v2799_v11 = vrot.slane %v2798_v37, 2  ;;  %v2806_v9 = vrot.slane %v2805_v5, 2  ;;  %v2813_v36 = vrot.slane %v2812_v19, 2 }
 0x386   : > { %v2293_v4 = vmax.f32 %v2291_v28, %v2292_v54 }
 0x387   : > { %v2794_v24 = vrot.slane %v2793_v44, 1  ;;  %v2800_v57 = vmax.f32 %v2798_v37, %v2799_v11  ;;  %v2807_v23 = vmax.f32 %v2805_v5, %v2806_v9  ;;  %v2814_v60 = vmax.f32 %v2812_v19, %v2813_v36 }
 0x388   : > { %3656 = vmatmul.f32.gmra.mxu1 %v3588_v3  ;;  %v2355_v32 = vrot.slane %v2293_v4, 2  ;;  %v2356_v15 = vrot.slane %v2293_v4, 4  ;;  %v2357_v58 = vrot.slane %v2293_v4, 6  ;;  %v2677_v7 = vsel %vm7686_vm3, %v2293_v4, -inf  ;;  %vm7695_vm3 = vmmov %vm7694_vm0 }
 0x389   : > { %v2795_v20 = vmax.f32 %v2793_v44, %v2794_v24  ;;  %v2801_v29 = vrot.slane %v2800_v57, 1  ;;  %v2808_v45 = vrot.slane %v2807_v23, 1  ;;  %v2815_v12 = vrot.slane %v2814_v60, 1 }
 0x38a   : > { %v2684_v56 = vsel %vm7692_vm4, %v2355_v32, -inf  ;;  %v2691_v8 = vsel %vm7693_vm5, %v2356_v15, -inf  ;;  %v2698_v62 = vsel %vm7694_vm0, %v2357_v58, -inf  ;;  %v2678_v51 = vrot.slane %v2677_v7, 4  ;;  %vm7697_vm4 = vmmov %vm7694_vm0 }
 0x38b   : > { %v2802_v1 = vmax.f32 %v2800_v57, %v2801_v29  ;;  %v2809_v39 = vmax.f32 %v2807_v23, %v2808_v45  ;;  %v2816_v47 = vmax.f32 %v2814_v60, %v2815_v12  ;;  %v2929_v59 = vadd.f32 %v6882_v50, %v2795_v20  ;;  %vm7698_vm5 = vmmov %vm7694_vm0 }
 0x38c   : > { %v2685_v37 = vrot.slane %v2684_v56, 4  ;;  %v2692_v5 = vrot.slane %v2691_v8, 4  ;;  %v2699_v19 = vrot.slane %v2698_v62, 4  ;;  %v2679_v38 = vmax.f32 %v2677_v7, %v2678_v51 }
 0x38d   : > { %v2930_v33 = vadd.f32 %v6882_v50, %v2802_v1  ;;  %v2931_v42 = vadd.f32 %v6882_v50, %v2809_v39  ;;  %v2932_v41 = vadd.f32 %v6882_v50, %v2816_v47  ;;  %v2993_v30 = vmax.f32 %v2929_v59, 0.0 }
 0x38e   : > { %v2686_v53 = vmax.f32 %v2684_v56, %v2685_v37  ;;  %v2693_v46 = vmax.f32 %v2691_v8, %v2692_v5  ;;  %v2700_v44 = vmax.f32 %v2698_v62, %v2699_v19  ;;  %v2288_v9 = vsel %vm2263_vm11, %v6888_v27, -inf }
 0x38f   : > { %v2994_v16 = vmax.f32 %v2930_v33, 0.0  ;;  %v2995_v63 = vmax.f32 %v2931_v42, 0.0  ;;  %v2996_v6 = vmax.f32 %v2932_v41, 0.0  ;;  %v3197_v31 = vrot.slane %v2993_v30, 4 }
 0x390   : > { %v2680_v36 = vrot.slane %v2679_v38, 2  ;;  %v2687_v25 = vrot.slane %v2686_v53, 2  ;;  %v2694_v3 = vrot.slane %v2693_v46, 2  ;;  %v2701_v24 = vrot.slane %v2700_v44, 2 }
 0x391   : > { %v3198_v40 = vsel %vm3110_vm2, %v3197_v31, %v3196_v22  ;;  %v3199_v55 = vrot.slane %v2994_v16, 3  ;;  %v3201_v13 = vrot.slane %v2995_v63, 2  ;;  %v3203_v2 = vrot.slane %v2996_v6, 1 }
 0x392   : > { %v2681_v52 = vmax.f32 %v2679_v38, %v2680_v36  ;;  %v2688_v20 = vmax.f32 %v2686_v53, %v2687_v25  ;;  %v2695_v39 = vmax.f32 %v2693_v46, %v2694_v3  ;;  %v2702_v47 = vmax.f32 %v2700_v44, %v2701_v24 }
 0x393   : > { %v3200_v34 = vsel %vm3113_vm13, %v3199_v55, %v3198_v40 }
 0x394   : > { %v3202_v26 = vsel %vm3116_vm14, %v3201_v13, %v3200_v34  ;;  %v2682_v42 = vrot.slane %v2681_v52, 1  ;;  %v2689_v41 = vrot.slane %v2688_v20, 1  ;;  %v2696_v6 = vrot.slane %v2695_v39, 1 }
 0x395   : > { %v3204_v10 = vsel %vm7691_vm12, %v3203_v2, %v3202_v26  ;;  %vm7696_vm12 = vmmov %vm7694_vm0  ;;  %v2703_v31 = vrot.slane %v2702_v47, 1  ;;  %vm7699_vm0 = vcmask 1041409  }
 0x396   : > { %3234 = vst.msk [vmem:[#allocation3 + $0xb0] sm:$0xff] %vm2263_vm11, %v3204_v10  ;;  %v2683_v32 = vmax.f32 %v2681_v52, %v2682_v42  ;;  %v2690_v15 = vmax.f32 %v2688_v20, %v2689_v41  ;;  %v2697_v7 = vmax.f32 %v2695_v39, %v2696_v6  ;;  %v3305_v42 = vld [vmem:[#allocation3 + $0x99] sm:$0xff] }
 0x397   : > { %v2704_v10 = vmax.f32 %v2702_v47, %v2703_v31  ;;  %v6953_v41 = vld [vmem:[#allocation3 + $0x97] sm:$0xff] }
 0x398   : > { %v2913_v51 = vadd.f32 %v6882_v50, %v2683_v32  ;;  %v2914_v37 = vadd.f32 %v6882_v50, %v2690_v15  ;;  %v2915_v46 = vadd.f32 %v6882_v50, %v2697_v7 }
 0x399   : > { %v2916_v44 = vadd.f32 %v6882_v50, %v2704_v10 }
 0x39a   : > { %v2978_v25 = vmax.f32 %v2914_v37, 0.0 }
 0x39c   : > { %v3171_v20 = vrot.slane %v2978_v25, 3 }
 0x39d   : > { %v6964_v6 = vld [vmem:[#allocation3 + $0xb0] sm:$0xff] }
 0x39e   : > { %v2221_v11 = vpop.f32.mrf.mxu0  ;;  %v3306_v31 = vld [vmem:[#allocation3 + $0xb1] sm:$0xff] }
 0x39f   : > { %v2289_v35 = vsel %vm2263_vm11, %v2221_v11, -inf  ;;  %v4955_v10 = vpack.i.bf16 %v3306_v31, %v3305_v42 }
 0x3a0   : > { %v2290_v43 = vmax.f32 %v2288_v9, %v2289_v35  ;;  %v2977_v35 = vmax.f32 %v2913_v51, 0.0 }
 0x3a2   : > { %v2352_v57 = vrot.slane %v2290_v43, 2  ;;  %v2353_v23 = vrot.slane %v2290_v43, 4  ;;  %v2354_v60 = vrot.slane %v2290_v43, 6  ;;  %v2649_v49 = vsel %vm7695_vm3, %v2290_v43, -inf }
 0x3a3   : > { %v2650_v28 = vrot.slane %v2649_v49, 4  ;;  %v3169_v52 = vrot.slane %v2977_v35, 4  ;;  %vm7700_vm3 = vcmask 1042434  }
 0x3a4   : > { %v2656_v29 = vsel %vm7696_vm12, %v2352_v57, -inf  ;;  %v2663_v45 = vsel %vm7697_vm4, %v2353_v23, -inf  ;;  %v2670_v27 = vsel %vm7698_vm5, %v2354_v60, -inf  ;;  %v2979_v57 = vmax.f32 %v2915_v46, 0.0  ;;  %vm7705_vm5 = vmmov %vm7697_vm4 }
 0x3a5   : > { %v2651_v12 = vmax.f32 %v2649_v49, %v2650_v28  ;;  %v2657_v54 = vrot.slane %v2656_v29, 4  ;;  %v2664_v48 = vrot.slane %v2663_v45, 4  ;;  %v2671_v1 = vrot.slane %v2670_v27, 4 }
 0x3a6   : > { %v2980_v23 = vmax.f32 %v2916_v44, 0.0  ;;  %vm7701_vm12 = vcmask 1047559  }
 0x3a7   : > { %v2652_v59 = vrot.slane %v2651_v12, 2  ;;  %v2658_v18 = vmax.f32 %v2656_v29, %v2657_v54  ;;  %v2665_v4 = vmax.f32 %v2663_v45, %v2664_v48  ;;  %v2672_v33 = vmax.f32 %v2670_v27, %v2671_v1 }
 0x3a8   : > { %v3173_v45 = vrot.slane %v2979_v57, 2 }
 0x3a9   : > { %v2653_v30 = vmax.f32 %v2651_v12, %v2652_v59  ;;  %v2659_v61 = vrot.slane %v2658_v18, 2  ;;  %v2666_v16 = vrot.slane %v2665_v4, 2  ;;  %v2673_v63 = vrot.slane %v2672_v33, 2 }
 0x3aa   : > { %v3175_v12 = vrot.slane %v2980_v23, 1 }
 0x3ab   : > { %v2654_v22 = vrot.slane %v2653_v30, 1  ;;  %v2660_v40 = vmax.f32 %v2658_v18, %v2659_v61  ;;  %v2667_v55 = vmax.f32 %v2665_v4, %v2666_v16  ;;  %v2674_v13 = vmax.f32 %v2672_v33, %v2673_v63  ;;  %v2251_v33 = vpop.f32.mrf.mxu2  ;;  %v3273_v61 = vld [vmem:[#allocation3 + $0x98] sm:$0xff]  ;;  %v6962_v63 = vld [vmem:[#allocation3 + $0xaf] sm:$0xff] }
 0x3ad   : > { %v2655_v58 = vmax.f32 %v2653_v30, %v2654_v22  ;;  %v2661_v34 = vrot.slane %v2660_v40, 1  ;;  %v2668_v2 = vrot.slane %v2667_v55, 1  ;;  %v2675_v26 = vrot.slane %v2674_v13, 1 }
 0x3ae   : > { %v4940_v22 = vpack.i.bf16 %v6962_v63, %v6953_v41 }
 0x3af   : > { %v2662_v56 = vmax.f32 %v2660_v40, %v2661_v34  ;;  %v2669_v8 = vmax.f32 %v2667_v55, %v2668_v2  ;;  %v2676_v62 = vmax.f32 %v2674_v13, %v2675_v26  ;;  %v2909_v5 = vadd.f32 %v6882_v50, %v2655_v58 }
 0x3b0   : > { %v4945_v40 = vpack.i.bf16 %v6964_v6, %v3273_v61  ;;  %v2306_v13 = vsel %vm2263_vm11, %v2251_v33, -inf }
 0x3b1   : > { %v2910_v19 = vadd.f32 %v6882_v50, %v2662_v56  ;;  %v2911_v38 = vadd.f32 %v6882_v50, %v2669_v8  ;;  %v2912_v53 = vadd.f32 %v6882_v50, %v2676_v62  ;;  %v2973_v43 = vmax.f32 %v2909_v5, 0.0 }
 0x3b3   : > { %v2974_v11 = vmax.f32 %v2910_v19, 0.0  ;;  %v2975_v9 = vmax.f32 %v2911_v38, 0.0  ;;  %v2976_v36 = vmax.f32 %v2912_v53, 0.0 }
 0x3b5   : > { %v3163_v3 = vrot.slane %v2974_v11, 7  ;;  %v3165_v24 = vrot.slane %v2975_v9, 6  ;;  %v3167_v49 = vrot.slane %v2976_v36, 5 }
 0x3b7   : > { %v3164_v60 = vsel %vm7699_vm0, %v3163_v3, %v2973_v43  ;;  %vm7706_vm0 = vmmov %vm7697_vm4 }
 0x3b8   : > { %v3166_v28 = vsel %vm7700_vm3, %v3165_v24, %v3164_v60  ;;  %vm7707_vm3 = vmmov %vm7706_vm0 }
 0x3b9   : > { %v3168_v29 = vsel %vm3107_vm1, %v3167_v49, %v3166_v28 }
 0x3ba   : > { %v3170_v27 = vsel %vm3110_vm2, %v3169_v52, %v3168_v29 }
 0x3bb   : > { %v3172_v54 = vsel %vm3113_vm13, %v3171_v20, %v3170_v27 }
 0x3bc   : > { %v3174_v48 = vsel %vm3116_vm14, %v3173_v45, %v3172_v54 }
 0x3bd   : > { %v3176_v1 = vsel %vm7701_vm12, %v3175_v12, %v3174_v48  ;;  %vm7708_vm12 = vmmov %vm7706_vm0 }
 0x3be   : > { %3232 = vst.msk [vmem:[#allocation3 + $0x80] sm:$0xff] %vm2263_vm11, %v3176_v1 }
 0x3c5   : > { %v3304_v39 = vld [vmem:[#allocation3 + $0x81] sm:$0xff] }
 0x3c6   : > { %v3296_v47 = vld [vmem:[#allocation3 + $0x80] sm:$0xff]  ;;  %4775 = vmatmul.msk.f32.gmra.mxu3 %vm2263_vm11, %v3304_v39 }
 0x3c7   : > { %v6944_v59 = vld [vmem:[#allocation3 + $0x7f] sm:$0xff]  ;;  %v4910_v18 = vpack.i.bf16 %v3296_v47, %v6760_v14  ;;  %v4920_v14 = vpack.i.bf16 %v3304_v39, %v6758_v21  ;;  %v4930_v16 = vpack.i.bf16 %v3273_v61, %v3296_v47  ;;  %v4935_v21 = vpack.i.bf16 %v3305_v42, %v3304_v39 }
 0x3c8   : > { %v4905_v4 = vpack.i.bf16 %v6944_v59, %v6762_v17  ;;  %v4925_v30 = vpack.i.bf16 %v6953_v41, %v6944_v59  ;;  %v2254_v17 = vpop.f32.mrf.mxu2 }
 0x3c9   : > { %4911 = vrot.lane.b32.xlu2 %v4910_v18, %s5056_s23  ;;  %4916 = vrot.lane.b32.xlu0 %v4910_v18, %s5051_s22  ;;  %v2309_v60 = vsel %vm2263_vm11, %v2254_v17, -inf }
 0x3ca   : > { %4906 = vrot.lane.b32.xlu1 %v4905_v4, %s5053_s28 }
 0x3ce   : > { %4776 = vmatmul.msk.f32.gmra.mxu3 %vm2263_vm11, %v3305_v42 }
 0x3d1   : > { %4926 = vrot.lane.b32.xlu2 %v4925_v30, %s5050_s21  ;;  %4931 = vrot.lane.b32.xlu0 %v4930_v16, %s7703_s26 }
 0x3d2   : > { %4921 = vrot.lane.b32.xlu1 %v4920_v14, %s7702_s14 }
 0x3d6   : > { %4777 = vmatmul.msk.f32.gmra.mxu3 %vm2263_vm11, %v3306_v31 }
 0x3d9   : > { %4941 = vrot.lane.b32.xlu2 %v4940_v22, %s5053_s28  ;;  %v2257_v55 = vpop.f32.mrf.mxu2  ;;  %4946 = vrot.lane.b32.xlu0 %v4945_v40, %s5056_s23 }
 0x3da   : > { %4936 = vrot.lane.b32.xlu1 %v4935_v21, %s7704_s16  ;;  %v2307_v32 = vsel %vm2263_vm11, %v2257_v55, -inf }
 0x3db   : > { %v2308_v15 = vmax.f32 %v2306_v13, %v2307_v32 }
 0x3dd   : > { %v2370_v58 = vrot.slane %v2308_v15, 2  ;;  %v2371_v34 = vrot.slane %v2308_v15, 4  ;;  %v2372_v2 = vrot.slane %v2308_v15, 6  ;;  %v2817_v26 = vsel %vm7697_vm4, %v2308_v15, -inf  ;;  %vm7709_vm4 = vmmov %vm7706_vm0 }
 0x3de   : > { %v2818_v7 = vrot.slane %v2817_v26, 4 }
 0x3df   : > { %v2824_v56 = vsel %vm7705_vm5, %v2370_v58, -inf  ;;  %v2831_v8 = vsel %vm7706_vm0, %v2371_v34, -inf  ;;  %v2838_v62 = vsel %vm7707_vm3, %v2372_v2, -inf  ;;  %vm7710_vm5 = vmmov %vm7706_vm0  ;;  %vm3909_vm3 = vcmask 258048  }
 0x3e0   : > { %v2825_v51 = vrot.slane %v2824_v56, 4  ;;  %v2832_v37 = vrot.slane %v2831_v8, 4  ;;  %v2839_v5 = vrot.slane %v2838_v62, 4  ;;  %v2819_v19 = vmax.f32 %v2817_v26, %v2818_v7  ;;  %3912 = vst.msk [vmem:[#allocation4 + $0x18] sm:$0x1f] %vm3909_vm3, %v5041_v0 }
 0x3e1   : > { %4956 = vrot.lane.b32.xlu2 %v4955_v10, %s7702_s14  ;;  %3910 = vst.msk [vmem:[#allocation4 + $0x8] sm:$0x1f] %vm3909_vm3, %v5041_v0 }
 0x3e2   : > { %4951 = vrot.lane.b32.xlu1 %v4945_v40, %s5051_s22  ;;  %v2826_v38 = vmax.f32 %v2824_v56, %v2825_v51  ;;  %v2833_v53 = vmax.f32 %v2831_v8, %v2832_v37  ;;  %v2840_v11 = vmax.f32 %v2838_v62, %v2839_v5  ;;  %v2820_v9 = vrot.slane %v2819_v19, 2  ;;  %3914 = vst.msk [vmem:[#allocation4 + $0x28] sm:$0x1f] %vm3909_vm3, %v5041_v0 }
 0x3e3   : > { %3916 = vst.msk [vmem:[#allocation4 + $0x38] sm:$0x1f] %vm3909_vm3, %v5041_v0 }
 0x3e4   : > { %v2827_v46 = vrot.slane %v2826_v38, 2  ;;  %v2834_v44 = vrot.slane %v2833_v53, 2  ;;  %v2841_v25 = vrot.slane %v2840_v11, 2  ;;  %v2821_v3 = vmax.f32 %v2819_v19, %v2820_v9  ;;  %3918 = vst.msk [vmem:[#allocation4 + $0x48] sm:$0x1f] %vm3909_vm3, %v5041_v0 }
 0x3e5   : > { %3920 = vst.msk [vmem:[#allocation4 + $0x58] sm:$0x1f] %vm3909_vm3, %v5041_v0 }
 0x3e6   : > { %v2828_v36 = vmax.f32 %v2826_v38, %v2827_v46  ;;  %v2835_v35 = vmax.f32 %v2833_v53, %v2834_v44  ;;  %v2842_v23 = vmax.f32 %v2840_v11, %v2841_v25  ;;  %v2822_v28 = vrot.slane %v2821_v3, 1  ;;  %v3695_v46 = vpop.f32.mrf.mxu3 }
 0x3e8   : > { %v2829_v43 = vrot.slane %v2828_v36, 1  ;;  %v2836_v24 = vrot.slane %v2835_v35, 1  ;;  %v2843_v45 = vrot.slane %v2842_v23, 1  ;;  %v2823_v39 = vmax.f32 %v2821_v3, %v2822_v28 }
 0x3e9   : > { %3457 = vrot.lane.b32.xlu2 %v3306_v31, %s7704_s16 }
 0x3ea   : > { %v2830_v49 = vmax.f32 %v2828_v36, %v2829_v43  ;;  %v2837_v29 = vmax.f32 %v2835_v35, %v2836_v24  ;;  %v2844_v17 = vmax.f32 %v2842_v23, %v2843_v45  ;;  %v2933_v13 = vadd.f32 %v6882_v50, %v2823_v39 }
 0x3eb   : > { %v2260_v57 = vpop.f32.mrf.mxu2 }
 0x3ec   : > { %v2310_v52 = vsel %vm2263_vm11, %v2260_v57, -inf  ;;  %v2934_v12 = vadd.f32 %v6882_v50, %v2830_v49  ;;  %v2935_v4 = vadd.f32 %v6882_v50, %v2837_v29  ;;  %v2936_v26 = vadd.f32 %v6882_v50, %v2844_v17 }
 0x3ed   : > { %v2311_v20 = vmax.f32 %v2309_v60, %v2310_v52  ;;  %v2997_v51 = vmax.f32 %v2933_v13, 0.0 }
 0x3ee   : > { %v2998_v31 = vmax.f32 %v2934_v12, 0.0  ;;  %v2999_v32 = vmax.f32 %v2935_v4, 0.0  ;;  %v3000_v44 = vmax.f32 %v2936_v26, 0.0 }
 0x3ef   : > { %v2373_v27 = vrot.slane %v2311_v20, 2  ;;  %v2374_v54 = vrot.slane %v2311_v20, 4  ;;  %v2375_v48 = vrot.slane %v2311_v20, 6  ;;  %v2845_v1 = vsel %vm7708_vm12, %v2311_v20, -inf }
 0x3f0   : > { %v2846_v47 = vrot.slane %v2845_v1, 4  ;;  %v3205_v7 = vrot.slane %v2998_v31, 7  ;;  %v3207_v37 = vrot.slane %v2999_v32, 6  ;;  %vm7711_vm12 = vcmask 1041409  }
 0x3f1   : > { %v2852_v18 = vsel %vm7709_vm4, %v2373_v27, -inf  ;;  %v2859_v42 = vsel %vm7710_vm5, %v2374_v54, -inf  ;;  %v2866_v30 = vsel %vm7706_vm0, %v2375_v48, -inf  ;;  %vm7712_vm4 = vcmask 1042434   ;;  %v3698_v48 = vpop.f32.mrf.mxu3 }
 0x3f2   : > { %v2853_v33 = vrot.slane %v2852_v18, 4  ;;  %v2847_v14 = vmax.f32 %v2845_v1, %v2846_v47  ;;  %v2860_v61 = vrot.slane %v2859_v42, 4  ;;  %v2867_v16 = vrot.slane %v2866_v30, 4 }
 0x3f3   : > { %v3206_v11 = vsel %vm7711_vm12, %v3205_v7, %v2997_v51  ;;  %v3209_v49 = vrot.slane %v3000_v44, 5  ;;  %vm7713_vm5 = vcmask 1047559   ;;  %vm3759_vm0 = vcmask 254976  }
 0x3f4   : > { %v2854_v22 = vmax.f32 %v2852_v18, %v2853_v33  ;;  %v2848_v21 = vrot.slane %v2847_v14, 2  ;;  %v2861_v40 = vmax.f32 %v2859_v42, %v2860_v61  ;;  %v2868_v55 = vmax.f32 %v2866_v30, %v2867_v16 }
 0x3f5   : > { %v3208_v24 = vsel %vm7712_vm4, %v3207_v37, %v3206_v11 }
 0x3f6   : > { %v2855_v15 = vrot.slane %v2854_v22, 2  ;;  %v2849_v58 = vmax.f32 %v2847_v14, %v2848_v21  ;;  %v2862_v34 = vrot.slane %v2861_v40, 2  ;;  %v2869_v2 = vrot.slane %v2868_v55, 2 }
 0x3f7   : > { %v3210_v45 = vsel %vm3107_vm1, %v3209_v49, %v3208_v24 }
 0x3f8   : > { %v2856_v10 = vmax.f32 %v2854_v22, %v2855_v15  ;;  %v2850_v56 = vrot.slane %v2849_v58, 1  ;;  %v2863_v8 = vmax.f32 %v2861_v40, %v2862_v34  ;;  %v2870_v62 = vmax.f32 %v2868_v55, %v2869_v2 }
 0x3fa   : > { %v2857_v5 = vrot.slane %v2856_v10, 1  ;;  %v2851_v19 = vmax.f32 %v2849_v58, %v2850_v56  ;;  %v2864_v38 = vrot.slane %v2863_v8, 1  ;;  %v2871_v53 = vrot.slane %v2870_v62, 1 }
 0x3fc   : > { %v2858_v9 = vmax.f32 %v2856_v10, %v2857_v5  ;;  %v2865_v35 = vmax.f32 %v2863_v8, %v2864_v38  ;;  %v2872_v25 = vmax.f32 %v2870_v62, %v2871_v53  ;;  %v2937_v43 = vadd.f32 %v6882_v50, %v2851_v19 }
 0x3fd   : > { %v3654_v36 = vpop.f32.mrf.mxu1 }
 0x3fe   : > { %v2938_v3 = vadd.f32 %v6882_v50, %v2858_v9  ;;  %v2939_v57 = vadd.f32 %v6882_v50, %v2865_v35  ;;  %v2940_v23 = vadd.f32 %v6882_v50, %v2872_v25  ;;  %v3001_v60 = vmax.f32 %v2937_v43, 0.0 }
 0x3ff   : > { %v3696_v54 = vadd.f32 %v3695_v46, %v3654_v36 }
 0x400   : > { %v3002_v52 = vmax.f32 %v2938_v3, 0.0  ;;  %v3003_v28 = vmax.f32 %v2939_v57, 0.0  ;;  %v3004_v20 = vmax.f32 %v2940_v23, 0.0  ;;  %v3211_v29 = vrot.slane %v3001_v60, 4 }
 0x401   : > { %v3719_v42 = vsel %vm3541_vm9, %v3696_v54, -inf  ;;  %v3292_v54 = vld [vmem:[#allocation3 + $0xdf] sm:$0xff] }
 0x402   : > { %v3213_v27 = vrot.slane %v3002_v52, 3  ;;  %v3212_v50 = vsel %vm3110_vm2, %v3211_v29, %v3210_v45  ;;  %v3215_v12 = vrot.slane %v3003_v28, 2  ;;  %v3217_v39 = vrot.slane %v3004_v20, 1 }
 0x403   : > { %vm3966_vm2 = vcmask 257024  }
 0x404   : > { %v3214_v1 = vsel %vm3113_vm13, %v3213_v27, %v3212_v50  ;;  %vm7715_vm13 = vmmov %vm7712_vm4 }
 0x405   : > { %v3657_v47 = vpop.f32.mrf.mxu1  ;;  %v3216_v18 = vsel %vm3116_vm14, %v3215_v12, %v3214_v1  ;;  %vm7714_vm14 = vmmov %vm7711_vm12 }
 0x406   : > { %v3699_v4 = vadd.f32 %v3698_v48, %v3657_v47  ;;  %v3218_v33 = vsel %vm7713_vm5, %v3217_v39, %v3216_v18  ;;  %v3300_v48 = vld [vmem:[#allocation3 + $0xe0] sm:$0xff]  ;;  %v4882_v47 = vpop.permute.xlu2 %4881  ;;  %vm4302_vm5 = vcmask 1043458  }
 0x407   : > { %3235 = vst.msk [vmem:[#allocation3 + $0xc8] sm:$0xff] %vm2263_vm11, %v3218_v33 }
 0x408   : > { %v3720_v30 = vsel %vm3541_vm9, %v3699_v4, -inf  ;;  %v4887_v4 = vpop.permute.xlu0 %4886 }
 0x409   : > { %v3721_v14 = vmax.f32 %v3719_v42, %v3720_v30  ;;  %v4892_v42 = vpop.permute.xlu1 %4891  ;;  %v4883_v30 = vunpack.i.l.bf16 %v4882_v47 }
 0x40b   : > { %v3735_v61 = vrot.slane %v3721_v14, 2  ;;  %v3736_v16 = vrot.slane %v3721_v14, 4  ;;  %v3737_v17 = vrot.slane %v3721_v14, 6  ;;  %v3760_v31 = vsel %vm3759_vm0, %v3721_v14, -inf }
 0x40c   : > { %v3761_v22 = vrot.slane %v3760_v31, 4  ;;  %v4888_v14 = vunpack.i.l.bf16 %v4887_v4 }
 0x40d   : > { %v3767_v21 = vsel %vm3759_vm0, %v3735_v61, -inf  ;;  %v3774_v40 = vsel %vm3759_vm0, %v3736_v16, -inf  ;;  %v3781_v55 = vsel %vm3759_vm0, %v3737_v17, -inf  ;;  %v4893_v61 = vunpack.i.l.bf16 %v4892_v42  ;;  %v4975_v17 = vld [vmem:[#allocation3 + $0x37] sm:$0xff] }
 0x40e   : > { %v3762_v13 = vmax.f32 %v3760_v31, %v3761_v22  ;;  %v3768_v32 = vrot.slane %v3767_v21, 4  ;;  %v3775_v15 = vrot.slane %v3774_v40, 4  ;;  %v3782_v58 = vrot.slane %v3781_v55, 4  ;;  %v3307_v34 = vld [vmem:[#allocation3 + $0xc9] sm:$0xff]  ;;  %v4897_v33 = vpop.permute.xlu2 %4896 }
 0x40f   : > { %v3275_v2 = vld [vmem:[#allocation3 + $0xc8] sm:$0xff]  ;;  %4778 = vmatmul.msk.f32.gmra.mxu3 %vm2263_vm11, %v3307_v34  ;;  %3459 = vrot.lane.b32.xlu2 %v3307_v34, %s7704_s16  ;;  %v3535_v31 = vsel %vm2263_vm11, %v4975_v17, %v4883_v30 }
 0x410   : > { %v3267_v26 = vld [vmem:[#allocation3 + $0xc7] sm:$0xff]  ;;  %v3763_v7 = vrot.slane %v3762_v13, 2  ;;  %v3769_v10 = vmax.f32 %v3767_v21, %v3768_v32  ;;  %v3776_v56 = vmax.f32 %v3774_v40, %v3775_v15  ;;  %v3783_v8 = vmax.f32 %v3781_v55, %v3782_v58  ;;  %v4902_v16 = vpop.permute.xlu0 %4901  ;;  %v4976_v34 = vld [vmem:[#allocation3 + $0x4f] sm:$0xff] }
 0x411   : > { %v4965_v62 = vpack.i.bf16 %v3275_v2, %v6964_v6  ;;  %v4960_v51 = vpack.i.bf16 %v3267_v26, %v6962_v63  ;;  %v7031_v6 = vld [vmem:[%s7599_s4] ss:$0 sm:$0xff]  ;;  %v3544_v22 = vsel %vm3541_vm9, %v3535_v31, %v4888_v14  ;;  %v4884_v40 = vunpack.i.h.bf16 %v4882_v47 }
 0x412   : > { %v3764_v37 = vmax.f32 %v3762_v13, %v3763_v7  ;;  %v3770_v5 = vrot.slane %v3769_v10, 2  ;;  %v3777_v19 = vrot.slane %v3776_v56, 2  ;;  %v3784_v38 = vrot.slane %v3783_v8, 2 }
 0x413   : > { %4966 = vrot.lane.b32.xlu1 %v4965_v62, %s7703_s26  ;;  %4961 = vrot.lane.b32.xlu0 %v4960_v51, %s5050_s21  ;;  %v3553_v55 = vsel %vm3550_vm6, %v3544_v22, %v4893_v61  ;;  %v4889_v13 = vunpack.i.h.bf16 %v4887_v4  ;;  %v4898_v32 = vunpack.i.l.bf16 %v4897_v33  ;;  %v4894_v15 = vunpack.i.h.bf16 %v4892_v42 }
 0x414   : > { %v3765_v53 = vrot.slane %v3764_v37, 1  ;;  %v3771_v46 = vmax.f32 %v3769_v10, %v3770_v5  ;;  %v3778_v44 = vmax.f32 %v3776_v56, %v3777_v19  ;;  %v3785_v11 = vmax.f32 %v3783_v8, %v3784_v38 }
 0x415   : > { %v3562_v58 = vsel %vm3559_vm15, %v3553_v55, %v4898_v32  ;;  %v4899_v5 = vunpack.i.h.bf16 %v4897_v33  ;;  %v3308_v55 = vld [vmem:[#allocation3 + $0xe1] sm:$0xff] }
 0x416   : > { %v3766_v9 = vmax.f32 %v3764_v37, %v3765_v53  ;;  %v3772_v36 = vrot.slane %v3771_v46, 1  ;;  %v3779_v35 = vrot.slane %v3778_v44, 1  ;;  %v3786_v25 = vrot.slane %v3785_v11, 1 }
 0x417   : > { %4779 = vmatmul.msk.f32.gmra.mxu3 %vm2263_vm11, %v3308_v55 }
 0x418   : > { %v3773_v43 = vmax.f32 %v3771_v46, %v3772_v36  ;;  %v3780_v3 = vmax.f32 %v3778_v44, %v3779_v35  ;;  %v3787_v24 = vmax.f32 %v3785_v11, %v3786_v25  ;;  %v3876_v57 = vadd.f32 %v7031_v6, %v3766_v9 }
 0x419   : > { %v4904_v11 = vunpack.i.h.bf16 %v4902_v16 }
 0x41a   : > { %v3877_v23 = vadd.f32 %v7031_v6, %v3773_v43  ;;  %v3878_v60 = vadd.f32 %v7031_v6, %v3780_v3  ;;  %v3879_v49 = vadd.f32 %v7031_v6, %v3787_v24  ;;  %v3892_v29 = vmax.f32 %v3876_v57, 0.0  ;;  %v3240_v57 = vld [vmem:[#allocation3 + $0x67] sm:$0xff] }
 0x41b   : > { %3521 = vrot.lane.b32.xlu1 %v3275_v2, %s5056_s23  ;;  %3489 = vrot.lane.b32.xlu0 %v3267_v26, %s5053_s28  ;;  %v3536_v2 = vsel %vm2263_vm11, %v4976_v34, %v4884_v40  ;;  %v4903_v26 = vunpack.i.l.bf16 %v4902_v16 }
 0x41c   : > { %v3893_v52 = vmax.f32 %v3877_v23, 0.0  ;;  %v3894_v28 = vmax.f32 %v3878_v60, 0.0  ;;  %v3895_v20 = vmax.f32 %v3879_v49, 0.0  ;;  %v3545_v10 = vsel %vm3541_vm9, %v3536_v2, %v4889_v13 }
 0x41d   : > { %v3554_v62 = vsel %vm3550_vm6, %v3545_v10, %v4894_v15  ;;  %v3571_v37 = vsel %vm3568_vm7, %v3562_v58, %v4903_v26 }
 0x41e   : > { %v3937_v45 = vrot.slane %v3893_v52, 7  ;;  %v3939_v27 = vrot.slane %v3894_v28, 6  ;;  %v3941_v12 = vrot.slane %v3895_v20, 5  ;;  %v3563_v44 = vsel %vm3559_vm15, %v3554_v62, %v4899_v5 }
 0x41f   : > { %v3572_v35 = vsel %vm3568_vm7, %v3563_v44, %v4904_v11 }
 0x420   : > { %v3938_v50 = vsel %vm7714_vm14, %v3937_v45, %v3892_v29 }
 0x421   : > { %v3940_v1 = vsel %vm7715_vm13, %v3939_v27, %v3938_v50  ;;  %vm4451_vm13 = vcmask 1045508  }
 0x422   : > { %v3942_v39 = vsel %vm3107_vm1, %v3941_v12, %v3940_v1 }
 0x423   : > { %3967 = vst.msk [vmem:[#allocation4 + $0x18] sm:$0xf] %vm3966_vm2, %v3942_v39  ;;  %3491 = vrot.lane.b32.xlu0 %v3292_v54, %s5053_s28  ;;  %3523 = vrot.lane.b32.xlu1 %v3300_v48, %s5056_s23  ;;  %v4912_v21 = vpop.permute.xlu2 %4911 }
 0x424   : > { %v4913_v51 = vunpack.i.l.bf16 %v4912_v21  ;;  %v4914_v24 = vunpack.i.h.bf16 %v4912_v21 }
 0x42a   : > { %v3991_v18 = vld [vmem:[#allocation4 + $0x19] sm:$0xf] }
 0x42b   : > { %4060 = vrot.lane.b32.xlu2 %v3991_v18, %s7702_s14  ;;  %v4927_v53 = vpop.permute.xlu2 %4926 }
 0x42c   : > { %v4928_v20 = vunpack.i.l.bf16 %v4927_v53  ;;  %v4929_v48 = vunpack.i.h.bf16 %v4927_v53 }
 0x433   : > { %v4942_v29 = vpop.permute.xlu2 %4941 }
 0x434   : > { %v4943_v47 = vunpack.i.l.bf16 %v4942_v29  ;;  %v4944_v31 = vunpack.i.h.bf16 %v4942_v29 }
 0x43b   : > { %v4917_v8 = vpop.permute.xlu0 %4916  ;;  %v4957_v15 = vpop.permute.xlu2 %4956 }
 0x43c   : > { %v4907_v7 = vpop.permute.xlu1 %4906  ;;  %v4918_v9 = vunpack.i.l.bf16 %v4917_v8  ;;  %v4919_v23 = vunpack.i.h.bf16 %v4917_v8  ;;  %v4958_v34 = vunpack.i.l.bf16 %v4957_v15 }
 0x43d   : > { %v4908_v56 = vunpack.i.l.bf16 %v4907_v7  ;;  %v4909_v46 = vunpack.i.h.bf16 %v4907_v7 }
 0x43e   : > { %v3537_v60 = vsel %vm2263_vm11, %v3240_v57, %v4918_v9  ;;  %v3538_v45 = vsel %vm2263_vm11, %v6944_v59, %v4919_v23 }
 0x43f   : > { %v3580_v19 = vsel %vm3577_vm8, %v3571_v37, %v4908_v56  ;;  %v3581_v3 = vsel %vm3577_vm8, %v3572_v35, %v4909_v46 }
 0x440   : > { %v3589_v38 = vsel %vm3586_vm10, %v3580_v19, %v4913_v51  ;;  %v3590_v28 = vsel %vm3586_vm10, %v3581_v3, %v4914_v24  ;;  %v4959_v19 = vunpack.i.h.bf16 %v4957_v15 }
 0x441   : > { %3659 = vmatmul.f32.gmra.mxu1 %v3589_v38 }
 0x443   : > { %v4932_v43 = vpop.permute.xlu0 %4931  ;;  %v3458_v38 = vpop.permute.xlu2 %3457 }
 0x444   : > { %v4922_v36 = vpop.permute.xlu1 %4921  ;;  %v4933_v12 = vunpack.i.l.bf16 %v4932_v43  ;;  %v4934_v14 = vunpack.i.h.bf16 %v4932_v43 }
 0x445   : > { %v4923_v25 = vunpack.i.l.bf16 %v4922_v36  ;;  %v4924_v49 = vunpack.i.h.bf16 %v4922_v36 }
 0x447   : > { %v3546_v52 = vsel %vm3541_vm9, %v3537_v60, %v4923_v25  ;;  %v3547_v50 = vsel %vm3541_vm9, %v3538_v45, %v4924_v49  ;;  %v3701_v60 = vpop.f32.mrf.mxu3 }
 0x448   : > { %v3555_v27 = vsel %vm3550_vm6, %v3546_v52, %v4928_v20  ;;  %v3556_v4 = vsel %vm3550_vm6, %v3547_v50, %v4929_v48 }
 0x449   : > { %3662 = vmatmul.f32.gmra.mxu1 %v3590_v28  ;;  %v3564_v18 = vsel %vm3559_vm15, %v3555_v27, %v4933_v12  ;;  %v3565_v16 = vsel %vm3559_vm15, %v3556_v4, %v4934_v14 }
 0x44b   : > { %v4947_v39 = vpop.permute.xlu0 %4946 }
 0x44c   : > { %v4937_v54 = vpop.permute.xlu1 %4936  ;;  %v4948_v42 = vunpack.i.l.bf16 %v4947_v39  ;;  %v4949_v21 = vunpack.i.h.bf16 %v4947_v39 }
 0x44d   : > { %v4938_v1 = vunpack.i.l.bf16 %v4937_v54  ;;  %v4939_v33 = vunpack.i.h.bf16 %v4937_v54 }
 0x44f   : > { %v3573_v30 = vsel %vm3568_vm7, %v3564_v18, %v4938_v1  ;;  %v3574_v17 = vsel %vm3568_vm7, %v3565_v16, %v4939_v33  ;;  %v3704_v52 = vpop.f32.mrf.mxu3 }
 0x450   : > { %v3582_v59 = vsel %vm3577_vm8, %v3573_v30, %v4943_v47  ;;  %v3583_v22 = vsel %vm3577_vm8, %v3574_v17, %v4944_v31 }
 0x451   : > { %v3591_v61 = vsel %vm3586_vm10, %v3582_v59, %v4948_v42  ;;  %v3592_v40 = vsel %vm3586_vm10, %v3583_v22, %v4949_v21 }
 0x452   : > { %3665 = vmatmul.f32.gmra.mxu1 %v3591_v61 }
 0x454   : > { %v4952_v13 = vpop.permute.xlu1 %4951 }
 0x455   : > { %v4953_v32 = vunpack.i.l.bf16 %v4952_v13  ;;  %v4954_v56 = vunpack.i.h.bf16 %v4952_v13 }
 0x457   : > { %v3539_v58 = vsel %vm2263_vm11, %v6953_v41, %v4953_v32  ;;  %v3540_v37 = vsel %vm2263_vm11, %v6962_v63, %v4954_v56  ;;  %v3707_v39 = vpop.f32.mrf.mxu3  ;;  %vm7716_vm11 = vmmov %vm7711_vm12 }
 0x458   : > { %v3548_v8 = vsel %vm3541_vm9, %v3539_v58, %v4958_v34  ;;  %v3549_v11 = vsel %vm3541_vm9, %v3540_v37, %v4959_v19  ;;  %vm7721_vm12 = vmmov %vm7712_vm4 }
 0x45a   : > { %3668 = vmatmul.f32.gmra.mxu1 %v3592_v40 }
 0x469   : > { %v3460_v63 = vpop.permute.xlu2 %3459 }
 0x485   : > { %v4967_v2 = vpop.permute.xlu1 %4966  ;;  %v4962_v26 = vpop.permute.xlu0 %4961 }
 0x486   : > { %v4968_v7 = vunpack.i.l.bf16 %v4967_v2  ;;  %v4963_v10 = vunpack.i.l.bf16 %v4962_v26  ;;  %v4964_v5 = vunpack.i.h.bf16 %v4962_v26  ;;  %v4969_v44 = vunpack.i.h.bf16 %v4967_v2  ;;  %v3710_v26 = vpop.f32.mrf.mxu3 }
 0x488   : > { %v3557_v62 = vsel %vm3550_vm6, %v3548_v8, %v4963_v10  ;;  %v3558_v36 = vsel %vm3550_vm6, %v3549_v11, %v4964_v5  ;;  %vm7717_vm6 = vmmov %vm7712_vm4 }
 0x489   : > { %v3566_v51 = vsel %vm3559_vm15, %v3557_v62, %v4968_v7  ;;  %v3567_v25 = vsel %vm3559_vm15, %v3558_v36, %v4969_v44 }
 0x48a   : > { %v3575_v46 = vsel %vm3568_vm7, %v3566_v51, %v3458_v38  ;;  %v3576_v3 = vsel %vm3568_vm7, %v3567_v25, %v3460_v63  ;;  %vm7718_vm7 = vmmov %vm7716_vm11 }
 0x48b   : > { %vm7720_vm3 = vmmov %vm7718_vm7 }
 0x48c   : > { %vm7722_vm14 = vmmov %vm7720_vm3 }
 0x48d   : > { %v3522_v53 = vpop.permute.xlu1 %3521  ;;  %v3490_v41 = vpop.permute.xlu0 %3489 }
 0x48e   : > { %v3584_v9 = vsel %vm3577_vm8, %v3575_v46, %v3490_v41 }
 0x48f   : > { %v3593_v35 = vsel %vm3586_vm10, %v3584_v9, %v3522_v53 }
 0x490   : > { %3671 = vmatmul.f32.gmra.mxu1 %v3593_v35 }
 0x495   : > { %v3492_v43 = vpop.permute.xlu0 %3491  ;;  %v3524_v24 = vpop.permute.xlu1 %3523 }
 0x496   : > { %v3585_v57 = vsel %vm3577_vm8, %v3576_v3, %v3492_v43 }
 0x497   : > { %v3594_v23 = vsel %vm3586_vm10, %v3585_v57, %v3524_v24  ;;  %v4184_v57 = vld [vmem:[%s7600_s5 + $0x118] sm:$0xff]  ;;  %vm7719_vm10 = vmmov %vm7712_vm4  ;;  %vm4354_vm4 = vcmask 518144  }
 0x498   : > { %3674 = vmatmul.f32.gmra.mxu1 %v3594_v23  ;;  %v4183_v23 = vld [vmem:[%s7600_s5 + $0x110] sm:$0xff]  ;;  %4272 = vmatpush.msrb.mxu2 %v4184_v57  ;;  %4361 = vst.msk [vmem:[#allocation5 + $0x38] sm:$0x7] %vm4354_vm4, %v5041_v0 }
 0x499   : > { %4355 = vst.msk [vmem:[#allocation5 + $0x8] sm:$0x7] %vm4354_vm4, %v5041_v0 }
 0x49a   : > { %4273 = vmatpush.msrb.mxu2 %v4183_v23  ;;  %v3983_v23 = vld [vmem:[#allocation4 + $0x17] sm:$0xf]  ;;  %4357 = vst.msk [vmem:[#allocation5 + $0x18] sm:$0x7] %vm4354_vm4, %v5041_v0 }
 0x49b   : > { %4359 = vst.msk [vmem:[#allocation5 + $0x28] sm:$0x7] %vm4354_vm4, %v5041_v0 }
 0x4be   : > { %v3660_v49 = vpop.f32.mrf.mxu1 }
 0x4bf   : > { %v3702_v28 = vadd.f32 %v3701_v60, %v3660_v49 }
 0x4c1   : > { %v3722_v45 = vsel %vm3541_vm9, %v3702_v28, -inf }
 0x4c6   : > { %v3663_v20 = vpop.f32.mrf.mxu1 }
 0x4c7   : > { %v3705_v29 = vadd.f32 %v3704_v52, %v3663_v20 }
 0x4c9   : > { %v3723_v27 = vsel %vm3541_vm9, %v3705_v29, -inf }
 0x4ca   : > { %v3724_v50 = vmax.f32 %v3722_v45, %v3723_v27 }
 0x4cc   : > { %v3738_v12 = vrot.slane %v3724_v50, 2  ;;  %v3739_v54 = vrot.slane %v3724_v50, 4  ;;  %v3740_v48 = vrot.slane %v3724_v50, 6  ;;  %v3788_v1 = vsel %vm3759_vm0, %v3724_v50, -inf  ;;  %v4182_v50 = vld [vmem:[%s7600_s5 + $0x108] sm:$0xff] }
 0x4cd   : > { %v3789_v47 = vrot.slane %v3788_v1, 4  ;;  %4274 = vmatpush.msrb.mxu2 %v4182_v50 }
 0x4ce   : > { %v3795_v18 = vsel %vm3759_vm0, %v3738_v12, -inf  ;;  %v3802_v4 = vsel %vm3759_vm0, %v3739_v54, -inf  ;;  %v3809_v33 = vsel %vm3759_vm0, %v3740_v48, -inf }
 0x4cf   : > { %v3790_v42 = vmax.f32 %v3788_v1, %v3789_v47  ;;  %v3796_v30 = vrot.slane %v3795_v18, 4  ;;  %v3803_v14 = vrot.slane %v3802_v4, 4  ;;  %v3810_v59 = vrot.slane %v3809_v33, 4  ;;  %v3666_v61 = vpop.f32.mrf.mxu1 }
 0x4d0   : > { %v3708_v2 = vadd.f32 %v3707_v39, %v3666_v61 }
 0x4d1   : > { %v3791_v16 = vrot.slane %v3790_v42, 2  ;;  %v3797_v17 = vmax.f32 %v3795_v18, %v3796_v30  ;;  %v3804_v31 = vmax.f32 %v3802_v4, %v3803_v14  ;;  %v3811_v22 = vmax.f32 %v3809_v33, %v3810_v59  ;;  %v4181_v18 = vld [vmem:[%s7600_s5 + $0x100] sm:$0xff] }
 0x4d2   : > { %v3725_v38 = vsel %vm3541_vm9, %v3708_v2, -inf  ;;  %4275 = vmatpush.msrb.mxu2 %v4181_v18 }
 0x4d3   : > { %v3792_v21 = vmax.f32 %v3790_v42, %v3791_v16  ;;  %v3798_v40 = vrot.slane %v3797_v17, 2  ;;  %v3805_v55 = vrot.slane %v3804_v31, 2  ;;  %v3812_v13 = vrot.slane %v3811_v22, 2 }
 0x4d5   : > { %v3793_v32 = vrot.slane %v3792_v21, 1  ;;  %v3799_v15 = vmax.f32 %v3797_v17, %v3798_v40  ;;  %v3806_v58 = vmax.f32 %v3804_v31, %v3805_v55  ;;  %v3813_v34 = vmax.f32 %v3811_v22, %v3812_v13 }
 0x4d7   : > { %v3794_v7 = vmax.f32 %v3792_v21, %v3793_v32  ;;  %v3800_v10 = vrot.slane %v3799_v15, 1  ;;  %v3807_v56 = vrot.slane %v3806_v58, 1  ;;  %v3814_v8 = vrot.slane %v3813_v34, 1  ;;  %v3669_v62 = vpop.f32.mrf.mxu1 }
 0x4d8   : > { %v3711_v51 = vadd.f32 %v3710_v26, %v3669_v62 }
 0x4d9   : > { %v3801_v37 = vmax.f32 %v3799_v15, %v3800_v10  ;;  %v3808_v5 = vmax.f32 %v3806_v58, %v3807_v56  ;;  %v3815_v19 = vmax.f32 %v3813_v34, %v3814_v8  ;;  %v3880_v41 = vadd.f32 %v7031_v6, %v3794_v7 }
 0x4da   : > { %v3726_v53 = vsel %vm3541_vm9, %v3711_v51, -inf }
 0x4db   : > { %v3881_v46 = vadd.f32 %v7031_v6, %v3801_v37  ;;  %v3882_v44 = vadd.f32 %v7031_v6, %v3808_v5  ;;  %v3883_v11 = vadd.f32 %v7031_v6, %v3815_v19  ;;  %v3727_v9 = vmax.f32 %v3725_v38, %v3726_v53 }
 0x4dc   : > { %v3896_v60 = vmax.f32 %v3880_v41, 0.0 }
 0x4dd   : > { %v3897_v36 = vmax.f32 %v3881_v46, 0.0  ;;  %v3898_v35 = vmax.f32 %v3882_v44, 0.0  ;;  %v3899_v25 = vmax.f32 %v3883_v11, 0.0  ;;  %v3741_v63 = vrot.slane %v3727_v9, 2  ;;  %v3975_v46 = vld [vmem:[#allocation4 + $0x8] sm:$0xf] }
 0x4de   : > { %v3742_v43 = vrot.slane %v3727_v9, 4  ;;  %v3743_v3 = vrot.slane %v3727_v9, 6  ;;  %v3816_v24 = vsel %vm3759_vm0, %v3727_v9, -inf  ;;  %v3976_v9 = vld [vmem:[#allocation4 + $0x18] sm:$0xf] }
 0x4df   : > { %v3943_v49 = vrot.slane %v3897_v36, 7  ;;  %v3945_v52 = vrot.slane %v3898_v35, 6  ;;  %v3817_v28 = vrot.slane %v3816_v24, 4  ;;  %v3947_v20 = vrot.slane %v3899_v25, 5  ;;  %v3979_v25 = vld [vmem:[#allocation4 + $0x9] sm:$0xf] }
 0x4e0   : > { %v3823_v29 = vsel %vm3759_vm0, %v3741_v63, -inf  ;;  %v3830_v45 = vsel %vm3759_vm0, %v3742_v43, -inf  ;;  %v3837_v27 = vsel %vm3759_vm0, %v3743_v3, -inf }
 0x4e1   : > { %v3944_v12 = vsel %vm7716_vm11, %v3943_v49, %v3896_v60  ;;  %v3818_v54 = vmax.f32 %v3816_v24, %v3817_v28  ;;  %v3824_v48 = vrot.slane %v3823_v29, 4  ;;  %v3831_v1 = vrot.slane %v3830_v45, 4  ;;  %v3713_v49 = vpop.f32.mrf.mxu3 }
 0x4e2   : > { %v3946_v39 = vsel %vm7717_vm6, %v3945_v52, %v3944_v12  ;;  %v3838_v47 = vrot.slane %v3837_v27, 4  ;;  %v3980_v52 = vld [vmem:[#allocation4 + $0x19] sm:$0xf] }
 0x4e3   : > { %v3948_v4 = vsel %vm3107_vm1, %v3947_v20, %v3946_v39  ;;  %v3819_v33 = vrot.slane %v3818_v54, 2  ;;  %v3825_v42 = vmax.f32 %v3823_v29, %v3824_v48  ;;  %v3832_v30 = vmax.f32 %v3830_v45, %v3831_v1  ;;  %v3999_v1 = vld [vmem:[#allocation4 + $0x57] sm:$0xf] }
 0x4e4   : > { %3968 = vst.msk [vmem:[#allocation4 + $0x28] sm:$0xf] %vm3966_vm2, %v3948_v4  ;;  %v3839_v14 = vmax.f32 %v3837_v27, %v3838_v47 }
 0x4e5   : > { %v3820_v59 = vmax.f32 %v3818_v54, %v3819_v33  ;;  %v3826_v61 = vrot.slane %v3825_v42, 2  ;;  %v3833_v16 = vrot.slane %v3832_v30, 2  ;;  %v4007_v33 = vld [vmem:[#allocation4 + $0x59] sm:$0xf] }
 0x4e6   : > { %v3840_v17 = vrot.slane %v3839_v14, 2  ;;  %4199 = vst [vmem:[#allocation1 + $0x31] ss:$2 sm:$0xff] %v4007_v33 }
 0x4e7   : > { %v3821_v31 = vrot.slane %v3820_v59, 1  ;;  %v3827_v22 = vmax.f32 %v3825_v42, %v3826_v61  ;;  %v3834_v21 = vmax.f32 %v3832_v30, %v3833_v16 }
 0x4e8   : > { %v3841_v40 = vmax.f32 %v3839_v14, %v3840_v17 }
 0x4e9   : > { %v3822_v55 = vmax.f32 %v3820_v59, %v3821_v31  ;;  %v3828_v13 = vrot.slane %v3827_v22, 1  ;;  %v3835_v32 = vrot.slane %v3834_v21, 1  ;;  %v3716_v20 = vpop.f32.mrf.mxu3 }
 0x4ea   : > { %v3842_v15 = vrot.slane %v3841_v40, 1 }
 0x4eb   : > { %v3829_v58 = vmax.f32 %v3827_v22, %v3828_v13  ;;  %v3836_v34 = vmax.f32 %v3834_v21, %v3835_v32  ;;  %v3996_v2 = vld [vmem:[#allocation4 + $0x27] sm:$0xf]  ;;  %v3884_v56 = vadd.f32 %v7031_v6, %v3822_v55 }
 0x4ec   : > { %v3992_v26 = vld [vmem:[#allocation4 + $0x29] sm:$0xf]  ;;  %v3843_v7 = vmax.f32 %v3841_v40, %v3842_v15  ;;  %4076 = vrot.lane.b32.xlu1 %v3996_v2, %s7703_s26 }
 0x4ed   : > { %4062 = vrot.lane.b32.xlu0 %v3992_v26, %s7702_s14  ;;  %v4004_v10 = vld [vmem:[#allocation4 + $0x29] sm:$0xf]  ;;  %v3885_v8 = vadd.f32 %v7031_v6, %v3829_v58  ;;  %v3886_v62 = vadd.f32 %v7031_v6, %v3836_v34  ;;  %v3900_v38 = vmax.f32 %v3884_v56, 0.0 }
 0x4ee   : > { %4189 = vst [vmem:[#allocation1 + $0x10] ss:$2 sm:$0xff] %v4004_v10  ;;  %v3887_v51 = vadd.f32 %v7031_v6, %v3843_v7  ;;  %v3984_v24 = vld [vmem:[#allocation4 + $0x27] sm:$0xf] }
 0x4ef   : > { %v3901_v37 = vmax.f32 %v3885_v8, 0.0  ;;  %v3902_v5 = vmax.f32 %v3886_v62, 0.0  ;;  %v4000_v60 = vld [vmem:[#allocation4 + $0x28] sm:$0xf] }
 0x4f0   : > { %v3903_v19 = vmax.f32 %v3887_v51, 0.0 }
 0x4f1   : > { %v3949_v53 = vrot.slane %v3901_v37, 7  ;;  %v3951_v41 = vrot.slane %v3902_v5, 6 }
 0x4f2   : > { %v3953_v11 = vrot.slane %v3903_v19, 5 }
 0x4f3   : > { %v3950_v44 = vsel %vm7718_vm7, %v3949_v53, %v3900_v38 }
 0x4f4   : > { %v3952_v36 = vsel %vm7719_vm10, %v3951_v41, %v3950_v44  ;;  %4014 = vrot.lane.b32.xlu1 %v3976_v9, %s7702_s14 }
 0x4f5   : > { %4012 = vrot.lane.b32.xlu0 %v3975_v46, %s7702_s14  ;;  %v3954_v35 = vsel %vm3107_vm1, %v3953_v11, %v3952_v36 }
 0x4f6   : > { %3969 = vst.msk [vmem:[#allocation4 + $0x38] sm:$0xf] %vm3966_vm2, %v3954_v35 }
 0x4fc   : > { %4028 = vrot.lane.b32.xlu1 %v3979_v25, %s7703_s26 }
 0x4fd   : > { %v4001_v63 = vld [vmem:[#allocation4 + $0x38] sm:$0xf] }
 0x4fe   : > { %v3997_v43 = vld [vmem:[#allocation4 + $0x37] sm:$0xf]  ;;  %4094 = vrot.lane.b32.xlu0 %v4001_v63, %s5053_s28 }
 0x4ff   : > { %v4005_v3 = vld [vmem:[#allocation4 + $0x39] sm:$0xf]  ;;  %4078 = vrot.lane.b32.xlu2 %v3997_v43, %s7703_s26 }
 0x500   : > { %4191 = vst [vmem:[#allocation1 + $0x11] ss:$2 sm:$0xff] %v4005_v3  ;;  %v3993_v45 = vld [vmem:[#allocation4 + $0x39] sm:$0xf] }
 0x501   : > { %v3985_v33 = vld [vmem:[#allocation4 + $0x37] sm:$0xf] }
 0x504   : > { %4046 = vrot.lane.b32.xlu1 %v3984_v24, %s5053_s28 }
 0x506   : > { %4044 = vrot.lane.b32.xlu0 %v3983_v23, %s5053_s28 }
 0x507   : > { %v4202_v57 = vld.sshfl [vmem:[#allocation1 + $0x10] sm:$0xff pattern:$0x75316420]  ;;  %4092 = vrot.lane.b32.xlu2 %v4000_v60, %s5053_s28  ;;  %v4164_v60 = vld [vmem:[%s7600_s5 + $0x78] sm:$0xff] }
 0x508   : > { %4780 = vmatmul.msk.f32.vlgmr.msrb.gmra.mxu2 %vm3541_vm9, %v4202_v57  ;;  %4214 = vmatpush.msrb.mxu3 %v4164_v60  ;;  %v4174_v60 = vld [vmem:[%s7600_s5 + $0xc8] sm:$0xff] }
 0x50d   : > { %v3672_v28 = vpop.f32.mrf.mxu1 }
 0x50e   : > { %v3714_v29 = vadd.f32 %v3713_v49, %v3672_v28  ;;  %v3982_v49 = vld [vmem:[#allocation4 + $0x39] sm:$0xf] }
 0x50f   : > { %4030 = vrot.lane.b32.xlu2 %v3980_v52, %s7703_s26  ;;  %v3978_v52 = vld [vmem:[#allocation4 + $0x38] sm:$0xf] }
 0x510   : > { %v3728_v12 = vsel %vm3541_vm9, %v3714_v29, -inf  ;;  %v4163_v28 = vld [vmem:[%s7600_s5 + $0x70] sm:$0xff]  ;;  %v3977_v29 = vld [vmem:[#allocation4 + $0x28] sm:$0xf] }
 0x511   : > { %4215 = vmatpush.msrb.mxu3 %v4163_v28  ;;  %v4172_v28 = vld [vmem:[%s7600_s5 + $0xb8] sm:$0xff] }
 0x515   : > { %v3675_v27 = vpop.f32.mrf.mxu1 }
 0x516   : > { %v3717_v50 = vadd.f32 %v3716_v20, %v3675_v27  ;;  %v4161_v27 = vld [vmem:[%s7600_s5 + $0x60] sm:$0xff] }
 0x517   : > { %4064 = vrot.lane.b32.xlu2 %v3993_v45, %s7702_s14  ;;  %v4162_v45 = vld [vmem:[%s7600_s5 + $0x68] sm:$0xff] }
 0x518   : > { %v3729_v54 = vsel %vm3541_vm9, %v3717_v50, -inf  ;;  %4216 = vmatpush.msrb.mxu3 %v4162_v45  ;;  %v4160_v50 = vld [vmem:[%s7600_s5 + $0x58] sm:$0xff] }
 0x519   : > { %v3730_v48 = vmax.f32 %v3728_v12, %v3729_v54  ;;  %v4003_v12 = vld [vmem:[#allocation4 + $0x58] sm:$0xf]  ;;  %v3981_v54 = vld [vmem:[#allocation4 + $0x29] sm:$0xf] }
 0x51a   : > { %4217 = vmatpush.msrb.mxu3 %v4161_v27  ;;  %v4169_v27 = vld [vmem:[%s7600_s5 + $0xa0] sm:$0xff] }
 0x51b   : > { %v3744_v39 = vrot.slane %v3730_v48, 2  ;;  %v3745_v47 = vrot.slane %v3730_v48, 4  ;;  %v3746_v18 = vrot.slane %v3730_v48, 6  ;;  %v3844_v4 = vsel %vm3759_vm0, %v3730_v48, -inf  ;;  %v4159_v48 = vld [vmem:[%s7600_s5 + $0x50] sm:$0xff] }
 0x51c   : > { %v3845_v42 = vrot.slane %v3844_v4, 4  ;;  %4218 = vmatpush.msrb.mxu3 %v4160_v50 }
 0x51d   : > { %v3851_v30 = vsel %vm3759_vm0, %v3744_v39, -inf  ;;  %v3858_v14 = vsel %vm3759_vm0, %v3745_v47, -inf  ;;  %v3865_v59 = vsel %vm3759_vm0, %v3746_v18, -inf  ;;  %v4157_v39 = vld [vmem:[%s7600_s5 + $0x40] sm:$0xff]  ;;  %v4156_v47 = vld [vmem:[%s7600_s5 + $0x38] sm:$0xff]  ;;  %vm4312_vm0 = vcmask 517120  }
 0x51e   : > { %v3846_v61 = vmax.f32 %v3844_v4, %v3845_v42  ;;  %v3852_v16 = vrot.slane %v3851_v30, 4  ;;  %v3859_v17 = vrot.slane %v3858_v14, 4  ;;  %v3866_v31 = vrot.slane %v3865_v59, 4  ;;  %4219 = vmatpush.msrb.mxu3 %v4159_v48  ;;  %v4155_v4 = vld [vmem:[%s7600_s5 + $0x30] sm:$0xff]  ;;  %v4061_v42 = vpop.permute.xlu2 %4060 }
 0x51f   : > { %4082 = vrot.lane.b32.xlu2 %v3999_v1, %s7703_s26  ;;  %v4158_v1 = vld [vmem:[%s7600_s5 + $0x48] sm:$0xff]  ;;  %v4167_v48 = vld [vmem:[%s7600_s5 + $0x90] sm:$0xff] }
 0x520   : > { %v3847_v22 = vrot.slane %v3846_v61, 2  ;;  %v3853_v21 = vmax.f32 %v3851_v30, %v3852_v16  ;;  %v3860_v40 = vmax.f32 %v3858_v14, %v3859_v17  ;;  %v3867_v55 = vmax.f32 %v3865_v59, %v3866_v31  ;;  %4220 = vmatpush.msrb.mxu3 %v4158_v1  ;;  %v4154_v30 = vld [vmem:[%s7600_s5 + $0x28] sm:$0xff]  ;;  %v4153_v14 = vld [vmem:[%s7600_s5 + $0x20] sm:$0xff]  ;;  %v4152_v59 = vld [vmem:[%s7600_s5 + $0x18] sm:$0xff] }
 0x521   : > { %v4166_v1 = vld [vmem:[%s7600_s5 + $0x88] sm:$0xff] }
 0x522   : > { %v3848_v13 = vmax.f32 %v3846_v61, %v3847_v22  ;;  %v3854_v32 = vrot.slane %v3853_v21, 2  ;;  %v3861_v15 = vrot.slane %v3860_v40, 2  ;;  %v3868_v58 = vrot.slane %v3867_v55, 2  ;;  %4221 = vmatpush.msrb.mxu3 %v4157_v39  ;;  %v4151_v61 = vld [vmem:[%s7600_s5 + $0x10] sm:$0xff]  ;;  %v4150_v22 = vld [vmem:[%s7600_s5 + $0x8] sm:$0xff] }
 0x524   : > { %v3849_v34 = vrot.slane %v3848_v13, 1  ;;  %v3855_v2 = vmax.f32 %v3853_v21, %v3854_v32  ;;  %v3862_v26 = vmax.f32 %v3860_v40, %v3861_v15  ;;  %v3869_v7 = vmax.f32 %v3867_v55, %v3868_v58  ;;  %4222 = vmatpush.msrb.mxu3 %v4156_v47  ;;  %v4149_v21 = vld [vmem:[%s7600_s5] sm:$0xff] }
 0x525   : > { %v3988_v32 = vld [vmem:[#allocation4 + $0x28] sm:$0xf] }
 0x526   : > { %v3850_v10 = vmax.f32 %v3848_v13, %v3849_v34  ;;  %v3856_v56 = vrot.slane %v3855_v2, 1  ;;  %v3863_v8 = vrot.slane %v3862_v26, 1  ;;  %v3870_v62 = vrot.slane %v3869_v7, 1  ;;  %4223 = vmatpush.msrb.mxu3 %v4155_v4  ;;  %v3987_v34 = vld [vmem:[#allocation4 + $0x18] sm:$0xf]  ;;  %v4165_v47 = vld [vmem:[%s7600_s5 + $0x80] sm:$0xff] }
 0x528   : > { %v3857_v51 = vmax.f32 %v3855_v2, %v3856_v56  ;;  %v3864_v37 = vmax.f32 %v3862_v26, %v3863_v8  ;;  %v3871_v5 = vmax.f32 %v3869_v7, %v3870_v62  ;;  %v3888_v19 = vadd.f32 %v7031_v6, %v3850_v10  ;;  %4224 = vmatpush.msrb.mxu3 %v4154_v30  ;;  %v3971_v2 = vld [vmem:[#allocation4 + $0x7] sm:$0xf]  ;;  %v3972_v56 = vld [vmem:[#allocation4 + $0x17] sm:$0xf] }
 0x529   : > { %v4116_v7 = vsel %vm3541_vm9, %v3987_v34, %v4061_v42  ;;  %v3989_v30 = vld [vmem:[#allocation4 + $0x38] sm:$0xf] }
 0x52a   : > { %v3889_v38 = vadd.f32 %v7031_v6, %v3857_v51  ;;  %v3890_v53 = vadd.f32 %v7031_v6, %v3864_v37  ;;  %v3891_v41 = vadd.f32 %v7031_v6, %v3871_v5  ;;  %v3904_v9 = vmax.f32 %v3888_v19, 0.0  ;;  %4225 = vmatpush.msrb.mxu3 %v4153_v14 }
 0x52c   : > { %v3905_v46 = vmax.f32 %v3889_v38, 0.0  ;;  %v3906_v44 = vmax.f32 %v3890_v53, 0.0  ;;  %v3907_v11 = vmax.f32 %v3891_v41, 0.0  ;;  %4226 = vmatpush.msrb.mxu3 %v4152_v59 }
 0x52e   : > { %v3955_v36 = vrot.slane %v3905_v46, 7  ;;  %v3957_v35 = vrot.slane %v3906_v44, 6  ;;  %v3959_v63 = vrot.slane %v3907_v11, 5  ;;  %4227 = vmatpush.msrb.mxu3 %v4151_v61 }
 0x530   : > { %v3956_v25 = vsel %vm7720_vm3, %v3955_v36, %v3904_v9  ;;  %4228 = vmatpush.msrb.mxu3 %v4150_v22 }
 0x531   : > { %v3958_v43 = vsel %vm7721_vm12, %v3957_v35, %v3956_v25 }
 0x532   : > { %v3960_v3 = vsel %vm3107_vm1, %v3959_v63, %v3958_v43  ;;  %4229 = vmatpush.msrb.mxu3 %v4149_v21  ;;  %vm4144_vm1 = vcmask 1043456   ;;  %v4180_v43 = vld [vmem:[%s7600_s5 + $0xf8] sm:$0xff] }
 0x533   : > { %3970 = vst.msk [vmem:[#allocation4 + $0x48] sm:$0xf] %vm3966_vm2, %v3960_v3  ;;  %v4179_v3 = vld [vmem:[%s7600_s5 + $0xf0] sm:$0xff]  ;;  %vm7723_vm2 = vmmov %vm7720_vm3 }
 0x534   : > { %4237 = vmatpush.msra.mxu3 %v4180_v43 }
 0x536   : > { %4238 = vmatpush.msra.mxu3 %v4179_v3 }
 0x53a   : > { %v4002_v24 = vld [vmem:[#allocation4 + $0x48] sm:$0xf] }
 0x53b   : > { %v3998_v57 = vld [vmem:[#allocation4 + $0x47] sm:$0xf]  ;;  %4096 = vrot.lane.b32.xlu2 %v4002_v24, %s5053_s28  ;;  %v4178_v24 = vld [vmem:[%s7600_s5 + $0xe8] sm:$0xff] }
 0x53c   : > { %v3994_v23 = vld [vmem:[#allocation4 + $0x49] sm:$0xf]  ;;  %4080 = vrot.lane.b32.xlu1 %v3998_v57, %s7703_s26  ;;  %4239 = vmatpush.msra.mxu3 %v4178_v24 }
 0x53d   : > { %v4006_v6 = vld [vmem:[#allocation4 + $0x49] sm:$0xf]  ;;  %4066 = vrot.lane.b32.xlu0 %v3994_v23, %s7702_s14  ;;  %v4176_v23 = vld [vmem:[%s7600_s5 + $0xd8] sm:$0xff] }
 0x53e   : > { %4197 = vst [vmem:[#allocation1 + $0x30] ss:$2 sm:$0xff] %v4006_v6  ;;  %v3986_v18 = vld [vmem:[#allocation4 + $0x47] sm:$0xf]  ;;  %v4175_v6 = vld [vmem:[%s7600_s5 + $0xd0] sm:$0xff] }
 0x53f   : > { %v4177_v57 = vld [vmem:[%s7600_s5 + $0xe0] sm:$0xff] }
 0x540   : > { %4240 = vmatpush.msra.mxu3 %v4177_v57 }
 0x542   : > { %4241 = vmatpush.msra.mxu3 %v4176_v23 }
 0x543   : > { %4034 = vrot.lane.b32.xlu2 %v3982_v49, %s7703_s26  ;;  %v4173_v49 = vld [vmem:[%s7600_s5 + $0xc0] sm:$0xff] }
 0x544   : > { %4018 = vrot.lane.b32.xlu1 %v3978_v52, %s7702_s14  ;;  %4242 = vmatpush.msra.mxu3 %v4175_v6 }
 0x545   : > { %v4205_v20 = vld.sshfl [vmem:[#allocation1 + $0x30] sm:$0xff pattern:$0x75316420]  ;;  %4016 = vrot.lane.b32.xlu0 %v3977_v29, %s7702_s14  ;;  %v4170_v29 = vld [vmem:[%s7600_s5 + $0xa8] sm:$0xff]  ;;  %s323_s14 = sand.u32 1, %s5031_s10  }
 0x546   : > { %4781 = vmatmul.msk.f32.gmra.mxu2 %vm3541_vm9, %v4205_v20  ;;  %4243 = vmatpush.msra.mxu3 %v4174_v60  ;;  %v4171_v20 = vld [vmem:[%s7600_s5 + $0xb0] sm:$0xff]  ;;  %s4666_s21 = scalar_lea.sflag [#allocation7], %s323_s14 }
 0x548   : > { %4244 = vmatpush.msra.mxu3 %v4173_v49 }
 0x54a   : > { %4245 = vmatpush.msra.mxu3 %v4172_v28 }
 0x54c   : > { %4032 = vrot.lane.b32.xlu1 %v3981_v54, %s7703_s26  ;;  %4246 = vmatpush.msra.mxu3 %v4171_v20  ;;  %v4168_v54 = vld [vmem:[%s7600_s5 + $0x98] sm:$0xff] }
 0x54d   : > { %4098 = vrot.lane.b32.xlu0 %v4003_v12, %s5053_s28 }
 0x54e   : > { %4247 = vmatpush.msra.mxu3 %v4170_v29 }
 0x550   : > { %4248 = vmatpush.msra.mxu3 %v4169_v27 }
 0x552   : > { %4249 = vmatpush.msra.mxu3 %v4168_v54 }
 0x554   : > { %4050 = vrot.lane.b32.xlu1 %v3986_v18, %s5053_s28  ;;  %4250 = vmatpush.msra.mxu3 %v4167_v48 }
 0x555   : > { %4048 = vrot.lane.b32.xlu0 %v3985_v33, %s5053_s28  ;;  %v3990_v33 = vld [vmem:[#allocation4 + $0x48] sm:$0xf]  ;;  %s324_s28 = scalar_lea.vmem [#allocation6], %s323_s14 }
 0x556   : > { %4251 = vmatpush.msra.mxu3 %v4166_v1  ;;  %s4676_s22 = sshll.u32 %s324_s28, 4  ;;  %s4677_s22 = int_to_ptr.vmem [resolvable:$true] %s4676_s22 }
 0x558   : > { %4252 = vmatpush.msra.mxu3 %v4165_v47 }
 0x559   : > { %v4079_v31 = vpop.permute.xlu2 %4078 }
 0x55e   : > { %v4077_v16 = vpop.permute.xlu1 %4076 }
 0x55f   : > { %v4063_v17 = vpop.permute.xlu0 %4062  ;;  %v4120_v10 = vsel %vm3559_vm15, %v4116_v7, %v4077_v16 }
 0x560   : > { %v4117_v58 = vsel %vm3541_vm9, %v3988_v32, %v4063_v17  ;;  %v3974_v17 = vld [vmem:[#allocation4 + $0x37] sm:$0xf] }
 0x561   : > { %v4093_v13 = vpop.permute.xlu2 %4092  ;;  %v4121_v8 = vsel %vm3559_vm15, %v4117_v58, %v4079_v31 }
 0x562   : > { %v4124_v19 = vsel %vm3577_vm8, %v4120_v10, %v4093_v13  ;;  %v3973_v13 = vld [vmem:[#allocation4 + $0x27] sm:$0xf] }
 0x563   : > { %v4140_v11 = vrot.slane %v4124_v19, 4 }
 0x566   : > { %v4015_v40 = vpop.permute.xlu1 %4014 }
 0x567   : > { %v4013_v55 = vpop.permute.xlu0 %4012  ;;  %v4105_v62 = vsel %vm3541_vm9, %v3972_v56, %v4015_v40 }
 0x568   : > { %v4104_v51 = vsel %vm3541_vm9, %v3971_v2, %v4013_v55 }
 0x569   : > { %v4031_v37 = vpop.permute.xlu2 %4030 }
 0x56a   : > { %v4109_v38 = vsel %vm3559_vm15, %v4105_v62, %v4031_v37 }
 0x56e   : > { %v4029_v15 = vpop.permute.xlu1 %4028 }
 0x56f   : > { %v4108_v53 = vsel %vm3559_vm15, %v4104_v51, %v4029_v15  ;;  %v4393_v51 = vld [vmem:[#allocation5 + $0x39] sm:$0x3] }
 0x570   : > { %v4095_v26 = vpop.permute.xlu0 %4094 }
 0x571   : > { %v4125_v5 = vsel %vm3577_vm8, %v4121_v8, %v4095_v26  ;;  %v4065_v52 = vpop.permute.xlu2 %4064 }
 0x572   : > { %v4141_v41 = vrot.slane %v4125_v5, 4  ;;  %v4118_v61 = vsel %vm3541_vm9, %v3989_v30, %v4065_v52 }
 0x576   : > { %v4047_v46 = vpop.permute.xlu1 %4046 }
 0x577   : > { %v4113_v44 = vsel %vm3577_vm8, %v4109_v38, %v4047_v46 }
 0x578   : > { %v4146_v9 = vsel %vm4144_vm1, %v4113_v44, %v4141_v41  ;;  %v4045_v36 = vpop.permute.xlu0 %4044 }
 0x579   : > { %4187 = vst [vmem:[#allocation1 + $0x1] ss:$2 sm:$0xff] %v4146_v9  ;;  %v4112_v35 = vsel %vm3577_vm8, %v4108_v53, %v4045_v36  ;;  %v4083_v12 = vpop.permute.xlu2 %4082 }
 0x57a   : > { %v4145_v25 = vsel %vm4144_vm1, %v4112_v35, %v4140_v11 }
 0x57b   : > { %4185 = vst [vmem:[#allocation1] ss:$2 sm:$0xff] %v4145_v25 }
 0x582   : > { %v4200_v63 = vld.sshfl [vmem:[#allocation1] sm:$0xff pattern:$0x75316420]  ;;  %v4201_v0 = vld.sshfl [vmem:[#allocation1 + $0x8] sm:$0xff pattern:$0x75316420] }
 0x583   : > { %4230 = vmatmul.f32.vlgmr.msrb.gmra.mxu3 %v4200_v63 }
 0x58b   : > { %v4277_v46 = vpop.f32.mrf.mxu2 }
 0x595   : > { %v4097_v4 = vpop.permute.xlu2 %4096 }
 0x59d   : > { %v4035_v55 = vpop.permute.xlu2 %4034 }
 0x5ae   : > { %v4081_v45 = vpop.permute.xlu1 %4080 }
 0x5af   : > { %v4067_v50 = vpop.permute.xlu0 %4066  ;;  %v4122_v16 = vsel %vm3559_vm15, %v4118_v61, %v4081_v45 }
 0x5b0   : > { %v4119_v14 = vsel %vm3541_vm9, %v3990_v33, %v4067_v50  ;;  %v4126_v40 = vsel %vm3577_vm8, %v4122_v16, %v4097_v4 }
 0x5b1   : > { %v4123_v31 = vsel %vm3559_vm15, %v4119_v14, %v4083_v12  ;;  %v4142_v2 = vrot.slane %v4126_v40, 4 }
 0x5b6   : > { %v4019_v39 = vpop.permute.xlu1 %4018 }
 0x5b7   : > { %v4017_v18 = vpop.permute.xlu0 %4016  ;;  %v4107_v22 = vsel %vm3541_vm9, %v3974_v17, %v4019_v39  ;;  %v4972_v17 = vld [vmem:[%s7601_s6] ss:$0 sm:$0xff] }
 0x5b8   : > { %v4106_v32 = vsel %vm3541_vm9, %v3973_v13, %v4017_v18  ;;  %v4111_v58 = vsel %vm3559_vm15, %v4107_v22, %v4035_v55  ;;  %vm4289_vm9 = vcmask 519168  }
 0x5be   : > { %v4033_v42 = vpop.permute.xlu1 %4032 }
 0x5bf   : > { %v4099_v59 = vpop.permute.xlu0 %4098  ;;  %v4110_v26 = vsel %vm3559_vm15, %v4106_v32, %v4033_v42 }
 0x5c0   : > { %v4127_v21 = vsel %vm3577_vm8, %v4123_v31, %v4099_v59 }
 0x5c1   : > { %v4143_v15 = vrot.slane %v4127_v21, 4 }
 0x5c6   : > { %v4051_v34 = vpop.permute.xlu1 %4050 }
 0x5c7   : > { %v4049_v7 = vpop.permute.xlu0 %4048  ;;  %v4115_v10 = vsel %vm3577_vm8, %v4111_v58, %v4051_v34 }
 0x5c8   : > { %v4114_v56 = vsel %vm3577_vm8, %v4110_v26, %v4049_v7  ;;  %v4148_v8 = vsel %vm4144_vm1, %v4115_v10, %v4143_v15  ;;  %vm4300_vm8 = vcmask 1041408  }
 0x5c9   : > { %v4147_v62 = vsel %vm4144_vm1, %v4114_v56, %v4142_v2  ;;  %4195 = vst [vmem:[#allocation1 + $0x21] ss:$2 sm:$0xff] %v4148_v8  ;;  %v4280_v43 = vpop.f32.mrf.mxu2 }
 0x5ca   : > { %4193 = vst [vmem:[#allocation1 + $0x20] ss:$2 sm:$0xff] %v4147_v62 }
 0x5d1   : > { %v4203_v37 = vld.sshfl [vmem:[#allocation1 + $0x20] sm:$0xff pattern:$0x75316420]  ;;  %v4204_v5 = vld.sshfl [vmem:[#allocation1 + $0x28] sm:$0xff pattern:$0x75316420] }
 0x5d2   : > { %4233 = vmatmul.f32.gmra.mxu3 %v4203_v37  ;;  %4535 = vst [vmem:[#allocation1 + $0x21] ss:$4 sm:$0xff] %v4393_v51  ;;  %v4472_v37 = vld [vmem:[%s7602_s7 + $0x78] sm:$0xff] }
 0x5d3   : > { %4547 = vmatpush.msrb.mxu1 %v4472_v37  ;;  %v4474_v37 = vld [vmem:[%s7602_s7 + $0x88] sm:$0xff] }
 0x5da   : > { %4253 = vmatmul.f32.vlgmr.msra.gmra.mxu3 %v4201_v0 }
 0x5e2   : > { %4256 = vmatmul.f32.gmra.mxu3 %v4204_v5 }
 0x606   : > { %v4231_v19 = vpop.f32.mrf.mxu3 }
 0x655   : > { %v4234_v38 = vpop.f32.mrf.mxu3 }
 0x65d   : > { %v4254_v53 = vpop.f32.mrf.mxu3 }
 0x65e   : > { %v4255_v41 = vadd.f32 %v4254_v53, %v4231_v19 }
 0x660   : > { %v4278_v44 = vadd.f32 %v4277_v46, %v4255_v41 }
 0x662   : > { %v4285_v11 = vrot.slane %v4278_v44, 4  ;;  %v4290_v9 = vsel %vm4289_vm9, %v4278_v44, -inf }
 0x664   : > { %v4291_v36 = vsel %vm4289_vm9, %v4285_v11, -inf  ;;  %v4391_v11 = vld [vmem:[#allocation5 + $0x38] sm:$0x3] }
 0x665   : > { %v4292_v35 = vmax.f32 %v4290_v9, %v4291_v36  ;;  %v4257_v25 = vpop.f32.mrf.mxu3 }
 0x666   : > { %v4258_v63 = vadd.f32 %v4257_v25, %v4234_v38  ;;  %v4377_v25 = vld [vmem:[#allocation5 + $0x8] sm:$0x3] }
 0x667   : > { %v4298_v3 = vrot.slane %v4292_v35, 2 }
 0x668   : > { %v4281_v24 = vadd.f32 %v4280_v43, %v4258_v63 }
 0x669   : > { %v4301_v57 = vsel %vm4300_vm8, %v4292_v35, %v4298_v3  ;;  %v4303_v23 = vsel %vm4302_vm5, %v4292_v35, %v4298_v3  ;;  %v4471_v3 = vld [vmem:[%s7602_s7 + $0x70] sm:$0xff] }
 0x66a   : > { %v4304_v6 = vrot.slane %v4303_v23, 2  ;;  %v4313_v60 = vsel %vm4312_vm0, %v4301_v57, -inf  ;;  %v4286_v49 = vrot.slane %v4281_v24, 4  ;;  %v4293_v20 = vsel %vm4289_vm9, %v4281_v24, -inf  ;;  %v4470_v24 = vld [vmem:[%s7602_s7 + $0x68] sm:$0xff]  ;;  %4548 = vmatpush.msrb.mxu1 %v4471_v3  ;;  %v4469_v57 = vld [vmem:[%s7602_s7 + $0x60] sm:$0xff] }
 0x66b   : > { %v4314_v52 = vrot.slane %v4313_v60, 4  ;;  %v4468_v23 = vld [vmem:[%s7602_s7 + $0x58] sm:$0xff] }
 0x66c   : > { %v4320_v28 = vsel %vm4312_vm0, %v4304_v6, -inf  ;;  %v4294_v29 = vsel %vm4289_vm9, %v4286_v49, -inf  ;;  %4549 = vmatpush.msrb.mxu1 %v4470_v24  ;;  %v4467_v6 = vld [vmem:[%s7602_s7 + $0x50] sm:$0xff]  ;;  %v4465_v49 = vld [vmem:[%s7602_s7 + $0x40] sm:$0xff]  ;;  %v4508_v24 = vld [vmem:[%s7602_s7 + $0x198] sm:$0xff] }
 0x66d   : > { %v4315_v45 = vmax.f32 %v4313_v60, %v4314_v52  ;;  %v4321_v27 = vrot.slane %v4320_v28, 4  ;;  %v4295_v50 = vmax.f32 %v4293_v20, %v4294_v29  ;;  %v4466_v60 = vld [vmem:[%s7602_s7 + $0x48] sm:$0xff]  ;;  %v4488_v52 = vld [vmem:[%s7602_s7 + $0xf8] sm:$0xff]  ;;  %v4487_v20 = vld [vmem:[%s7602_s7 + $0xf0] sm:$0xff] }
 0x66e   : > { %4550 = vmatpush.msrb.mxu1 %v4469_v57  ;;  %4567 = vmatpush.msrb.mxu3 %v4488_v52  ;;  %v4463_v29 = vld [vmem:[%s7602_s7 + $0x30] sm:$0xff]  ;;  %v4524_v57 = vld [vmem:[%s7602_s7 + $0x218] sm:$0xff]  ;;  %v4506_v52 = vld [vmem:[%s7602_s7 + $0x188] sm:$0xff] }
 0x66f   : > { %v4316_v12 = vrot.slane %v4315_v45, 2  ;;  %v4322_v54 = vmax.f32 %v4320_v28, %v4321_v27  ;;  %v4299_v48 = vrot.slane %v4295_v50, 2  ;;  %v4464_v28 = vld [vmem:[%s7602_s7 + $0x38] sm:$0xff]  ;;  %v4486_v27 = vld [vmem:[%s7602_s7 + $0xe8] sm:$0xff] }
 0x670   : > { %4551 = vmatpush.msrb.mxu1 %v4468_v23  ;;  %4568 = vmatpush.msrb.mxu3 %v4487_v20  ;;  %v4505_v20 = vld [vmem:[%s7602_s7 + $0x180] sm:$0xff] }
 0x671   : > { %v4317_v1 = vmax.f32 %v4315_v45, %v4316_v12  ;;  %v4323_v39 = vrot.slane %v4322_v54, 2  ;;  %v4305_v47 = vsel %vm4300_vm8, %v4295_v50, %v4299_v48  ;;  %v4306_v18 = vsel %vm4302_vm5, %v4295_v50, %v4299_v48  ;;  %v4462_v45 = vld [vmem:[%s7602_s7 + $0x28] sm:$0xff]  ;;  %v4461_v50 = vld [vmem:[%s7602_s7 + $0x20] sm:$0xff]  ;;  %v4460_v48 = vld [vmem:[%s7602_s7 + $0x18] sm:$0xff] }
 0x672   : > { %v4307_v4 = vrot.slane %v4306_v18, 2  ;;  %v4327_v33 = vsel %vm4312_vm0, %v4305_v47, -inf  ;;  %4552 = vmatpush.msrb.mxu1 %v4467_v6  ;;  %4569 = vmatpush.msrb.mxu3 %v4486_v27  ;;  %v4485_v12 = vld [vmem:[%s7602_s7 + $0xe0] sm:$0xff]  ;;  %v4459_v47 = vld [vmem:[%s7602_s7 + $0x10] sm:$0xff] }
 0x673   : > { %v4318_v42 = vrot.slane %v4317_v1, 1  ;;  %v4324_v30 = vmax.f32 %v4322_v54, %v4323_v39  ;;  %v4328_v14 = vrot.slane %v4327_v33, 4  ;;  %v4504_v54 = vld [vmem:[%s7602_s7 + $0x178] sm:$0xff]  ;;  %v4503_v39 = vld [vmem:[%s7602_s7 + $0x170] sm:$0xff] }
 0x674   : > { %v4334_v59 = vsel %vm4312_vm0, %v4307_v4, -inf  ;;  %4553 = vmatpush.msrb.mxu1 %v4466_v60  ;;  %4587 = vmatpush.msra.mxu2 %v4504_v54  ;;  %v4483_v18 = vld [vmem:[%s7602_s7 + $0xd0] sm:$0xff]  ;;  %v4502_v4 = vld [vmem:[%s7602_s7 + $0x168] sm:$0xff]  ;;  %v4375_v27 = vld [vmem:[#allocation5 + $0x7] sm:$0x3] }
 0x675   : > { %v4319_v61 = vmax.f32 %v4317_v1, %v4318_v42  ;;  %v4325_v16 = vrot.slane %v4324_v30, 1  ;;  %v4329_v31 = vmax.f32 %v4327_v33, %v4328_v14  ;;  %v4335_v22 = vrot.slane %v4334_v59, 4  ;;  %v4484_v1 = vld [vmem:[%s7602_s7 + $0xd8] sm:$0xff]  ;;  %4570 = vmatpush.msrb.mxu3 %v4485_v12  ;;  %v4458_v33 = vld [vmem:[%s7602_s7 + $0x8] sm:$0xff]  ;;  %v4457_v14 = vld [vmem:[%s7602_s7] sm:$0xff] }
 0x676   : > { %4554 = vmatpush.msrb.mxu1 %v4465_v49  ;;  %4588 = vmatpush.msra.mxu2 %v4503_v39  ;;  %v4482_v42 = vld [vmem:[%s7602_s7 + $0xc8] sm:$0xff]  ;;  %v4507_v6 = vld [vmem:[%s7602_s7 + $0x190] sm:$0xff] }
 0x677   : > { %v4326_v21 = vmax.f32 %v4324_v30, %v4325_v16  ;;  %v4330_v40 = vrot.slane %v4329_v31, 2  ;;  %v4336_v55 = vmax.f32 %v4334_v59, %v4335_v22  ;;  %v4345_v13 = vadd.f32 %v4972_v17, %v4319_v61  ;;  %4571 = vmatpush.msrb.mxu3 %v4484_v1  ;;  %v4501_v30 = vld [vmem:[%s7602_s7 + $0x160] sm:$0xff]  ;;  %v4500_v61 = vld [vmem:[%s7602_s7 + $0x158] sm:$0xff]  ;;  %v4519_v22 = vld [vmem:[%s7602_s7 + $0x1f0] sm:$0xff] }
 0x678   : > { %4555 = vmatpush.msrb.mxu1 %v4464_v28  ;;  %4589 = vmatpush.msra.mxu2 %v4502_v4  ;;  %v4481_v59 = vld [vmem:[%s7602_s7 + $0xc0] sm:$0xff]  ;;  %v4520_v16 = vld [vmem:[%s7602_s7 + $0x1f8] sm:$0xff]  ;;  %v4523_v60 = vld [vmem:[%s7602_s7 + $0x210] sm:$0xff] }
 0x679   : > { %v4346_v32 = vadd.f32 %v4972_v17, %v4326_v21  ;;  %v4331_v15 = vmax.f32 %v4329_v31, %v4330_v40  ;;  %v4337_v58 = vrot.slane %v4336_v55, 2  ;;  %v4349_v7 = vmax.f32 %v4345_v13, 0.0  ;;  %4572 = vmatpush.msrb.mxu3 %v4483_v18  ;;  %v4499_v31 = vld [vmem:[%s7602_s7 + $0x150] sm:$0xff]  ;;  %v4498_v40 = vld [vmem:[%s7602_s7 + $0x148] sm:$0xff] }
 0x67a   : > { %4556 = vmatpush.msrb.mxu1 %v4463_v29  ;;  %4590 = vmatpush.msra.mxu2 %v4501_v30  ;;  %v4479_v21 = vld [vmem:[%s7602_s7 + $0xb0] sm:$0xff]  ;;  %v4478_v13 = vld [vmem:[%s7602_s7 + $0xa8] sm:$0xff]  ;;  %v4521_v29 = vld [vmem:[%s7602_s7 + $0x200] sm:$0xff] }
 0x67b   : > { %v4350_v34 = vmax.f32 %v4346_v32, 0.0  ;;  %v4332_v2 = vrot.slane %v4331_v15, 1  ;;  %v4338_v26 = vmax.f32 %v4336_v55, %v4337_v58  ;;  %4573 = vmatpush.msrb.mxu3 %v4482_v42  ;;  %v4518_v55 = vld [vmem:[%s7602_s7 + $0x1e8] sm:$0xff]  ;;  %v4497_v32 = vld [vmem:[%s7602_s7 + $0x140] sm:$0xff] }
 0x67c   : > { %4557 = vmatpush.msrb.mxu1 %v4462_v45  ;;  %4591 = vmatpush.msra.mxu2 %v4500_v61  ;;  %v4477_v58 = vld [vmem:[%s7602_s7 + $0xa0] sm:$0xff]  ;;  %v4522_v28 = vld [vmem:[%s7602_s7 + $0x208] sm:$0xff] }
 0x67d   : > { %v4366_v10 = vrot.slane %v4350_v34, 7  ;;  %v4333_v56 = vmax.f32 %v4331_v15, %v4332_v2  ;;  %v4339_v8 = vrot.slane %v4338_v26, 1  ;;  %4574 = vmatpush.msrb.mxu3 %v4481_v59  ;;  %v4517_v15 = vld [vmem:[%s7602_s7 + $0x1e0] sm:$0xff]  ;;  %v4496_v34 = vld [vmem:[%s7602_s7 + $0x138] sm:$0xff]  ;;  %v4389_v1 = vld [vmem:[#allocation5 + $0x37] sm:$0x3] }
 0x67e   : > { %4558 = vmatpush.msrb.mxu1 %v4461_v50  ;;  %4592 = vmatpush.msra.mxu2 %v4499_v31  ;;  %v4516_v2 = vld [vmem:[%s7602_s7 + $0x1d8] sm:$0xff]  ;;  %v4379_v45 = vld [vmem:[#allocation5 + $0x9] sm:$0x3] }
 0x67f   : > { %v4367_v62 = vsel %vm7722_vm14, %v4366_v10, %v4349_v7  ;;  %v4340_v51 = vmax.f32 %v4338_v26, %v4339_v8  ;;  %v4347_v5 = vadd.f32 %v4972_v17, %v4333_v56  ;;  %v4476_v26 = vld [vmem:[%s7602_s7 + $0x98] sm:$0xff]  ;;  %v4495_v7 = vld [vmem:[%s7602_s7 + $0x130] sm:$0xff] }
 0x680   : > { %4373 = vst.msk [vmem:[#allocation5 + $0x18] sm:$0x3] %vm4312_vm0, %v4367_v62  ;;  %4559 = vmatpush.msrb.mxu1 %v4460_v48  ;;  %4593 = vmatpush.msra.mxu2 %v4498_v40  ;;  %v4515_v10 = vld [vmem:[%s7602_s7 + $0x1d0] sm:$0xff]  ;;  %v4494_v62 = vld [vmem:[%s7602_s7 + $0x128] sm:$0xff] }
 0x681   : > { %v4348_v0 = vadd.f32 %v4972_v17, %v4340_v51  ;;  %v4351_v38 = vmax.f32 %v4347_v5, 0.0  ;;  %v4480_v17 = vld [vmem:[%s7602_s7 + $0xb8] sm:$0xff]  ;;  %v4475_v56 = vld [vmem:[%s7602_s7 + $0x90] sm:$0xff]  ;;  %v4514_v51 = vld [vmem:[%s7602_s7 + $0x1c8] sm:$0xff] }
 0x682   : > { %4560 = vmatpush.msrb.mxu1 %v4459_v47  ;;  %4575 = vmatpush.msrb.mxu3 %v4480_v17  ;;  %v4493_v5 = vld [vmem:[%s7602_s7 + $0x120] sm:$0xff] }
 0x683   : > { %v4352_v19 = vmax.f32 %v4348_v0, 0.0  ;;  %4594 = vmatpush.msra.mxu2 %v4497_v32  ;;  %v4513_v0 = vld [vmem:[%s7602_s7 + $0x1c0] sm:$0xff] }
 0x684   : > { %4561 = vmatpush.msrb.mxu1 %v4458_v33  ;;  %4576 = vmatpush.msrb.mxu3 %v4479_v21 }
 0x685   : > { %v4368_v53 = vrot.slane %v4352_v19, 7  ;;  %4595 = vmatpush.msra.mxu2 %v4496_v34  ;;  %v4473_v19 = vld [vmem:[%s7602_s7 + $0x80] sm:$0xff] }
 0x686   : > { %4562 = vmatpush.msrb.mxu1 %v4457_v14  ;;  %4577 = vmatpush.msrb.mxu3 %v4478_v13 }
 0x687   : > { %v4369_v41 = vsel %vm7723_vm2, %v4368_v53, %v4351_v38  ;;  %v4385_v46 = vld [vmem:[#allocation5 + $0x19] sm:$0x3]  ;;  %v4381_v44 = vld [vmem:[#allocation5 + $0x17] sm:$0x3]  ;;  %4596 = vmatpush.msra.mxu2 %v4495_v7  ;;  %v4492_v38 = vld [vmem:[%s7602_s7 + $0x118] sm:$0xff] }
 0x688   : > { %4374 = vst.msk [vmem:[#allocation5 + $0x28] sm:$0x3] %vm4312_vm0, %v4369_v41  ;;  %4412 = vrot.lane.b32.xlu1 %v4385_v46, %s7703_s26  ;;  %4404 = vrot.lane.b32.xlu2 %v4381_v44, %s7703_s26  ;;  %v4378_v43 = vld [vmem:[#allocation5 + $0x18] sm:$0x3]  ;;  %v4512_v53 = vld [vmem:[%s7602_s7 + $0x1b8] sm:$0xff] }
 0x689   : > { %4607 = vmatpush.msra.mxu1 %v4520_v16  ;;  %4578 = vmatpush.msrb.mxu3 %v4477_v58  ;;  %v4528_v41 = vld [vmem:[%s7602_s7 + $0x238] sm:$0xff]  ;;  %v4491_v46 = vld [vmem:[%s7602_s7 + $0x110] sm:$0xff] }
 0x68a   : > { %4597 = vmatpush.msra.mxu2 %v4494_v62  ;;  %v4511_v44 = vld [vmem:[%s7602_s7 + $0x1b0] sm:$0xff] }
 0x68b   : > { %4608 = vmatpush.msra.mxu1 %v4519_v22  ;;  %4579 = vmatpush.msrb.mxu3 %v4476_v26  ;;  %v4383_v12 = vld [vmem:[#allocation5 + $0x18] sm:$0x3] }
 0x68c   : > { %4598 = vmatpush.msra.mxu2 %v4493_v5  ;;  %v4380_v17 = vld [vmem:[#allocation5 + $0x19] sm:$0x3]  ;;  %v4376_v58 = vld [vmem:[#allocation5 + $0x17] sm:$0x3] }
 0x68d   : > { %4609 = vmatpush.msra.mxu1 %v4518_v55  ;;  %4580 = vmatpush.msrb.mxu3 %v4475_v56 }
 0x68e   : > { %4599 = vmatpush.msra.mxu2 %v4492_v38 }
 0x68f   : > { %v4382_v9 = vld [vmem:[#allocation5 + $0x27] sm:$0x3]  ;;  %v4386_v36 = vld [vmem:[#allocation5 + $0x29] sm:$0x3]  ;;  %4610 = vmatpush.msra.mxu1 %v4517_v15  ;;  %4581 = vmatpush.msrb.mxu3 %v4474_v37 }
 0x690   : > { %4406 = vrot.lane.b32.xlu0 %v4382_v9, %s7703_s26  ;;  %4422 = vrot.lane.b32.xlu1 %v4391_v11, %s7703_s26  ;;  %v4392_v35 = vld [vmem:[#allocation5 + $0x29] sm:$0x3]  ;;  %v4527_v11 = vld [vmem:[%s7602_s7 + $0x230] sm:$0xff]  ;;  %v4490_v9 = vld [vmem:[%s7602_s7 + $0x108] sm:$0xff] }
 0x691   : > { %4414 = vrot.lane.b32.xlu2 %v4386_v36, %s7703_s26  ;;  %4533 = vst [vmem:[#allocation1 + $0x20] ss:$4 sm:$0xff] %v4392_v35  ;;  %v4390_v63 = vld [vmem:[#allocation5 + $0x28] sm:$0x3]  ;;  %4611 = vmatpush.msra.mxu1 %v4516_v2  ;;  %v4510_v36 = vld [vmem:[%s7602_s7 + $0x1a8] sm:$0xff] }
 0x692   : > { %4582 = vmatpush.msrb.mxu3 %v4473_v19  ;;  %4600 = vmatpush.msra.mxu2 %v4491_v46  ;;  %v4526_v35 = vld [vmem:[%s7602_s7 + $0x228] sm:$0xff]  ;;  %v4388_v47 = vld [vmem:[#allocation5 + $0x27] sm:$0x3] }
 0x693   : > { %4612 = vmatpush.msra.mxu1 %v4515_v10  ;;  %v4384_v61 = vld [vmem:[#allocation5 + $0x28] sm:$0x3] }
 0x694   : > { %4635 = vmatpush.msra.mxu3 %v4528_v41  ;;  %4601 = vmatpush.msra.mxu2 %v4490_v9 }
 0x695   : > { %4613 = vmatpush.msra.mxu1 %v4514_v51 }
 0x696   : > { %4636 = vmatpush.msra.mxu3 %v4527_v11 }
 0x697   : > { %4614 = vmatpush.msra.mxu1 %v4513_v0 }
 0x698   : > { %4420 = vrot.lane.b32.xlu0 %v4390_v63, %s7703_s26  ;;  %v4509_v63 = vld [vmem:[%s7602_s7 + $0x1a0] sm:$0xff]  ;;  %4637 = vmatpush.msra.mxu3 %v4526_v35 }
 0x699   : > { %4396 = vrot.lane.b32.xlu2 %v4377_v25, %s7703_s26  ;;  %4615 = vmatpush.msra.mxu1 %v4512_v53  ;;  %v4489_v25 = vld [vmem:[%s7602_s7 + $0x100] sm:$0xff] }
 0x69a   : > { %4602 = vmatpush.msra.mxu2 %v4489_v25  ;;  %v4540_v51 = vld.sshfl [vmem:[#allocation1 + $0x20] sm:$0xff pattern:$0x73625140] }
 0x69b   : > { %4616 = vmatpush.msra.mxu1 %v4511_v44 }
 0x69d   : > { %4617 = vmatpush.msra.mxu1 %v4510_v36 }
 0x69f   : > { %4618 = vmatpush.msra.mxu1 %v4509_v63 }
 0x6a0   : > { %4398 = vrot.lane.b32.xlu0 %v4378_v43, %s7703_s26  ;;  %v4525_v43 = vld [vmem:[%s7602_s7 + $0x220] sm:$0xff]  ;;  %s4991_s26 = sshra.s32 %s4679_s17, 4  ;;  %s4992_s26 = int_to_ptr.hbm [resolvable:$true] %s4991_s26 }
 0x6a1   : > { %4638 = vmatpush.msra.mxu3 %v4525_v43  ;;  %4619 = vmatpush.msra.mxu1 %v4508_v24  ;;  %s4993_s23 = scalar_lea.hbm %s4992_s26, 1  ;;  %p4998_p0 = scmp.lt.s32.totalorder %s4992_s26, %s7604_s9 }
 0x6a2   : > { %p4994_p11 = scmp.ne.s32.totalorder %s4992_s26, %s4993_s23  ;;  %p4999_p1 = scmp.lt.s32.totalorder %s4997_s24, %s4993_s23 }
 0x6a3   : > { %4639 = vmatpush.msra.mxu3 %v4524_v57  ;;  %4620 = vmatpush.msra.mxu1 %v4507_v6 }
 0x6a4   : > { %p4995_p12 = pnand %p4994_p11, %p5145_p5  ;;  %p5000_p2 = por %p4999_p1, %p4998_p0 }
 0x6a5   : > { %4640 = vmatpush.msra.mxu3 %v4523_v60  ;;  %4621 = vmatpush.msra.mxu1 %v4506_v52 }
 0x6a6   : > { %p4996_p13 = pneg %p4995_p12 }
 0x6a7   : > { %4641 = vmatpush.msra.mxu3 %v4522_v28  ;;  %4622 = vmatpush.msra.mxu1 %v4505_v20 }
 0x6a8   : > { %p5001_p3 = pnand %p5000_p2, %p4996_p13 }
 0x6a9   : > { %4642 = vmatpush.msra.mxu3 %v4521_v29 }
 0x6e2   : > { %v4405_v8 = vpop.permute.xlu2 %4404 }
 0x6e3   : > { %v4428_v54 = vsel %vm3559_vm15, %v4379_v45, %v4405_v8 }
 0x6e4   : > { %v4444_v42 = vrot.slane %v4428_v54, 6 }
 0x6eb   : > { %v4415_v3 = vpop.permute.xlu2 %4414 }
 0x6ec   : > { %v4431_v22 = vsel %vm3559_vm15, %v4384_v61, %v4415_v3 }
 0x6ed   : > { %v4448_v13 = vrot.slane %v4431_v22, 4 }
 0x6f3   : > { %v4397_v50 = vpop.permute.xlu2 %4396 }
 0x6f4   : > { %v4426_v4 = vsel %vm3559_vm15, %v4375_v27, %v4397_v50 }
 0x6f5   : > { %v4450_v16 = vsel %vm4300_vm8, %v4426_v4, %v4444_v42 }
 0x6fa   : > { %v4413_v23 = vpop.permute.xlu1 %4412 }
 0x6fb   : > { %v4430_v48 = vsel %vm3559_vm15, %v4383_v12, %v4413_v23  ;;  %v4660_v23 = vld [vmem:[%s7603_s8] sm:$0x1] }
 0x6fc   : > { %v4445_v30 = vrot.slane %v4430_v48, 4 }
 0x702   : > { %v4407_v49 = vpop.permute.xlu0 %4406  ;;  %v4423_v39 = vpop.permute.xlu1 %4422 }
 0x703   : > { %v4433_v59 = vsel %vm3559_vm15, %v4389_v1, %v4423_v39  ;;  %v4429_v21 = vsel %vm3559_vm15, %v4380_v17, %v4407_v49 }
 0x704   : > { %v4449_v55 = vrot.slane %v4433_v59, 2  ;;  %v4447_v32 = vrot.slane %v4429_v21, 6 }
 0x706   : > { %v4455_v2 = vsel %vm4451_vm13, %v4448_v13, %v4449_v55 }
 0x70a   : > { %v4421_v18 = vpop.permute.xlu0 %4420 }
 0x70b   : > { %v4432_v33 = vsel %vm3559_vm15, %v4388_v47, %v4421_v18 }
 0x70c   : > { %v4446_v14 = vrot.slane %v4432_v33, 2 }
 0x70e   : > { %v4452_v31 = vsel %vm4451_vm13, %v4445_v30, %v4446_v14 }
 0x70f   : > { %v4453_v40 = vsel %vm4144_vm1, %v4450_v16, %v4452_v31 }
 0x710   : > { %4529 = vst [vmem:[#allocation1] ss:$4 sm:$0xff] %v4453_v40 }
 0x712   : > { %v4399_v15 = vpop.permute.xlu0 %4398 }
 0x713   : > { %v4427_v34 = vsel %vm3559_vm15, %v4376_v58, %v4399_v15 }
 0x714   : > { %v4454_v26 = vsel %vm4300_vm8, %v4427_v34, %v4447_v32 }
 0x715   : > { %v4456_v7 = vsel %vm4144_vm1, %v4454_v26, %v4455_v2 }
 0x716   : > { %4531 = vst [vmem:[#allocation1 + $0x1] ss:$4 sm:$0xff] %v4456_v7 }
 0x71d   : > { %v4536_v10 = vld.sshfl [vmem:[#allocation1] sm:$0xff pattern:$0x73625140]  ;;  %v4537_v56 = vld.sshfl [vmem:[#allocation1 + $0x8] sm:$0xff pattern:$0x73625140] }
 0x71e   : > { %4563 = vmatmul.f32.vlgmr.msrb.gmra.mxu1 %v4536_v10  ;;  %4583 = vmatmul.f32.vlgmr.msrb.gmra.mxu3 %v4537_v56  ;;  %v4538_v8 = vld.sshfl [vmem:[#allocation1 + $0x10] sm:$0xff pattern:$0x73625140]  ;;  %v4539_v62 = vld.sshfl [vmem:[#allocation1 + $0x18] sm:$0xff pattern:$0x73625140] }
 0x71f   : > { %4603 = vmatmul.f32.vlgmr.msra.gmra.mxu2 %v4538_v8 }
 0x726   : > { %4623 = vmatmul.f32.vlgmr.msra.gmra.mxu1 %v4539_v62  ;;  %4782 = vmatmul.msk.f32.vlgmr.msra.gmra.mxu3 %vm3559_vm15, %v4540_v51  ;;  %vm4663_vm15 = vcmask 516096  }
 0x79b   : > { %v4564_v37 = vpop.f32.mrf.mxu1 }
 0x7a1   : > { %v4584_v5 = vpop.f32.mrf.mxu3 }
 0x7a2   : > { %v4585_v0 = vadd.f32 %v4584_v5, %v4564_v37  ;;  %v4604_v19 = vpop.f32.mrf.mxu2 }
 0x7a3   : > { %v4624_v53 = vpop.f32.mrf.mxu1 }
 0x7a4   : > { %v4605_v38 = vadd.f32 %v4604_v19, %v4585_v0 }
 0x7a6   : > { %v4625_v41 = vadd.f32 %v4624_v53, %v4605_v38 }
 0x7a9   : > { %v4644_v46 = vpop.f32.mrf.mxu3 }
 0x7aa   : > { %v4645_v44 = vadd.f32 %v4644_v46, %v4625_v41 }
 0x7ac   : > { %v4648_v11 = vrot.slane %v4645_v44, 2  ;;  %v4650_v9 = vsel %vm4312_vm0, %v4645_v44, -inf }
 0x7ae   : > { %v4651_v36 = vsel %vm4312_vm0, %v4648_v11, -inf }
 0x7af   : > { %v4652_v35 = vmax.f32 %v4650_v9, %v4651_v36 }
 0x7b1   : > { %v4653_v25 = vsel %vm4312_vm0, %v4652_v35, -inf }
 0x7b2   : > { %v4654_v63 = vrot.slane %v4653_v25, 4 }
 0x7b4   : > { %v4655_v43 = vmax.f32 %v4653_v25, %v4654_v63 }
 0x7b6   : > { %v4656_v3 = vrot.slane %v4655_v43, 2 }
 0x7b8   : > { %v4657_v24 = vmax.f32 %v4655_v43, %v4656_v3 }
 0x7ba   : > { %v4658_v57 = vrot.slane %v4657_v24, 1 }
 0x7bc   : > { %v4659_v6 = vmax.f32 %v4657_v24, %v4658_v57 }
 0x7be   : > { %v4661_v60 = vadd.f32 %v4660_v23, %v4659_v6 }
 0x7c0   : > { %v4662_v49 = vmax.f32 %v4661_v60, 0.0 }
 0x7c2   : > { %4664 = vst.msk [vmem:[%s324_s28] sm:$0x1] %vm4663_vm15, %v4662_v49 }
 0x7c3   : > { %5004 = shalt.err (!%p5001_p3)
}
 0x7c4   : > { %4790 = dma.vmem_to_hbm [thread:$0]  (%p5145_p5), %s4677_s22, 16, %s4679_s17, %s4666_s21  }
 0x7c5 PF: > { %p4796_p4 = scmp.ge.s32.totalorder %s5039_s12, 2  ;;  %s4690_s14 = sand.u32 1, %s5027_s30  }
 0x7c6   : > { %s4691_s16 = scalar_lea.sflag [#allocation7], %s4690_s14 }
 0x7c7   : > { %p4793_p7 = pnand %p4796_p4, %p5149_p6 }
 0x7c9   : > { %p4794_p8 = pneg %p4793_p7 }
 0x7cb   : > { %5022 = dma.done.wait (%p4794_p8), %s4691_s16, 16  }
 0x7cc   : > { %5024 = vsyncadd (%p4794_p8), %s4691_s16, 4294967280  ;;  %p19_p9 = scmp.ge.s32.totalorder %s5132_s15, 4   ;;  %s7724_s30 = smov %s5031_s10 }
 0x7cd   : > { %s7725_s10 = smov %s5035_s11  ;;  %s7726_s11 = smov %s5143_s18 }
 0x7ce   : > { %s7727_s12 = smov %s5132_s15  ;;  %21 = sbr.rel (!%p19_p9) target bundleno = 3 (0x3), region = 109 }
 0x7d3   :  { %4696 = vsyncpa [#allocation7], 1 }
 0x7d4   :  { %4698 = vsyncpa [#allocation7 + $0x1], 1 }

</bundles_post_ra>
